<compile_context>
chip_gen: v7x
topology: tpu7x:2x2x1
jax: 0.10.0
libtpu: 0.0.40
codegen_flags: <defaults>
</compile_context>

<pallas_src>
import functools

import jax
import jax.numpy as jnp
from jax import lax
from jax.experimental import pallas as pl
from jax.experimental.pallas import tpu as pltpu


def _round_up(n, m):
    return ((n + m - 1) // m) * m


# ----------------------------------------------------------------------------
# Fused forward kernel
# ----------------------------------------------------------------------------
def _fused_forward_kernel(
    patches_ref,          # (NC2, 37)  conv1 im2col, 4 pool corners in lanes + bias lane
    consts_ref,           # (CONST_ROWS, 128) packed weights / biases
    out_ref,              # (B, 128)   lane-dense merged-head output
    p1pad_ref,            # (NC2 + 2*PADR, C1)  zero-padded pool1 output
    im2col_ref,           # (NC2, 9*C1)         conv2 im2col
    y2_ref,               # (NC2, C2)           conv2 + ReLU output
    hbuf_ref,             # (B, S4*C2)          lane-dense head input
    *, B, W4, WP, C1, C2, NC2, PADR, S4,
    W1_OFF, W2_OFF, B2_ROW, BH1_ROW, BH2_ROW, WH2_OFF, WH1_OFF,
):
    f32 = jnp.float32

    # ---- conv1 (+bias via indicator lane) + ReLU + maxpool1 -------------------
    w1 = consts_ref[W1_OFF:W1_OFF + 37, 0:4 * C1]                        # (37, 64)
    y1 = jnp.dot(patches_ref[...], w1, preferred_element_type=f32)       # (NC2, 64)
    p1 = jnp.maximum(
        jnp.maximum(jnp.maximum(y1[:, 0:C1], y1[:, C1:2 * C1]),
                    jnp.maximum(y1[:, 2 * C1:3 * C1], y1[:, 3 * C1:4 * C1])),
        0.0)                                                              # (NC2, C1)

    # ---- zero-padded (rows) pool1 slab for constant-shift conv2 taps ----------
    p1pad_ref[0:PADR, :] = jnp.zeros((PADR, C1), f32)
    p1pad_ref[PADR + NC2:PADR + NC2 + PADR, :] = jnp.zeros((PADR, C1), f32)
    p1pad_ref[PADR:PADR + NC2, :] = p1

    # ---- conv2: in-VMEM im2col (9 shifted slabs at lane offsets) + ONE matmul -
    for t in range(9):
        dy, dx = t // 3, t % 3
        shift = ((dy - 1) * WP + (dx - 1)) * B
        im2col_ref[:, t * C1:(t + 1) * C1] = \
            p1pad_ref[PADR + shift:PADR + shift + NC2, :]
    w2 = consts_ref[W2_OFF:W2_OFF + 9 * C1, 0:C2]                        # (144, 32)
    b2 = consts_ref[B2_ROW:B2_ROW + 1, 0:C2]                             # (1, 32)
    y2_ref[...] = jnp.maximum(
        jnp.dot(im2col_ref[...], w2, preferred_element_type=f32) + b2, 0.0)

    # ---- maxpool2 -> lane-dense (B, S4*C2) head input --------------------------
    # batch is innermost in the row index, so each window corner is a contiguous
    # (B, C2) row slice; the (y4, x4) -> lane-group order is folded into wh1.
    for s in range(S4):
        y4, x4 = s // W4, s % W4
        r00 = ((2 * y4 + 1) * WP + (2 * x4 + 1)) * B
        r01 = r00 + B
        r10 = r00 + WP * B
        r11 = r10 + B
        blk = jnp.maximum(
            jnp.maximum(y2_ref[r00:r00 + B, :], y2_ref[r01:r01 + B, :]),
            jnp.maximum(y2_ref[r10:r10 + B, :], y2_ref[r11:r11 + B, :]))
        hbuf_ref[:, s * C2:(s + 1) * C2] = blk

    # ---- merged heads: one (B,896)x(896,128) + one (B,128)x(128,128) ----------
    wh1 = consts_ref[WH1_OFF:WH1_OFF + S4 * C2, :]                       # (896, 128)
    bh1 = consts_ref[BH1_ROW:BH1_ROW + 1, :]
    h = jnp.maximum(
        jnp.dot(hbuf_ref[...], wh1, preferred_element_type=f32) + bh1, 0.0)
    wh2 = consts_ref[WH2_OFF:WH2_OFF + 128, :]
    bh2 = consts_ref[BH2_ROW:BH2_ROW + 1, :]
    out_ref[...] = jnp.dot(h, wh2, preferred_element_type=f32) + bh2     # (B, 128)


# ----------------------------------------------------------------------------
# Wrapper: weight packing + single pallas_call
# ----------------------------------------------------------------------------
def shared_bottom_cnn_forward(params, x):
    """x: (B, 1, num_features, width) NCHW float32 -> (emotion_out, focus_out)."""
    x = x.astype(jnp.float32)
    B, _, H, W = x.shape
    H2, W2 = H // 2, W // 2
    H4, W4 = H2 // 2, W2 // 2
    C1, C2, NH = 16, 32, 128
    S4 = H4 * W4
    WP = W2 + 2                                  # padded row width of the pool1 grid
    NC2 = (H2 + 2) * WP * B                      # rows of the padded pool1/conv2 grid
    PADR = _round_up((WP + 1) * B, 8)            # head/tail guard rows for tap shifts
    e_dim = params["e2_w"].shape[1]
    f_dim = params["f2_w"].shape[1]
    assert e_dim + f_dim <= NH, "merged-head packing requires e_dim + f_dim <= 128"
    assert params["e1_w"].shape[0] == S4 * C2, "head input dim mismatch with x shape"

    # ---- conv1 im2col: rows = padded (y1, x1, b) grid, lanes = (corner, tap) + 1 ----
    xpad = jnp.pad(x[:, 0], ((0, 0), (1, 1), (1, 1)))                    # (B, H+2, W+2)
    taps = jnp.stack([xpad[:, dy:dy + H, dx:dx + W]
                      for dy in range(3) for dx in range(3)], axis=-1)    # (B, H, W, 9)
    taps = taps[:, :2 * H2, :2 * W2, :]
    pat = (taps.reshape(B, H2, 2, W2, 2, 9)
               .transpose(1, 3, 0, 2, 4, 5)                               # (y1,x1,b,yi,xi,t)
               .reshape(H2, W2, B, 36))
    pat = jnp.concatenate([pat, jnp.ones((H2, W2, B, 1), jnp.float32)], axis=-1)
    pat = jnp.pad(pat, ((1, 1), (1, 1), (0, 0), (0, 0)))                  # zero borders
    patches = pat.reshape(NC2, 37)

    # ---- packed weights (PyTorch OIHW conv, (in,out) linear layouts) ----
    w1m = jnp.transpose(params["conv1_w"], (2, 3, 1, 0)).reshape(9, C1)
    w1big = jnp.concatenate(
        [jnp.kron(jnp.eye(4, dtype=jnp.float32), w1m),                    # corner block-diag
         jnp.tile(params["conv1_b"].reshape(1, C1), (1, 4))], axis=0)     # bias row (37, 64)
    w2m = jnp.transpose(params["conv2_w"], (2, 3, 1, 0)).reshape(9 * C1, C2)

    def reorder_head(w):  # rows (c, y4, x4) -> rows (y4, x4, c)  [fold flatten order]
        return w.reshape(C2, H4, W4, -1).transpose(1, 2, 0, 3).reshape(S4 * C2, -1)

    wh1 = jnp.concatenate([reorder_head(params["e1_w"]),
                           reorder_head(params["f1_w"])], axis=1)          # (S4*C2, 128)
    bh1 = jnp.concatenate([params["e1_b"], params["f1_b"]])                # (128,)
    wh2 = jnp.zeros((NH, NH), jnp.float32)
    wh2 = wh2.at[0:64, 0:e_dim].set(params["e2_w"])
    wh2 = wh2.at[64:128, e_dim:e_dim + f_dim].set(params["f2_w"])
    bh2 = jnp.zeros((NH,), jnp.float32)
    bh2 = bh2.at[0:e_dim].set(params["e2_b"])
    bh2 = bh2.at[e_dim:e_dim + f_dim].set(params["f2_b"])

    # ---- pack every constant into a single (CONST_ROWS, 128) array ----
    W1_OFF = 0
    W2_OFF = _round_up(37, 8)                          # 40
    B2_ROW = W2_OFF + 9 * C1                           # 184
    BH1_ROW = B2_ROW + 1                               # 185
    BH2_ROW = BH1_ROW + 1                              # 186
    WH2_OFF = _round_up(BH2_ROW + 1, 8)                # 192
    WH1_OFF = WH2_OFF + NH                             # 320
    n_const_rows = WH1_OFF + S4 * C2
    consts = jnp.zeros((n_const_rows, NH), jnp.float32)
    consts = consts.at[W1_OFF:W1_OFF + 37, 0:4 * C1].set(w1big)
    consts = consts.at[W2_OFF:W2_OFF + 9 * C1, 0:C2].set(w2m)
    consts = consts.at[B2_ROW, 0:C2].set(params["conv2_b"])
    consts = consts.at[BH1_ROW, :].set(bh1)
    consts = consts.at[BH2_ROW, :].set(bh2)
    consts = consts.at[WH2_OFF:WH2_OFF + NH, :].set(wh2)
    consts = consts.at[WH1_OFF:WH1_OFF + S4 * C2, :].set(wh1)

    kernel = functools.partial(
        _fused_forward_kernel,
        B=B, W4=W4, WP=WP, C1=C1, C2=C2, NC2=NC2, PADR=PADR, S4=S4,
        W1_OFF=W1_OFF, W2_OFF=W2_OFF, B2_ROW=B2_ROW, BH1_ROW=BH1_ROW,
        BH2_ROW=BH2_ROW, WH2_OFF=WH2_OFF, WH1_OFF=WH1_OFF)

    def full(shape):
        return pl.BlockSpec(shape, lambda i: (0, 0))

    out = pl.pallas_call(
        kernel,
        out_shape=jax.ShapeDtypeStruct((B, NH), jnp.float32),
        grid=(1,),
        in_specs=[full((NC2, 37)), full((n_const_rows, NH))],
        out_specs=full((B, NH)),
        scratch_shapes=[
            pltpu.VMEM((NC2 + 2 * PADR, C1), jnp.float32),   # zero-padded pool1 output
            pltpu.VMEM((NC2, 9 * C1), jnp.float32),          # conv2 im2col
            pltpu.VMEM((NC2, C2), jnp.float32),              # conv2 output
            pltpu.VMEM((B, S4 * C2), jnp.float32),           # lane-dense head input
        ],
        compiler_params=pltpu.CompilerParams(dimension_semantics=("arbitrary",)),
    )(patches, consts)

    return out[:, 0:e_dim], out[:, e_dim:e_dim + f_dim]


# ----------------------------------------------------------------------------
# Parameters
# ----------------------------------------------------------------------------
def init_params(key, num_features, width, emotion_output_dim, focus_output_dim):
    H2, W2 = num_features // 2, width // 2
    H4, W4 = H2 // 2, W2 // 2
    shared_output_dim = 32 * H4 * W4
    keys = jax.random.split(key, 12)
    s = 0.05

    def n(k, shape):
        return (s * jax.random.normal(k, shape)).astype(jnp.float32)

    return {
        "conv1_w": n(keys[0], (16, 1, 3, 3)),
        "conv1_b": n(keys[1], (16,)),
        "conv2_w": n(keys[2], (32, 16, 3, 3)),
        "conv2_b": n(keys[3], (32,)),
        # Linear weights stored as (in, out) == PyTorch weight.T
        "e1_w": n(keys[4], (shared_output_dim, 64)),
        "e1_b": n(keys[5], (64,)),
        "e2_w": n(keys[6], (64, emotion_output_dim)),
        "e2_b": n(keys[7], (emotion_output_dim,)),
        "f1_w": n(keys[8], (shared_output_dim, 64)),
        "f1_b": n(keys[9], (64,)),
        "f2_w": n(keys[10], (64, focus_output_dim)),
        "f2_b": n(keys[11], (focus_output_dim,)),
    }


# ----------------------------------------------------------------------------
# Pure-JAX reference (for correctness check)
# ----------------------------------------------------------------------------
def _reference_forward(params, x):
    dn = ("NCHW", "OIHW", "NCHW")

    def conv(h, w, b):
        y = lax.conv_general_dilated(h, w, (1, 1), ((1, 1), (1, 1)), dimension_numbers=dn)
        return jnp.maximum(y + b[None, :, None, None], 0.0)

    def pool(h):
        return lax.reduce_window(h, -jnp.inf, lax.max, (1, 1, 2, 2), (1, 1, 2, 2), "VALID")

    h = pool(conv(x, params["conv1_w"], params["conv1_b"]))
    h = pool(conv(h, params["conv2_w"], params["conv2_b"]))
    shared = h.reshape(h.shape[0], -1)
    e = jnp.maximum(shared @ params["e1_w"] + params["e1_b"], 0.0) @ params["e2_w"] + params["e2_b"]
    f = jnp.maximum(shared @ params["f1_w"] + params["f1_b"], 0.0) @ params["f2_w"] + params["f2_b"]
    return e, f


if __name__ == "__main__":
    B = 2
    num_features = 16
    width = 30  # the PyTorch module hard-codes width 30 in its dummy input
    emotion_output_dim = 3
    focus_output_dim = 2

    key = jax.random.PRNGKey(0)
    pkey, xkey = jax.random.split(key)
    params = init_params(pkey, num_features, width, emotion_output_dim, focus_output_dim)
    x = jax.random.normal(xkey, (B, 1, num_features, width), dtype=jnp.float32)

    fwd = jax.jit(shared_bottom_cnn_forward)
    emotion_out, focus_out = jax.block_until_ready(fwd(params, x))

    e_ref, f_ref = _reference_forward(params, x)
    assert emotion_out.shape == (B, emotion_output_dim)
    assert focus_out.shape == (B, focus_output_dim)
    assert jnp.allclose(emotion_out, e_ref, atol=1e-3, rtol=1e-3)
    assert jnp.allclose(focus_out, f_ref, atol=1e-3, rtol=1e-3)

    print("KERNEL_OK")
</pallas_src>

<mosaic_0001>
module attributes {stable_mosaic.version = 11 : i64} {
  func.func @_fused_forward_kernel(%arg0: i32, %arg1: memref<340x37xf32, #tpu.memory_space<vmem>>, %arg2: memref<1216x128xf32, #tpu.memory_space<vmem>>, %arg3: memref<2x128xf32, #tpu.memory_space<vmem>>, %arg4: memref<420x16xf32, #tpu.memory_space<vmem>>, %arg5: memref<340x144xf32, #tpu.memory_space<vmem>>, %arg6: memref<340x32xf32, #tpu.memory_space<vmem>>, %arg7: memref<2x896xf32, #tpu.memory_space<vmem>>) attributes {dimension_semantics = [#tpu.dimension_semantics<arbitrary>], iteration_bounds = array<i64: 1>, scalar_prefetch = 0 : i64, scratch_operands = 4 : i64, tpu.core_type = #tpu.core_type<tc>, window_params = [{pipeline_mode = #tpu.pipeline_mode<synchronous>, transform_indices = @transform_0, window_bounds = array<i64: 340, 37>}, {pipeline_mode = #tpu.pipeline_mode<synchronous>, transform_indices = @transform_1, window_bounds = array<i64: 1216, 128>}, {pipeline_mode = #tpu.pipeline_mode<synchronous>, transform_indices = @transform_2, window_bounds = array<i64: 2, 128>}]} {
    %c0 = arith.constant 0 : index
    %c0_0 = arith.constant 0 : index
    %0 = vector.load %arg2[%c0, %c0_0] : memref<1216x128xf32, #tpu.memory_space<vmem>>, vector<37x64xf32>
    %c0_1 = arith.constant 0 : index
    %c0_2 = arith.constant 0 : index
    %1 = vector.load %arg1[%c0_1, %c0_2] : memref<340x37xf32, #tpu.memory_space<vmem>>, vector<340x37xf32>
    %cst = arith.constant dense<0.000000e+00> : vector<340x64xf32>
    %2 = tpu.matmul %1, %0, %cst {dimension_numbers = #tpu.dot_dimension_numbers<[1], [0], [0], [1], [0, 0, 1, 1], [], []>} : vector<340x37xf32>, vector<37x64xf32>, vector<340x64xf32> -> vector<340x64xf32>
    %3 = vector.extract_strided_slice %2 {offsets = [0, 0], sizes = [340, 16], strides = [1, 1]} : vector<340x64xf32> to vector<340x16xf32>
    %4 = vector.extract_strided_slice %2 {offsets = [0, 16], sizes = [340, 16], strides = [1, 1]} : vector<340x64xf32> to vector<340x16xf32>
    %5 = arith.maximumf %3, %4 : vector<340x16xf32>
    %6 = vector.extract_strided_slice %2 {offsets = [0, 32], sizes = [340, 16], strides = [1, 1]} : vector<340x64xf32> to vector<340x16xf32>
    %7 = vector.extract_strided_slice %2 {offsets = [0, 48], sizes = [340, 16], strides = [1, 1]} : vector<340x64xf32> to vector<340x16xf32>
    %8 = arith.maximumf %6, %7 : vector<340x16xf32>
    %9 = arith.maximumf %5, %8 : vector<340x16xf32>
    %cst_3 = arith.constant 0.000000e+00 : f32
    %10 = vector.broadcast %cst_3 : f32 to vector<340x16xf32>
    %11 = arith.maximumf %9, %10 : vector<340x16xf32>
    %cst_4 = arith.constant 0.000000e+00 : f32
    %12 = vector.broadcast %cst_4 : f32 to vector<40x16xf32>
    %c0_5 = arith.constant 0 : index
    %c0_6 = arith.constant 0 : index
    %13 = vector.load %arg4[%c0_5, %c0_6] : memref<420x16xf32, #tpu.memory_space<vmem>>, vector<40x16xf32>
    tpu.vector_store %arg4[%c0_5, %c0_6], %12 {strides = array<i32>} : memref<420x16xf32, #tpu.memory_space<vmem>>, vector<40x16xf32>,
    %cst_7 = arith.constant 0.000000e+00 : f32
    %14 = vector.broadcast %cst_7 : f32 to vector<40x16xf32>
    %c380 = arith.constant 380 : index
    %c0_8 = arith.constant 0 : index
    %15 = vector.load %arg4[%c380, %c0_8] : memref<420x16xf32, #tpu.memory_space<vmem>>, vector<40x16xf32>
    tpu.vector_store %arg4[%c380, %c0_8], %14 {strides = array<i32>} : memref<420x16xf32, #tpu.memory_space<vmem>>, vector<40x16xf32>,
    %c40 = arith.constant 40 : index
    %c0_9 = arith.constant 0 : index
    %16 = vector.load %arg4[%c40, %c0_9] : memref<420x16xf32, #tpu.memory_space<vmem>>, vector<340x16xf32>
    tpu.vector_store %arg4[%c40, %c0_9], %11 {strides = array<i32>} : memref<420x16xf32, #tpu.memory_space<vmem>>, vector<340x16xf32>,
    %c4 = arith.constant 4 : index
    %c0_10 = arith.constant 0 : index
    %17 = vector.load %arg4[%c4, %c0_10] : memref<420x16xf32, #tpu.memory_space<vmem>>, vector<340x16xf32>
    %c0_11 = arith.constant 0 : index
    %c0_12 = arith.constant 0 : index
    %18 = vector.load %arg5[%c0_11, %c0_12] : memref<340x144xf32, #tpu.memory_space<vmem>>, vector<340x16xf32>
    tpu.vector_store %arg5[%c0_11, %c0_12], %17 {strides = array<i32>} : memref<340x144xf32, #tpu.memory_space<vmem>>, vector<340x16xf32>,
    %c6 = arith.constant 6 : index
    %c0_13 = arith.constant 0 : index
    %19 = vector.load %arg4[%c6, %c0_13] : memref<420x16xf32, #tpu.memory_space<vmem>>, vector<340x16xf32>
    %c0_14 = arith.constant 0 : index
    %c16 = arith.constant 16 : index
    %20 = vector.load %arg5[%c0_14, %c16] : memref<340x144xf32, #tpu.memory_space<vmem>>, vector<340x16xf32>
    tpu.vector_store %arg5[%c0_14, %c16], %19 {strides = array<i32>} : memref<340x144xf32, #tpu.memory_space<vmem>>, vector<340x16xf32>,
    %c8 = arith.constant 8 : index
    %c0_15 = arith.constant 0 : index
    %21 = vector.load %arg4[%c8, %c0_15] : memref<420x16xf32, #tpu.memory_space<vmem>>, vector<340x16xf32>
    %c0_16 = arith.constant 0 : index
    %c32 = arith.constant 32 : index
    %22 = vector.load %arg5[%c0_16, %c32] : memref<340x144xf32, #tpu.memory_space<vmem>>, vector<340x16xf32>
    tpu.vector_store %arg5[%c0_16, %c32], %21 {strides = array<i32>} : memref<340x144xf32, #tpu.memory_space<vmem>>, vector<340x16xf32>,
    %c38 = arith.constant 38 : index
    %c0_17 = arith.constant 0 : index
    %23 = vector.load %arg4[%c38, %c0_17] : memref<420x16xf32, #tpu.memory_space<vmem>>, vector<340x16xf32>
    %c0_18 = arith.constant 0 : index
    %c48 = arith.constant 48 : index
    %24 = vector.load %arg5[%c0_18, %c48] : memref<340x144xf32, #tpu.memory_space<vmem>>, vector<340x16xf32>
    tpu.vector_store %arg5[%c0_18, %c48], %23 {strides = array<i32>} : memref<340x144xf32, #tpu.memory_space<vmem>>, vector<340x16xf32>,
    %c40_19 = arith.constant 40 : index
    %c0_20 = arith.constant 0 : index
    %25 = vector.load %arg4[%c40_19, %c0_20] : memref<420x16xf32, #tpu.memory_space<vmem>>, vector<340x16xf32>
    %c0_21 = arith.constant 0 : index
    %c64 = arith.constant 64 : index
    %26 = vector.load %arg5[%c0_21, %c64] : memref<340x144xf32, #tpu.memory_space<vmem>>, vector<340x16xf32>
    tpu.vector_store %arg5[%c0_21, %c64], %25 {strides = array<i32>} : memref<340x144xf32, #tpu.memory_space<vmem>>, vector<340x16xf32>,
    %c42 = arith.constant 42 : index
    %c0_22 = arith.constant 0 : index
    %27 = vector.load %arg4[%c42, %c0_22] : memref<420x16xf32, #tpu.memory_space<vmem>>, vector<340x16xf32>
    %c0_23 = arith.constant 0 : index
    %c80 = arith.constant 80 : index
    %28 = vector.load %arg5[%c0_23, %c80] : memref<340x144xf32, #tpu.memory_space<vmem>>, vector<340x16xf32>
    tpu.vector_store %arg5[%c0_23, %c80], %27 {strides = array<i32>} : memref<340x144xf32, #tpu.memory_space<vmem>>, vector<340x16xf32>,
    %c72 = arith.constant 72 : index
    %c0_24 = arith.constant 0 : index
    %29 = vector.load %arg4[%c72, %c0_24] : memref<420x16xf32, #tpu.memory_space<vmem>>, vector<340x16xf32>
    %c0_25 = arith.constant 0 : index
    %c96 = arith.constant 96 : index
    %30 = vector.load %arg5[%c0_25, %c96] : memref<340x144xf32, #tpu.memory_space<vmem>>, vector<340x16xf32>
    tpu.vector_store %arg5[%c0_25, %c96], %29 {strides = array<i32>} : memref<340x144xf32, #tpu.memory_space<vmem>>, vector<340x16xf32>,
    %c74 = arith.constant 74 : index
    %c0_26 = arith.constant 0 : index
    %31 = vector.load %arg4[%c74, %c0_26] : memref<420x16xf32, #tpu.memory_space<vmem>>, vector<340x16xf32>
    %c0_27 = arith.constant 0 : index
    %c112 = arith.constant 112 : index
    %32 = vector.load %arg5[%c0_27, %c112] : memref<340x144xf32, #tpu.memory_space<vmem>>, vector<340x16xf32>
    tpu.vector_store %arg5[%c0_27, %c112], %31 {strides = array<i32>} : memref<340x144xf32, #tpu.memory_space<vmem>>, vector<340x16xf32>,
    %c76 = arith.constant 76 : index
    %c0_28 = arith.constant 0 : index
    %33 = vector.load %arg4[%c76, %c0_28] : memref<420x16xf32, #tpu.memory_space<vmem>>, vector<340x16xf32>
    %c0_29 = arith.constant 0 : index
    %c128 = arith.constant 128 : index
    %34 = vector.load %arg5[%c0_29, %c128] : memref<340x144xf32, #tpu.memory_space<vmem>>, vector<340x16xf32>
    tpu.vector_store %arg5[%c0_29, %c128], %33 {strides = array<i32>} : memref<340x144xf32, #tpu.memory_space<vmem>>, vector<340x16xf32>,
    %c40_30 = arith.constant 40 : index
    %c0_31 = arith.constant 0 : index
    %35 = vector.load %arg2[%c40_30, %c0_31] : memref<1216x128xf32, #tpu.memory_space<vmem>>, vector<144x32xf32>
    %c184 = arith.constant 184 : index
    %c0_32 = arith.constant 0 : index
    %36 = vector.load %arg2[%c184, %c0_32] : memref<1216x128xf32, #tpu.memory_space<vmem>>, vector<1x32xf32>
    %c0_33 = arith.constant 0 : index
    %c0_34 = arith.constant 0 : index
    %37 = vector.load %arg5[%c0_33, %c0_34] : memref<340x144xf32, #tpu.memory_space<vmem>>, vector<340x144xf32>
    %cst_35 = arith.constant dense<0.000000e+00> : vector<340x32xf32>
    %38 = tpu.matmul %37, %35, %cst_35 {dimension_numbers = #tpu.dot_dimension_numbers<[1], [0], [0], [1], [0, 0, 1, 1], [], []>} : vector<340x144xf32>, vector<144x32xf32>, vector<340x32xf32> -> vector<340x32xf32>
    %39 = vector.broadcast %36 : vector<1x32xf32> to vector<340x32xf32>
    %40 = arith.addf %38, %39 : vector<340x32xf32>
    %cst_36 = arith.constant 0.000000e+00 : f32
    %41 = vector.broadcast %cst_36 : f32 to vector<340x32xf32>
    %42 = arith.maximumf %40, %41 : vector<340x32xf32>
    %c0_37 = arith.constant 0 : index
    %c0_38 = arith.constant 0 : index
    %43 = vector.load %arg6[%c0_37, %c0_38] : memref<340x32xf32, #tpu.memory_space<vmem>>, vector<340x32xf32>
    tpu.vector_store %arg6[%c0_37, %c0_38], %42 {strides = array<i32>} : memref<340x32xf32, #tpu.memory_space<vmem>>, vector<340x32xf32>,
    %c36 = arith.constant 36 : index
    %c0_39 = arith.constant 0 : index
    %44 = vector.load %arg6[%c36, %c0_39] : memref<340x32xf32, #tpu.memory_space<vmem>>, vector<2x32xf32>
    %c38_40 = arith.constant 38 : index
    %c0_41 = arith.constant 0 : index
    %45 = vector.load %arg6[%c38_40, %c0_41] : memref<340x32xf32, #tpu.memory_space<vmem>>, vector<2x32xf32>
    %46 = arith.maximumf %44, %45 : vector<2x32xf32>
    %c70 = arith.constant 70 : index
    %c0_42 = arith.constant 0 : index
    %47 = vector.load %arg6[%c70, %c0_42] : memref<340x32xf32, #tpu.memory_space<vmem>>, vector<2x32xf32>
    %c72_43 = arith.constant 72 : index
    %c0_44 = arith.constant 0 : index
    %48 = vector.load %arg6[%c72_43, %c0_44] : memref<340x32xf32, #tpu.memory_space<vmem>>, vector<2x32xf32>
    %49 = arith.maximumf %47, %48 : vector<2x32xf32>
    %50 = arith.maximumf %46, %49 : vector<2x32xf32>
    %c0_45 = arith.constant 0 : index
    %c0_46 = arith.constant 0 : index
    %51 = vector.load %arg7[%c0_45, %c0_46] : memref<2x896xf32, #tpu.memory_space<vmem>>, vector<2x32xf32>
    tpu.vector_store %arg7[%c0_45, %c0_46], %50 {strides = array<i32>} : memref<2x896xf32, #tpu.memory_space<vmem>>, vector<2x32xf32>,
    %c40_47 = arith.constant 40 : index
    %c0_48 = arith.constant 0 : index
    %52 = vector.load %arg6[%c40_47, %c0_48] : memref<340x32xf32, #tpu.memory_space<vmem>>, vector<2x32xf32>
    %c42_49 = arith.constant 42 : index
    %c0_50 = arith.constant 0 : index
    %53 = vector.load %arg6[%c42_49, %c0_50] : memref<340x32xf32, #tpu.memory_space<vmem>>, vector<2x32xf32>
    %54 = arith.maximumf %52, %53 : vector<2x32xf32>
    %c74_51 = arith.constant 74 : index
    %c0_52 = arith.constant 0 : index
    %55 = vector.load %arg6[%c74_51, %c0_52] : memref<340x32xf32, #tpu.memory_space<vmem>>, vector<2x32xf32>
    %c76_53 = arith.constant 76 : index
    %c0_54 = arith.constant 0 : index
    %56 = vector.load %arg6[%c76_53, %c0_54] : memref<340x32xf32, #tpu.memory_space<vmem>>, vector<2x32xf32>
    %57 = arith.maximumf %55, %56 : vector<2x32xf32>
    %58 = arith.maximumf %54, %57 : vector<2x32xf32>
    %c0_55 = arith.constant 0 : index
    %c32_56 = arith.constant 32 : index
    %59 = vector.load %arg7[%c0_55, %c32_56] : memref<2x896xf32, #tpu.memory_space<vmem>>, vector<2x32xf32>
    tpu.vector_store %arg7[%c0_55, %c32_56], %58 {strides = array<i32>} : memref<2x896xf32, #tpu.memory_space<vmem>>, vector<2x32xf32>,
    %c44 = arith.constant 44 : index
    %c0_57 = arith.constant 0 : index
    %60 = vector.load %arg6[%c44, %c0_57] : memref<340x32xf32, #tpu.memory_space<vmem>>, vector<2x32xf32>
    %c46 = arith.constant 46 : index
    %c0_58 = arith.constant 0 : index
    %61 = vector.load %arg6[%c46, %c0_58] : memref<340x32xf32, #tpu.memory_space<vmem>>, vector<2x32xf32>
    %62 = arith.maximumf %60, %61 : vector<2x32xf32>
    %c78 = arith.constant 78 : index
    %c0_59 = arith.constant 0 : index
    %63 = vector.load %arg6[%c78, %c0_59] : memref<340x32xf32, #tpu.memory_space<vmem>>, vector<2x32xf32>
    %c80_60 = arith.constant 80 : index
    %c0_61 = arith.constant 0 : index
    %64 = vector.load %arg6[%c80_60, %c0_61] : memref<340x32xf32, #tpu.memory_space<vmem>>, vector<2x32xf32>
    %65 = arith.maximumf %63, %64 : vector<2x32xf32>
    %66 = arith.maximumf %62, %65 : vector<2x32xf32>
    %c0_62 = arith.constant 0 : index
    %c64_63 = arith.constant 64 : index
    %67 = vector.load %arg7[%c0_62, %c64_63] : memref<2x896xf32, #tpu.memory_space<vmem>>, vector<2x32xf32>
    tpu.vector_store %arg7[%c0_62, %c64_63], %66 {strides = array<i32>} : memref<2x896xf32, #tpu.memory_space<vmem>>, vector<2x32xf32>,
    %c48_64 = arith.constant 48 : index
    %c0_65 = arith.constant 0 : index
    %68 = vector.load %arg6[%c48_64, %c0_65] : memref<340x32xf32, #tpu.memory_space<vmem>>, vector<2x32xf32>
    %c50 = arith.constant 50 : index
    %c0_66 = arith.constant 0 : index
    %69 = vector.load %arg6[%c50, %c0_66] : memref<340x32xf32, #tpu.memory_space<vmem>>, vector<2x32xf32>
    %70 = arith.maximumf %68, %69 : vector<2x32xf32>
    %c82 = arith.constant 82 : index
    %c0_67 = arith.constant 0 : index
    %71 = vector.load %arg6[%c82, %c0_67] : memref<340x32xf32, #tpu.memory_space<vmem>>, vector<2x32xf32>
    %c84 = arith.constant 84 : index
    %c0_68 = arith.constant 0 : index
    %72 = vector.load %arg6[%c84, %c0_68] : memref<340x32xf32, #tpu.memory_space<vmem>>, vector<2x32xf32>
    %73 = arith.maximumf %71, %72 : vector<2x32xf32>
    %74 = arith.maximumf %70, %73 : vector<2x32xf32>
    %c0_69 = arith.constant 0 : index
    %c96_70 = arith.constant 96 : index
    %75 = vector.load %arg7[%c0_69, %c96_70] : memref<2x896xf32, #tpu.memory_space<vmem>>, vector<2x32xf32>
    tpu.vector_store %arg7[%c0_69, %c96_70], %74 {strides = array<i32>} : memref<2x896xf32, #tpu.memory_space<vmem>>, vector<2x32xf32>,
    %c52 = arith.constant 52 : index
    %c0_71 = arith.constant 0 : index
    %76 = vector.load %arg6[%c52, %c0_71] : memref<340x32xf32, #tpu.memory_space<vmem>>, vector<2x32xf32>
    %c54 = arith.constant 54 : index
    %c0_72 = arith.constant 0 : index
    %77 = vector.load %arg6[%c54, %c0_72] : memref<340x32xf32, #tpu.memory_space<vmem>>, vector<2x32xf32>
    %78 = arith.maximumf %76, %77 : vector<2x32xf32>
    %c86 = arith.constant 86 : index
    %c0_73 = arith.constant 0 : index
    %79 = vector.load %arg6[%c86, %c0_73] : memref<340x32xf32, #tpu.memory_space<vmem>>, vector<2x32xf32>
    %c88 = arith.constant 88 : index
    %c0_74 = arith.constant 0 : index
    %80 = vector.load %arg6[%c88, %c0_74] : memref<340x32xf32, #tpu.memory_space<vmem>>, vector<2x32xf32>
    %81 = arith.maximumf %79, %80 : vector<2x32xf32>
    %82 = arith.maximumf %78, %81 : vector<2x32xf32>
    %c0_75 = arith.constant 0 : index
    %c128_76 = arith.constant 128 : index
    %83 = vector.load %arg7[%c0_75, %c128_76] : memref<2x896xf32, #tpu.memory_space<vmem>>, vector<2x32xf32>
    tpu.vector_store %arg7[%c0_75, %c128_76], %82 {strides = array<i32>} : memref<2x896xf32, #tpu.memory_space<vmem>>, vector<2x32xf32>,
    %c56 = arith.constant 56 : index
    %c0_77 = arith.constant 0 : index
    %84 = vector.load %arg6[%c56, %c0_77] : memref<340x32xf32, #tpu.memory_space<vmem>>, vector<2x32xf32>
    %c58 = arith.constant 58 : index
    %c0_78 = arith.constant 0 : index
    %85 = vector.load %arg6[%c58, %c0_78] : memref<340x32xf32, #tpu.memory_space<vmem>>, vector<2x32xf32>
    %86 = arith.maximumf %84, %85 : vector<2x32xf32>
    %c90 = arith.constant 90 : index
    %c0_79 = arith.constant 0 : index
    %87 = vector.load %arg6[%c90, %c0_79] : memref<340x32xf32, #tpu.memory_space<vmem>>, vector<2x32xf32>
    %c92 = arith.constant 92 : index
    %c0_80 = arith.constant 0 : index
    %88 = vector.load %arg6[%c92, %c0_80] : memref<340x32xf32, #tpu.memory_space<vmem>>, vector<2x32xf32>
    %89 = arith.maximumf %87, %88 : vector<2x32xf32>
    %90 = arith.maximumf %86, %89 : vector<2x32xf32>
    %c0_81 = arith.constant 0 : index
    %c160 = arith.constant 160 : index
    %91 = vector.load %arg7[%c0_81, %c160] : memref<2x896xf32, #tpu.memory_space<vmem>>, vector<2x32xf32>
    tpu.vector_store %arg7[%c0_81, %c160], %90 {strides = array<i32>} : memref<2x896xf32, #tpu.memory_space<vmem>>, vector<2x32xf32>,
    %c60 = arith.constant 60 : index
    %c0_82 = arith.constant 0 : index
    %92 = vector.load %arg6[%c60, %c0_82] : memref<340x32xf32, #tpu.memory_space<vmem>>, vector<2x32xf32>
    %c62 = arith.constant 62 : index
    %c0_83 = arith.constant 0 : index
    %93 = vector.load %arg6[%c62, %c0_83] : memref<340x32xf32, #tpu.memory_space<vmem>>, vector<2x32xf32>
    %94 = arith.maximumf %92, %93 : vector<2x32xf32>
    %c94 = arith.constant 94 : index
    %c0_84 = arith.constant 0 : index
    %95 = vector.load %arg6[%c94, %c0_84] : memref<340x32xf32, #tpu.memory_space<vmem>>, vector<2x32xf32>
    %c96_85 = arith.constant 96 : index
    %c0_86 = arith.constant 0 : index
    %96 = vector.load %arg6[%c96_85, %c0_86] : memref<340x32xf32, #tpu.memory_space<vmem>>, vector<2x32xf32>
    %97 = arith.maximumf %95, %96 : vector<2x32xf32>
    %98 = arith.maximumf %94, %97 : vector<2x32xf32>
    %c0_87 = arith.constant 0 : index
    %c192 = arith.constant 192 : index
    %99 = vector.load %arg7[%c0_87, %c192] : memref<2x896xf32, #tpu.memory_space<vmem>>, vector<2x32xf32>
    tpu.vector_store %arg7[%c0_87, %c192], %98 {strides = array<i32>} : memref<2x896xf32, #tpu.memory_space<vmem>>, vector<2x32xf32>,
    %c104 = arith.constant 104 : index
    %c0_88 = arith.constant 0 : index
    %100 = vector.load %arg6[%c104, %c0_88] : memref<340x32xf32, #tpu.memory_space<vmem>>, vector<2x32xf32>
    %c106 = arith.constant 106 : index
    %c0_89 = arith.constant 0 : index
    %101 = vector.load %arg6[%c106, %c0_89] : memref<340x32xf32, #tpu.memory_space<vmem>>, vector<2x32xf32>
    %102 = arith.maximumf %100, %101 : vector<2x32xf32>
    %c138 = arith.constant 138 : index
    %c0_90 = arith.constant 0 : index
    %103 = vector.load %arg6[%c138, %c0_90] : memref<340x32xf32, #tpu.memory_space<vmem>>, vector<2x32xf32>
    %c140 = arith.constant 140 : index
    %c0_91 = arith.constant 0 : index
    %104 = vector.load %arg6[%c140, %c0_91] : memref<340x32xf32, #tpu.memory_space<vmem>>, vector<2x32xf32>
    %105 = arith.maximumf %103, %104 : vector<2x32xf32>
    %106 = arith.maximumf %102, %105 : vector<2x32xf32>
    %c0_92 = arith.constant 0 : index
    %c224 = arith.constant 224 : index
    %107 = vector.load %arg7[%c0_92, %c224] : memref<2x896xf32, #tpu.memory_space<vmem>>, vector<2x32xf32>
    tpu.vector_store %arg7[%c0_92, %c224], %106 {strides = array<i32>} : memref<2x896xf32, #tpu.memory_space<vmem>>, vector<2x32xf32>,
    %c108 = arith.constant 108 : index
    %c0_93 = arith.constant 0 : index
    %108 = vector.load %arg6[%c108, %c0_93] : memref<340x32xf32, #tpu.memory_space<vmem>>, vector<2x32xf32>
    %c110 = arith.constant 110 : index
    %c0_94 = arith.constant 0 : index
    %109 = vector.load %arg6[%c110, %c0_94] : memref<340x32xf32, #tpu.memory_space<vmem>>, vector<2x32xf32>
    %110 = arith.maximumf %108, %109 : vector<2x32xf32>
    %c142 = arith.constant 142 : index
    %c0_95 = arith.constant 0 : index
    %111 = vector.load %arg6[%c142, %c0_95] : memref<340x32xf32, #tpu.memory_space<vmem>>, vector<2x32xf32>
    %c144 = arith.constant 144 : index
    %c0_96 = arith.constant 0 : index
    %112 = vector.load %arg6[%c144, %c0_96] : memref<340x32xf32, #tpu.memory_space<vmem>>, vector<2x32xf32>
    %113 = arith.maximumf %111, %112 : vector<2x32xf32>
    %114 = arith.maximumf %110, %113 : vector<2x32xf32>
    %c0_97 = arith.constant 0 : index
    %c256 = arith.constant 256 : index
    %115 = vector.load %arg7[%c0_97, %c256] : memref<2x896xf32, #tpu.memory_space<vmem>>, vector<2x32xf32>
    tpu.vector_store %arg7[%c0_97, %c256], %114 {strides = array<i32>} : memref<2x896xf32, #tpu.memory_space<vmem>>, vector<2x32xf32>,
    %c112_98 = arith.constant 112 : index
    %c0_99 = arith.constant 0 : index
    %116 = vector.load %arg6[%c112_98, %c0_99] : memref<340x32xf32, #tpu.memory_space<vmem>>, vector<2x32xf32>
    %c114 = arith.constant 114 : index
    %c0_100 = arith.constant 0 : index
    %117 = vector.load %arg6[%c114, %c0_100] : memref<340x32xf32, #tpu.memory_space<vmem>>, vector<2x32xf32>
    %118 = arith.maximumf %116, %117 : vector<2x32xf32>
    %c146 = arith.constant 146 : index
    %c0_101 = arith.constant 0 : index
    %119 = vector.load %arg6[%c146, %c0_101] : memref<340x32xf32, #tpu.memory_space<vmem>>, vector<2x32xf32>
    %c148 = arith.constant 148 : index
    %c0_102 = arith.constant 0 : index
    %120 = vector.load %arg6[%c148, %c0_102] : memref<340x32xf32, #tpu.memory_space<vmem>>, vector<2x32xf32>
    %121 = arith.maximumf %119, %120 : vector<2x32xf32>
    %122 = arith.maximumf %118, %121 : vector<2x32xf32>
    %c0_103 = arith.constant 0 : index
    %c288 = arith.constant 288 : index
    %123 = vector.load %arg7[%c0_103, %c288] : memref<2x896xf32, #tpu.memory_space<vmem>>, vector<2x32xf32>
    tpu.vector_store %arg7[%c0_103, %c288], %122 {strides = array<i32>} : memref<2x896xf32, #tpu.memory_space<vmem>>, vector<2x32xf32>,
    %c116 = arith.constant 116 : index
    %c0_104 = arith.constant 0 : index
    %124 = vector.load %arg6[%c116, %c0_104] : memref<340x32xf32, #tpu.memory_space<vmem>>, vector<2x32xf32>
    %c118 = arith.constant 118 : index
    %c0_105 = arith.constant 0 : index
    %125 = vector.load %arg6[%c118, %c0_105] : memref<340x32xf32, #tpu.memory_space<vmem>>, vector<2x32xf32>
    %126 = arith.maximumf %124, %125 : vector<2x32xf32>
    %c150 = arith.constant 150 : index
    %c0_106 = arith.constant 0 : index
    %127 = vector.load %arg6[%c150, %c0_106] : memref<340x32xf32, #tpu.memory_space<vmem>>, vector<2x32xf32>
    %c152 = arith.constant 152 : index
    %c0_107 = arith.constant 0 : index
    %128 = vector.load %arg6[%c152, %c0_107] : memref<340x32xf32, #tpu.memory_space<vmem>>, vector<2x32xf32>
    %129 = arith.maximumf %127, %128 : vector<2x32xf32>
    %130 = arith.maximumf %126, %129 : vector<2x32xf32>
    %c0_108 = arith.constant 0 : index
    %c320 = arith.constant 320 : index
    %131 = vector.load %arg7[%c0_108, %c320] : memref<2x896xf32, #tpu.memory_space<vmem>>, vector<2x32xf32>
    tpu.vector_store %arg7[%c0_108, %c320], %130 {strides = array<i32>} : memref<2x896xf32, #tpu.memory_space<vmem>>, vector<2x32xf32>,
    %c120 = arith.constant 120 : index
    %c0_109 = arith.constant 0 : index
    %132 = vector.load %arg6[%c120, %c0_109] : memref<340x32xf32, #tpu.memory_space<vmem>>, vector<2x32xf32>
    %c122 = arith.constant 122 : index
    %c0_110 = arith.constant 0 : index
    %133 = vector.load %arg6[%c122, %c0_110] : memref<340x32xf32, #tpu.memory_space<vmem>>, vector<2x32xf32>
    %134 = arith.maximumf %132, %133 : vector<2x32xf32>
    %c154 = arith.constant 154 : index
    %c0_111 = arith.constant 0 : index
    %135 = vector.load %arg6[%c154, %c0_111] : memref<340x32xf32, #tpu.memory_space<vmem>>, vector<2x32xf32>
    %c156 = arith.constant 156 : index
    %c0_112 = arith.constant 0 : index
    %136 = vector.load %arg6[%c156, %c0_112] : memref<340x32xf32, #tpu.memory_space<vmem>>, vector<2x32xf32>
    %137 = arith.maximumf %135, %136 : vector<2x32xf32>
    %138 = arith.maximumf %134, %137 : vector<2x32xf32>
    %c0_113 = arith.constant 0 : index
    %c352 = arith.constant 352 : index
    %139 = vector.load %arg7[%c0_113, %c352] : memref<2x896xf32, #tpu.memory_space<vmem>>, vector<2x32xf32>
    tpu.vector_store %arg7[%c0_113, %c352], %138 {strides = array<i32>} : memref<2x896xf32, #tpu.memory_space<vmem>>, vector<2x32xf32>,
    %c124 = arith.constant 124 : index
    %c0_114 = arith.constant 0 : index
    %140 = vector.load %arg6[%c124, %c0_114] : memref<340x32xf32, #tpu.memory_space<vmem>>, vector<2x32xf32>
    %c126 = arith.constant 126 : index
    %c0_115 = arith.constant 0 : index
    %141 = vector.load %arg6[%c126, %c0_115] : memref<340x32xf32, #tpu.memory_space<vmem>>, vector<2x32xf32>
    %142 = arith.maximumf %140, %141 : vector<2x32xf32>
    %c158 = arith.constant 158 : index
    %c0_116 = arith.constant 0 : index
    %143 = vector.load %arg6[%c158, %c0_116] : memref<340x32xf32, #tpu.memory_space<vmem>>, vector<2x32xf32>
    %c160_117 = arith.constant 160 : index
    %c0_118 = arith.constant 0 : index
    %144 = vector.load %arg6[%c160_117, %c0_118] : memref<340x32xf32, #tpu.memory_space<vmem>>, vector<2x32xf32>
    %145 = arith.maximumf %143, %144 : vector<2x32xf32>
    %146 = arith.maximumf %142, %145 : vector<2x32xf32>
    %c0_119 = arith.constant 0 : index
    %c384 = arith.constant 384 : index
    %147 = vector.load %arg7[%c0_119, %c384] : memref<2x896xf32, #tpu.memory_space<vmem>>, vector<2x32xf32>
    tpu.vector_store %arg7[%c0_119, %c384], %146 {strides = array<i32>} : memref<2x896xf32, #tpu.memory_space<vmem>>, vector<2x32xf32>,
    %c128_120 = arith.constant 128 : index
    %c0_121 = arith.constant 0 : index
    %148 = vector.load %arg6[%c128_120, %c0_121] : memref<340x32xf32, #tpu.memory_space<vmem>>, vector<2x32xf32>
    %c130 = arith.constant 130 : index
    %c0_122 = arith.constant 0 : index
    %149 = vector.load %arg6[%c130, %c0_122] : memref<340x32xf32, #tpu.memory_space<vmem>>, vector<2x32xf32>
    %150 = arith.maximumf %148, %149 : vector<2x32xf32>
    %c162 = arith.constant 162 : index
    %c0_123 = arith.constant 0 : index
    %151 = vector.load %arg6[%c162, %c0_123] : memref<340x32xf32, #tpu.memory_space<vmem>>, vector<2x32xf32>
    %c164 = arith.constant 164 : index
    %c0_124 = arith.constant 0 : index
    %152 = vector.load %arg6[%c164, %c0_124] : memref<340x32xf32, #tpu.memory_space<vmem>>, vector<2x32xf32>
    %153 = arith.maximumf %151, %152 : vector<2x32xf32>
    %154 = arith.maximumf %150, %153 : vector<2x32xf32>
    %c0_125 = arith.constant 0 : index
    %c416 = arith.constant 416 : index
    %155 = vector.load %arg7[%c0_125, %c416] : memref<2x896xf32, #tpu.memory_space<vmem>>, vector<2x32xf32>
    tpu.vector_store %arg7[%c0_125, %c416], %154 {strides = array<i32>} : memref<2x896xf32, #tpu.memory_space<vmem>>, vector<2x32xf32>,
    %c172 = arith.constant 172 : index
    %c0_126 = arith.constant 0 : index
    %156 = vector.load %arg6[%c172, %c0_126] : memref<340x32xf32, #tpu.memory_space<vmem>>, vector<2x32xf32>
    %c174 = arith.constant 174 : index
    %c0_127 = arith.constant 0 : index
    %157 = vector.load %arg6[%c174, %c0_127] : memref<340x32xf32, #tpu.memory_space<vmem>>, vector<2x32xf32>
    %158 = arith.maximumf %156, %157 : vector<2x32xf32>
    %c206 = arith.constant 206 : index
    %c0_128 = arith.constant 0 : index
    %159 = vector.load %arg6[%c206, %c0_128] : memref<340x32xf32, #tpu.memory_space<vmem>>, vector<2x32xf32>
    %c208 = arith.constant 208 : index
    %c0_129 = arith.constant 0 : index
    %160 = vector.load %arg6[%c208, %c0_129] : memref<340x32xf32, #tpu.memory_space<vmem>>, vector<2x32xf32>
    %161 = arith.maximumf %159, %160 : vector<2x32xf32>
    %162 = arith.maximumf %158, %161 : vector<2x32xf32>
    %c0_130 = arith.constant 0 : index
    %c448 = arith.constant 448 : index
    %163 = vector.load %arg7[%c0_130, %c448] : memref<2x896xf32, #tpu.memory_space<vmem>>, vector<2x32xf32>
    tpu.vector_store %arg7[%c0_130, %c448], %162 {strides = array<i32>} : memref<2x896xf32, #tpu.memory_space<vmem>>, vector<2x32xf32>,
    %c176 = arith.constant 176 : index
    %c0_131 = arith.constant 0 : index
    %164 = vector.load %arg6[%c176, %c0_131] : memref<340x32xf32, #tpu.memory_space<vmem>>, vector<2x32xf32>
    %c178 = arith.constant 178 : index
    %c0_132 = arith.constant 0 : index
    %165 = vector.load %arg6[%c178, %c0_132] : memref<340x32xf32, #tpu.memory_space<vmem>>, vector<2x32xf32>
    %166 = arith.maximumf %164, %165 : vector<2x32xf32>
    %c210 = arith.constant 210 : index
    %c0_133 = arith.constant 0 : index
    %167 = vector.load %arg6[%c210, %c0_133] : memref<340x32xf32, #tpu.memory_space<vmem>>, vector<2x32xf32>
    %c212 = arith.constant 212 : index
    %c0_134 = arith.constant 0 : index
    %168 = vector.load %arg6[%c212, %c0_134] : memref<340x32xf32, #tpu.memory_space<vmem>>, vector<2x32xf32>
    %169 = arith.maximumf %167, %168 : vector<2x32xf32>
    %170 = arith.maximumf %166, %169 : vector<2x32xf32>
    %c0_135 = arith.constant 0 : index
    %c480 = arith.constant 480 : index
    %171 = vector.load %arg7[%c0_135, %c480] : memref<2x896xf32, #tpu.memory_space<vmem>>, vector<2x32xf32>
    tpu.vector_store %arg7[%c0_135, %c480], %170 {strides = array<i32>} : memref<2x896xf32, #tpu.memory_space<vmem>>, vector<2x32xf32>,
    %c180 = arith.constant 180 : index
    %c0_136 = arith.constant 0 : index
    %172 = vector.load %arg6[%c180, %c0_136] : memref<340x32xf32, #tpu.memory_space<vmem>>, vector<2x32xf32>
    %c182 = arith.constant 182 : index
    %c0_137 = arith.constant 0 : index
    %173 = vector.load %arg6[%c182, %c0_137] : memref<340x32xf32, #tpu.memory_space<vmem>>, vector<2x32xf32>
    %174 = arith.maximumf %172, %173 : vector<2x32xf32>
    %c214 = arith.constant 214 : index
    %c0_138 = arith.constant 0 : index
    %175 = vector.load %arg6[%c214, %c0_138] : memref<340x32xf32, #tpu.memory_space<vmem>>, vector<2x32xf32>
    %c216 = arith.constant 216 : index
    %c0_139 = arith.constant 0 : index
    %176 = vector.load %arg6[%c216, %c0_139] : memref<340x32xf32, #tpu.memory_space<vmem>>, vector<2x32xf32>
    %177 = arith.maximumf %175, %176 : vector<2x32xf32>
    %178 = arith.maximumf %174, %177 : vector<2x32xf32>
    %c0_140 = arith.constant 0 : index
    %c512 = arith.constant 512 : index
    %179 = vector.load %arg7[%c0_140, %c512] : memref<2x896xf32, #tpu.memory_space<vmem>>, vector<2x32xf32>
    tpu.vector_store %arg7[%c0_140, %c512], %178 {strides = array<i32>} : memref<2x896xf32, #tpu.memory_space<vmem>>, vector<2x32xf32>,
    %c184_141 = arith.constant 184 : index
    %c0_142 = arith.constant 0 : index
    %180 = vector.load %arg6[%c184_141, %c0_142] : memref<340x32xf32, #tpu.memory_space<vmem>>, vector<2x32xf32>
    %c186 = arith.constant 186 : index
    %c0_143 = arith.constant 0 : index
    %181 = vector.load %arg6[%c186, %c0_143] : memref<340x32xf32, #tpu.memory_space<vmem>>, vector<2x32xf32>
    %182 = arith.maximumf %180, %181 : vector<2x32xf32>
    %c218 = arith.constant 218 : index
    %c0_144 = arith.constant 0 : index
    %183 = vector.load %arg6[%c218, %c0_144] : memref<340x32xf32, #tpu.memory_space<vmem>>, vector<2x32xf32>
    %c220 = arith.constant 220 : index
    %c0_145 = arith.constant 0 : index
    %184 = vector.load %arg6[%c220, %c0_145] : memref<340x32xf32, #tpu.memory_space<vmem>>, vector<2x32xf32>
    %185 = arith.maximumf %183, %184 : vector<2x32xf32>
    %186 = arith.maximumf %182, %185 : vector<2x32xf32>
    %c0_146 = arith.constant 0 : index
    %c544 = arith.constant 544 : index
    %187 = vector.load %arg7[%c0_146, %c544] : memref<2x896xf32, #tpu.memory_space<vmem>>, vector<2x32xf32>
    tpu.vector_store %arg7[%c0_146, %c544], %186 {strides = array<i32>} : memref<2x896xf32, #tpu.memory_space<vmem>>, vector<2x32xf32>,
    %c188 = arith.constant 188 : index
    %c0_147 = arith.constant 0 : index
    %188 = vector.load %arg6[%c188, %c0_147] : memref<340x32xf32, #tpu.memory_space<vmem>>, vector<2x32xf32>
    %c190 = arith.constant 190 : index
    %c0_148 = arith.constant 0 : index
    %189 = vector.load %arg6[%c190, %c0_148] : memref<340x32xf32, #tpu.memory_space<vmem>>, vector<2x32xf32>
    %190 = arith.maximumf %188, %189 : vector<2x32xf32>
    %c222 = arith.constant 222 : index
    %c0_149 = arith.constant 0 : index
    %191 = vector.load %arg6[%c222, %c0_149] : memref<340x32xf32, #tpu.memory_space<vmem>>, vector<2x32xf32>
    %c224_150 = arith.constant 224 : index
    %c0_151 = arith.constant 0 : index
    %192 = vector.load %arg6[%c224_150, %c0_151] : memref<340x32xf32, #tpu.memory_space<vmem>>, vector<2x32xf32>
    %193 = arith.maximumf %191, %192 : vector<2x32xf32>
    %194 = arith.maximumf %190, %193 : vector<2x32xf32>
    %c0_152 = arith.constant 0 : index
    %c576 = arith.constant 576 : index
    %195 = vector.load %arg7[%c0_152, %c576] : memref<2x896xf32, #tpu.memory_space<vmem>>, vector<2x32xf32>
    tpu.vector_store %arg7[%c0_152, %c576], %194 {strides = array<i32>} : memref<2x896xf32, #tpu.memory_space<vmem>>, vector<2x32xf32>,
    %c192_153 = arith.constant 192 : index
    %c0_154 = arith.constant 0 : index
    %196 = vector.load %arg6[%c192_153, %c0_154] : memref<340x32xf32, #tpu.memory_space<vmem>>, vector<2x32xf32>
    %c194 = arith.constant 194 : index
    %c0_155 = arith.constant 0 : index
    %197 = vector.load %arg6[%c194, %c0_155] : memref<340x32xf32, #tpu.memory_space<vmem>>, vector<2x32xf32>
    %198 = arith.maximumf %196, %197 : vector<2x32xf32>
    %c226 = arith.constant 226 : index
    %c0_156 = arith.constant 0 : index
    %199 = vector.load %arg6[%c226, %c0_156] : memref<340x32xf32, #tpu.memory_space<vmem>>, vector<2x32xf32>
    %c228 = arith.constant 228 : index
    %c0_157 = arith.constant 0 : index
    %200 = vector.load %arg6[%c228, %c0_157] : memref<340x32xf32, #tpu.memory_space<vmem>>, vector<2x32xf32>
    %201 = arith.maximumf %199, %200 : vector<2x32xf32>
    %202 = arith.maximumf %198, %201 : vector<2x32xf32>
    %c0_158 = arith.constant 0 : index
    %c608 = arith.constant 608 : index
    %203 = vector.load %arg7[%c0_158, %c608] : memref<2x896xf32, #tpu.memory_space<vmem>>, vector<2x32xf32>
    tpu.vector_store %arg7[%c0_158, %c608], %202 {strides = array<i32>} : memref<2x896xf32, #tpu.memory_space<vmem>>, vector<2x32xf32>,
    %c196 = arith.constant 196 : index
    %c0_159 = arith.constant 0 : index
    %204 = vector.load %arg6[%c196, %c0_159] : memref<340x32xf32, #tpu.memory_space<vmem>>, vector<2x32xf32>
    %c198 = arith.constant 198 : index
    %c0_160 = arith.constant 0 : index
    %205 = vector.load %arg6[%c198, %c0_160] : memref<340x32xf32, #tpu.memory_space<vmem>>, vector<2x32xf32>
    %206 = arith.maximumf %204, %205 : vector<2x32xf32>
    %c230 = arith.constant 230 : index
    %c0_161 = arith.constant 0 : index
    %207 = vector.load %arg6[%c230, %c0_161] : memref<340x32xf32, #tpu.memory_space<vmem>>, vector<2x32xf32>
    %c232 = arith.constant 232 : index
    %c0_162 = arith.constant 0 : index
    %208 = vector.load %arg6[%c232, %c0_162] : memref<340x32xf32, #tpu.memory_space<vmem>>, vector<2x32xf32>
    %209 = arith.maximumf %207, %208 : vector<2x32xf32>
    %210 = arith.maximumf %206, %209 : vector<2x32xf32>
    %c0_163 = arith.constant 0 : index
    %c640 = arith.constant 640 : index
    %211 = vector.load %arg7[%c0_163, %c640] : memref<2x896xf32, #tpu.memory_space<vmem>>, vector<2x32xf32>
    tpu.vector_store %arg7[%c0_163, %c640], %210 {strides = array<i32>} : memref<2x896xf32, #tpu.memory_space<vmem>>, vector<2x32xf32>,
    %c240 = arith.constant 240 : index
    %c0_164 = arith.constant 0 : index
    %212 = vector.load %arg6[%c240, %c0_164] : memref<340x32xf32, #tpu.memory_space<vmem>>, vector<2x32xf32>
    %c242 = arith.constant 242 : index
    %c0_165 = arith.constant 0 : index
    %213 = vector.load %arg6[%c242, %c0_165] : memref<340x32xf32, #tpu.memory_space<vmem>>, vector<2x32xf32>
    %214 = arith.maximumf %212, %213 : vector<2x32xf32>
    %c274 = arith.constant 274 : index
    %c0_166 = arith.constant 0 : index
    %215 = vector.load %arg6[%c274, %c0_166] : memref<340x32xf32, #tpu.memory_space<vmem>>, vector<2x32xf32>
    %c276 = arith.constant 276 : index
    %c0_167 = arith.constant 0 : index
    %216 = vector.load %arg6[%c276, %c0_167] : memref<340x32xf32, #tpu.memory_space<vmem>>, vector<2x32xf32>
    %217 = arith.maximumf %215, %216 : vector<2x32xf32>
    %218 = arith.maximumf %214, %217 : vector<2x32xf32>
    %c0_168 = arith.constant 0 : index
    %c672 = arith.constant 672 : index
    %219 = vector.load %arg7[%c0_168, %c672] : memref<2x896xf32, #tpu.memory_space<vmem>>, vector<2x32xf32>
    tpu.vector_store %arg7[%c0_168, %c672], %218 {strides = array<i32>} : memref<2x896xf32, #tpu.memory_space<vmem>>, vector<2x32xf32>,
    %c244 = arith.constant 244 : index
    %c0_169 = arith.constant 0 : index
    %220 = vector.load %arg6[%c244, %c0_169] : memref<340x32xf32, #tpu.memory_space<vmem>>, vector<2x32xf32>
    %c246 = arith.constant 246 : index
    %c0_170 = arith.constant 0 : index
    %221 = vector.load %arg6[%c246, %c0_170] : memref<340x32xf32, #tpu.memory_space<vmem>>, vector<2x32xf32>
    %222 = arith.maximumf %220, %221 : vector<2x32xf32>
    %c278 = arith.constant 278 : index
    %c0_171 = arith.constant 0 : index
    %223 = vector.load %arg6[%c278, %c0_171] : memref<340x32xf32, #tpu.memory_space<vmem>>, vector<2x32xf32>
    %c280 = arith.constant 280 : index
    %c0_172 = arith.constant 0 : index
    %224 = vector.load %arg6[%c280, %c0_172] : memref<340x32xf32, #tpu.memory_space<vmem>>, vector<2x32xf32>
    %225 = arith.maximumf %223, %224 : vector<2x32xf32>
    %226 = arith.maximumf %222, %225 : vector<2x32xf32>
    %c0_173 = arith.constant 0 : index
    %c704 = arith.constant 704 : index
    %227 = vector.load %arg7[%c0_173, %c704] : memref<2x896xf32, #tpu.memory_space<vmem>>, vector<2x32xf32>
    tpu.vector_store %arg7[%c0_173, %c704], %226 {strides = array<i32>} : memref<2x896xf32, #tpu.memory_space<vmem>>, vector<2x32xf32>,
    %c248 = arith.constant 248 : index
    %c0_174 = arith.constant 0 : index
    %228 = vector.load %arg6[%c248, %c0_174] : memref<340x32xf32, #tpu.memory_space<vmem>>, vector<2x32xf32>
    %c250 = arith.constant 250 : index
    %c0_175 = arith.constant 0 : index
    %229 = vector.load %arg6[%c250, %c0_175] : memref<340x32xf32, #tpu.memory_space<vmem>>, vector<2x32xf32>
    %230 = arith.maximumf %228, %229 : vector<2x32xf32>
    %c282 = arith.constant 282 : index
    %c0_176 = arith.constant 0 : index
    %231 = vector.load %arg6[%c282, %c0_176] : memref<340x32xf32, #tpu.memory_space<vmem>>, vector<2x32xf32>
    %c284 = arith.constant 284 : index
    %c0_177 = arith.constant 0 : index
    %232 = vector.load %arg6[%c284, %c0_177] : memref<340x32xf32, #tpu.memory_space<vmem>>, vector<2x32xf32>
    %233 = arith.maximumf %231, %232 : vector<2x32xf32>
    %234 = arith.maximumf %230, %233 : vector<2x32xf32>
    %c0_178 = arith.constant 0 : index
    %c736 = arith.constant 736 : index
    %235 = vector.load %arg7[%c0_178, %c736] : memref<2x896xf32, #tpu.memory_space<vmem>>, vector<2x32xf32>
    tpu.vector_store %arg7[%c0_178, %c736], %234 {strides = array<i32>} : memref<2x896xf32, #tpu.memory_space<vmem>>, vector<2x32xf32>,
    %c252 = arith.constant 252 : index
    %c0_179 = arith.constant 0 : index
    %236 = vector.load %arg6[%c252, %c0_179] : memref<340x32xf32, #tpu.memory_space<vmem>>, vector<2x32xf32>
    %c254 = arith.constant 254 : index
    %c0_180 = arith.constant 0 : index
    %237 = vector.load %arg6[%c254, %c0_180] : memref<340x32xf32, #tpu.memory_space<vmem>>, vector<2x32xf32>
    %238 = arith.maximumf %236, %237 : vector<2x32xf32>
    %c286 = arith.constant 286 : index
    %c0_181 = arith.constant 0 : index
    %239 = vector.load %arg6[%c286, %c0_181] : memref<340x32xf32, #tpu.memory_space<vmem>>, vector<2x32xf32>
    %c288_182 = arith.constant 288 : index
    %c0_183 = arith.constant 0 : index
    %240 = vector.load %arg6[%c288_182, %c0_183] : memref<340x32xf32, #tpu.memory_space<vmem>>, vector<2x32xf32>
    %241 = arith.maximumf %239, %240 : vector<2x32xf32>
    %242 = arith.maximumf %238, %241 : vector<2x32xf32>
    %c0_184 = arith.constant 0 : index
    %c768 = arith.constant 768 : index
    %243 = vector.load %arg7[%c0_184, %c768] : memref<2x896xf32, #tpu.memory_space<vmem>>, vector<2x32xf32>
    tpu.vector_store %arg7[%c0_184, %c768], %242 {strides = array<i32>} : memref<2x896xf32, #tpu.memory_space<vmem>>, vector<2x32xf32>,
    %c256_185 = arith.constant 256 : index
    %c0_186 = arith.constant 0 : index
    %244 = vector.load %arg6[%c256_185, %c0_186] : memref<340x32xf32, #tpu.memory_space<vmem>>, vector<2x32xf32>
    %c258 = arith.constant 258 : index
    %c0_187 = arith.constant 0 : index
    %245 = vector.load %arg6[%c258, %c0_187] : memref<340x32xf32, #tpu.memory_space<vmem>>, vector<2x32xf32>
    %246 = arith.maximumf %244, %245 : vector<2x32xf32>
    %c290 = arith.constant 290 : index
    %c0_188 = arith.constant 0 : index
    %247 = vector.load %arg6[%c290, %c0_188] : memref<340x32xf32, #tpu.memory_space<vmem>>, vector<2x32xf32>
    %c292 = arith.constant 292 : index
    %c0_189 = arith.constant 0 : index
    %248 = vector.load %arg6[%c292, %c0_189] : memref<340x32xf32, #tpu.memory_space<vmem>>, vector<2x32xf32>
    %249 = arith.maximumf %247, %248 : vector<2x32xf32>
    %250 = arith.maximumf %246, %249 : vector<2x32xf32>
    %c0_190 = arith.constant 0 : index
    %c800 = arith.constant 800 : index
    %251 = vector.load %arg7[%c0_190, %c800] : memref<2x896xf32, #tpu.memory_space<vmem>>, vector<2x32xf32>
    tpu.vector_store %arg7[%c0_190, %c800], %250 {strides = array<i32>} : memref<2x896xf32, #tpu.memory_space<vmem>>, vector<2x32xf32>,
    %c260 = arith.constant 260 : index
    %c0_191 = arith.constant 0 : index
    %252 = vector.load %arg6[%c260, %c0_191] : memref<340x32xf32, #tpu.memory_space<vmem>>, vector<2x32xf32>
    %c262 = arith.constant 262 : index
    %c0_192 = arith.constant 0 : index
    %253 = vector.load %arg6[%c262, %c0_192] : memref<340x32xf32, #tpu.memory_space<vmem>>, vector<2x32xf32>
    %254 = arith.maximumf %252, %253 : vector<2x32xf32>
    %c294 = arith.constant 294 : index
    %c0_193 = arith.constant 0 : index
    %255 = vector.load %arg6[%c294, %c0_193] : memref<340x32xf32, #tpu.memory_space<vmem>>, vector<2x32xf32>
    %c296 = arith.constant 296 : index
    %c0_194 = arith.constant 0 : index
    %256 = vector.load %arg6[%c296, %c0_194] : memref<340x32xf32, #tpu.memory_space<vmem>>, vector<2x32xf32>
    %257 = arith.maximumf %255, %256 : vector<2x32xf32>
    %258 = arith.maximumf %254, %257 : vector<2x32xf32>
    %c0_195 = arith.constant 0 : index
    %c832 = arith.constant 832 : index
    %259 = vector.load %arg7[%c0_195, %c832] : memref<2x896xf32, #tpu.memory_space<vmem>>, vector<2x32xf32>
    tpu.vector_store %arg7[%c0_195, %c832], %258 {strides = array<i32>} : memref<2x896xf32, #tpu.memory_space<vmem>>, vector<2x32xf32>,
    %c264 = arith.constant 264 : index
    %c0_196 = arith.constant 0 : index
    %260 = vector.load %arg6[%c264, %c0_196] : memref<340x32xf32, #tpu.memory_space<vmem>>, vector<2x32xf32>
    %c266 = arith.constant 266 : index
    %c0_197 = arith.constant 0 : index
    %261 = vector.load %arg6[%c266, %c0_197] : memref<340x32xf32, #tpu.memory_space<vmem>>, vector<2x32xf32>
    %262 = arith.maximumf %260, %261 : vector<2x32xf32>
    %c298 = arith.constant 298 : index
    %c0_198 = arith.constant 0 : index
    %263 = vector.load %arg6[%c298, %c0_198] : memref<340x32xf32, #tpu.memory_space<vmem>>, vector<2x32xf32>
    %c300 = arith.constant 300 : index
    %c0_199 = arith.constant 0 : index
    %264 = vector.load %arg6[%c300, %c0_199] : memref<340x32xf32, #tpu.memory_space<vmem>>, vector<2x32xf32>
    %265 = arith.maximumf %263, %264 : vector<2x32xf32>
    %266 = arith.maximumf %262, %265 : vector<2x32xf32>
    %c0_200 = arith.constant 0 : index
    %c864 = arith.constant 864 : index
    %267 = vector.load %arg7[%c0_200, %c864] : memref<2x896xf32, #tpu.memory_space<vmem>>, vector<2x32xf32>
    tpu.vector_store %arg7[%c0_200, %c864], %266 {strides = array<i32>} : memref<2x896xf32, #tpu.memory_space<vmem>>, vector<2x32xf32>,
    %c320_201 = arith.constant 320 : index
    %c0_202 = arith.constant 0 : index
    %268 = vector.load %arg2[%c320_201, %c0_202] : memref<1216x128xf32, #tpu.memory_space<vmem>>, vector<896x128xf32>
    %c185 = arith.constant 185 : index
    %c0_203 = arith.constant 0 : index
    %269 = vector.load %arg2[%c185, %c0_203] : memref<1216x128xf32, #tpu.memory_space<vmem>>, vector<1x128xf32>
    %c0_204 = arith.constant 0 : index
    %c0_205 = arith.constant 0 : index
    %270 = vector.load %arg7[%c0_204, %c0_205] : memref<2x896xf32, #tpu.memory_space<vmem>>, vector<2x896xf32>
    %cst_206 = arith.constant dense<0.000000e+00> : vector<2x128xf32>
    %271 = tpu.matmul %270, %268, %cst_206 {dimension_numbers = #tpu.dot_dimension_numbers<[1], [0], [0], [1], [0, 0, 1, 1], [], []>} : vector<2x896xf32>, vector<896x128xf32>, vector<2x128xf32> -> vector<2x128xf32>
    %272 = vector.broadcast %269 : vector<1x128xf32> to vector<2x128xf32>
    %273 = arith.addf %271, %272 : vector<2x128xf32>
    %cst_207 = arith.constant 0.000000e+00 : f32
    %274 = vector.broadcast %cst_207 : f32 to vector<2x128xf32>
    %275 = arith.maximumf %273, %274 : vector<2x128xf32>
    %c192_208 = arith.constant 192 : index
    %c0_209 = arith.constant 0 : index
    %276 = vector.load %arg2[%c192_208, %c0_209] : memref<1216x128xf32, #tpu.memory_space<vmem>>, vector<128x128xf32>
    %c186_210 = arith.constant 186 : index
    %c0_211 = arith.constant 0 : index
    %277 = vector.load %arg2[%c186_210, %c0_211] : memref<1216x128xf32, #tpu.memory_space<vmem>>, vector<1x128xf32>
    %cst_212 = arith.constant dense<0.000000e+00> : vector<2x128xf32>
    %278 = tpu.matmul %275, %276, %cst_212 {dimension_numbers = #tpu.dot_dimension_numbers<[1], [0], [0], [1], [0, 0, 1, 1], [], []>} : vector<2x128xf32>, vector<128x128xf32>, vector<2x128xf32> -> vector<2x128xf32>
    %279 = vector.broadcast %277 : vector<1x128xf32> to vector<2x128xf32>
    %280 = arith.addf %278, %279 : vector<2x128xf32>
    %c0_213 = arith.constant 0 : index
    %c0_214 = arith.constant 0 : index
    %281 = vector.load %arg3[%c0_213, %c0_214] : memref<2x128xf32, #tpu.memory_space<vmem>>, vector<2x128xf32>
    tpu.vector_store %arg3[%c0_213, %c0_214], %280 {strides = array<i32>} : memref<2x128xf32, #tpu.memory_space<vmem>>, vector<2x128xf32>,
    return
  }
  func.func @transform_0(%arg0: i32) -> (i32, i32) {
    %c0_i32 = arith.constant 0 : i32
    %c0_i32_0 = arith.constant 0 : i32
    %c0_i32_1 = arith.constant 0 : i32
    return %c0_i32, %c0_i32_0 : i32, i32
  }
  func.func @transform_1(%arg0: i32) -> (i32, i32) {
    %c0_i32 = arith.constant 0 : i32
    %c0_i32_0 = arith.constant 0 : i32
    %c0_i32_1 = arith.constant 0 : i32
    return %c0_i32, %c0_i32_0 : i32, i32
  }
  func.func @transform_2(%arg0: i32) -> (i32, i32) {
    %c0_i32 = arith.constant 0 : i32
    %c0_i32_0 = arith.constant 0 : i32
    %c0_i32_1 = arith.constant 0 : i32
    return %c0_i32, %c0_i32_0 : i32, i32
  }
}

</mosaic_0001>

<bundles_post_ra>
// kernel: mul.4
= control target key start
LH: loop header
LB: loop body
LE: loop exit
PB: predicated region body
PF: predicated region fallthrough
CT: control target
= control target key end

     0   :  { %vm16_vm0 = vcmask 130048   ;;  %s61_s0 = inlined_call_operand.vmem [shape: f32[3,3,16], index: 0, kind: input, shape index: {}]   ;;  %s62_s1 = inlined_call_operand.vmem [shape: f32[9,16], index: 1, kind: output, shape index: {}]  }
   0x1   :  { %v29_v0 = vld [vmem:[%s61_s0 + $0x8] sm:$0xf]  ;;  %v30_v1 = vld [vmem:[%s61_s0 + $0x4] sm:$0xf]  ;;  %v13_v2 = vld [vmem:[%s61_s0] sm:$0xf] }
   0x2   :  { %8 = vst [vmem:[#allocation0 + $0x10] sm:$0xf] %v29_v0  ;;  %12 = vst [vmem:[#allocation0 + $0x8] sm:$0xf] %v30_v1 }
   0x3   :  { %14 = vst [vmem:[#allocation0] sm:$0xf] %v13_v2 }
   0x9   :  { %v19_v4 = vld [vmem:[#allocation0 + $0x8] sm:$0x7]   ;;  %v24_v5 = vld [vmem:[#allocation0 + $0x10] sm:$0x7]  }
   0xa   :  { %v15_v3 = vld [vmem:[#allocation0] sm:$0x7]   ;;  %31 = vst.msk [vmem:[%s62_s1 + $0x3] sm:$0x7] %vm16_vm0, %v19_v4   ;;  %32 = vst.msk [vmem:[%s62_s1 + $0x6] sm:$0x7] %vm16_vm0, %v24_v5  }
   0xb   :  { %17 = vst.msk [vmem:[%s62_s1] sm:$0x7] %vm16_vm0, %v15_v3  }

// kernel: shared_bottom_cnn_forward.1
= control target key start
LH: loop header
LB: loop body
LE: loop exit
PB: predicated region body
PF: predicated region fallthrough
CT: control target
= control target key end

     0   :  { %v5274_v0 = vmov 0.0|0.0   ;;  %vm5275_vm0 = vmmov 0   ;;  %v5276_v4 = vmov 0.0   ;;  %vm189_vm1 = vcmask 1044480   ;;  %s5277_s19 = smov 16   ;;  %s5278_s20 = smov 32   ;;  %s7722_s1 = inlined_call_operand.vmem [shape: f32[1216,128], index: 1, kind: input, shape index: {}]   ;;  %s7723_s0 = inlined_call_operand.vmem [shape: f32[340,37], index: 0, kind: input, shape index: {}]   ;;  %s7724_s2 = inlined_call_operand.vmem [shape: f32[2,128], index: 2, kind: output, shape index: {}]  }
   0x1   :  { %5082 = vmatprep.subr.bf16.mxu0 %v5274_v0  ;;  %v11_v1 = vld [vmem:[%s7722_s1] sm:$0xff]  ;;  %v12_v2 = vld [vmem:[%s7722_s1 + $0x8] sm:$0xff]  ;;  %v13_v3 = vld [vmem:[%s7722_s1 + $0x10] sm:$0xff]  ;;  %4883 = vmatprep.mubr.msk.f32.mxu0 %vm5275_vm0, %v5276_v4  ;;  %vm59_vm2 = vcmask 302080   ;;  %vm946_vm3 = vcmask 130048   ;;  %vm1302_vm4 = vcmask 261248  }
   0x2   :  { %v5083_v5 = vpack.c.bf16 %v12_v2, %v11_v1  ;;  %v14_v6 = vld [vmem:[%s7722_s1 + $0x18] sm:$0xff]  ;;  %5088 = vmatprep.subr.bf16.mxu1 %v5274_v0  ;;  %v15_v8 = vld [vmem:[%s7722_s1 + $0x20] sm:$0x1f]  ;;  %v17_v10 = vld [vmem:[%s7723_s0 + $0x8] sm:$0xff]  ;;  %947 = vst.msk [vmem:[#allocation2] sm:$0xff] %vm946_vm3, %v5276_v4  ;;  %vm1562_vm5 = vcmask 392448  }
   0x3   :  { %v5086_v7 = vpack.c.bf16 %v14_v6, %v13_v3  ;;  %v16_v9 = vld [vmem:[%s7723_s0] sm:$0xff]  ;;  %v18_v11 = vld [vmem:[%s7723_s0 + $0x10] sm:$0xff]  ;;  %v19_v12 = vld [vmem:[%s7723_s0 + $0x18] sm:$0xff]  ;;  %948 = vst.msk [vmem:[#allocation2 + $0x8] sm:$0xff] %vm946_vm3, %v5276_v4  ;;  %s5280_s27 = smov 96   ;;  %s5281_s28 = smov 64  }
   0x4   :  { %5084 = vmatpush3.bf16.msra.mxu0 %v5083_v5  ;;  %v20_v13 = vld [vmem:[%s7723_s0 + $0x20] sm:$0xff]  ;;  %v21_v14 = vld [vmem:[%s7723_s0 + $0x28] sm:$0xff]  ;;  %v22_v15 = vld [vmem:[%s7723_s0 + $0x30] sm:$0xff]  ;;  %949 = vst.msk [vmem:[#allocation2 + $0x10] sm:$0xff] %vm946_vm3, %v5276_v4  ;;  %s5282_s29 = smov 48   ;;  %s5283_s30 = smov 80  }
   0x5   :  { %5085 = vmatprep.subr.bf16.mxu0 %v5274_v0  ;;  %v23_v16 = vld [vmem:[%s7723_s0 + $0x38] sm:$0xff]  ;;  %v24_v17 = vld [vmem:[%s7723_s0 + $0x40] sm:$0xff]  ;;  %v25_v18 = vld [vmem:[%s7723_s0 + $0x48] sm:$0xff]  ;;  %950 = vst.msk [vmem:[#allocation2 + $0x18] sm:$0xff] %vm946_vm3, %v5276_v4  ;;  %vm1822_vm6 = vcmask 523648   ;;  %vm2082_vm7 = vcmask 654848  }
   0x6   :  { %v26_v19 = vld [vmem:[%s7723_s0 + $0x50] sm:$0xff]  ;;  %v27_v20 = vld [vmem:[%s7723_s0 + $0x58] sm:$0xff]  ;;  %951 = vst.msk [vmem:[#allocation2 + $0x20] sm:$0xff] %vm946_vm3, %v5276_v4  ;;  %952 = vst.msk [vmem:[#allocation2 + $0x17c] sm:$0xff] %vm946_vm3, %v5276_v4  ;;  %vm999_vm8 = vcmask 125952   ;;  %vm2342_vm9 = vcmask 786048  }
   0x7   :  { %953 = vst.msk [vmem:[#allocation2 + $0x184] sm:$0xff] %vm946_vm3, %v5276_v4  ;;  %954 = vst.msk [vmem:[#allocation2 + $0x18c] sm:$0xff] %vm946_vm3, %v5276_v4  ;;  %v28_v21 = vld [vmem:[%s7723_s0 + $0x60] sm:$0xff]  ;;  %v29_v24 = vld [vmem:[%s7723_s0 + $0x68] sm:$0xff]  ;;  %vm2602_vm10 = vcmask 917248   ;;  %vm2862_vm11 = vcmask 1048448  }
   0x8   :  { %5087 = vmatpush3.bf16.msra.mxu0 %v5086_v7  ;;  %955 = vst.msk [vmem:[#allocation2 + $0x194] sm:$0xff] %vm946_vm3, %v5276_v4  ;;  %956 = vst.msk [vmem:[#allocation2 + $0x19c] sm:$0xff] %vm946_vm3, %v5276_v4  ;;  %v30_v26 = vld [vmem:[%s7723_s0 + $0x70] sm:$0xff]  ;;  %v31_v28 = vld [vmem:[%s7723_s0 + $0x78] sm:$0xff]  ;;  %vm3554_vm12 = vcmask 261120   ;;  %vm3606_vm13 = vcmask 254976  }
   0x9   :  { %4881 = vmatprep.subr.mxu0 %v5276_v4  ;;  %v32_v29 = vld [vmem:[%s7723_s0 + $0x80] sm:$0xff]  ;;  %v33_v30 = vld [vmem:[%s7723_s0 + $0x88] sm:$0xff]  ;;  %v34_v31 = vld [vmem:[%s7723_s0 + $0x90] sm:$0xff]  ;;  %vm1345_vm14 = vcmask 257152   ;;  %vm1605_vm15 = vcmask 388352  }
   0xa   :  { %v1087_v22 = vld [vmem:[#allocation2 + $0x6] sm:$0xff]  ;;  %v35_v32 = vld [vmem:[%s7723_s0 + $0x98] sm:$0xff]  ;;  %v38_v36 = vld [vmem:[%s7723_s0 + $0xb0] sm:$0xff] }
   0xb   :  { %v1347_v23 = vld [vmem:[#allocation2 + $0x8] sm:$0xff]  ;;  %1173 = vrot.lane.b32.xlu1 %v1087_v22, %s5277_s19  ;;  %v36_v33 = vld [vmem:[%s7723_s0 + $0xa0] sm:$0xff]  ;;  %v1348_v37 = vld [vmem:[#allocation2 + $0x10] sm:$0xff] }
   0xc   :  { %4882 = vmatpush3.msk.msra.mxu0 %vm189_vm1, %v15_v8  ;;  %1433 = vrot.lane.b32.xlu0 %v1347_v23, %s5278_s20  ;;  %v1089_v25 = vld [vmem:[#allocation2 + $0x16] sm:$0xff]  ;;  %v37_v34 = vld [vmem:[%s7723_s0 + $0xa8] sm:$0xff]  ;;  %v40_v40 = vld [vmem:[%s7723_s0 + $0xc0] sm:$0xff]  ;;  %vm1865_vm1 = vcmask 519552  }
   0xd   :  { %4884 = vmatmul.mubr.msk.f32.vlgmr.msra.gmra.mrb[0].mxu0 %vm59_vm2, %v16_v9  ;;  %v1349_v27 = vld [vmem:[#allocation2 + $0x18] sm:$0xff]  ;;  %v1088_v35 = vld [vmem:[#allocation2 + $0xe] sm:$0xff]  ;;  %v1350_v41 = vld [vmem:[#allocation2 + $0x20] sm:$0xff] }
   0xe   :  { %4886 = vmatprep.mubr.msk.f32.mxu0 %vm5275_vm0, %v5276_v4  ;;  %v39_v38 = vld [vmem:[%s7723_s0 + $0xb8] sm:$0xff]  ;;  %v41_v42 = vld [vmem:[%s7723_s0 + $0xc8] sm:$0xff]  ;;  %v42_v43 = vld [vmem:[%s7723_s0 + $0xd0] sm:$0xff] }
   0xf   :  { %1175 = vrot.lane.b32.xlu1 %v1088_v35, %s5277_s19  ;;  %v1090_v39 = vld [vmem:[#allocation2 + $0x1e] sm:$0xff]  ;;  %v45_v46 = vld [vmem:[%s7723_s0 + $0xe8] sm:$0xff]  ;;  %v46_v47 = vld [vmem:[%s7723_s0 + $0xf0] sm:$0xff] }
  0x10   :  { %1177 = vrot.lane.b32.xlu0 %v1089_v25, %s5277_s19  ;;  %v43_v44 = vld [vmem:[%s7723_s0 + $0xd8] sm:$0xff]  ;;  %v44_v45 = vld [vmem:[%s7723_s0 + $0xe0] sm:$0xff]  ;;  %v49_v50 = vld [vmem:[%s7723_s0 + $0x108] sm:$0xff] }
  0x11   :  { %4887 = vmatmul.mubr.msk.f32.gmra.mrb[2].mxu0 %vm59_vm2, %v17_v10  ;;  %v47_v48 = vld [vmem:[%s7723_s0 + $0xf8] sm:$0xff]  ;;  %v48_v49 = vld [vmem:[%s7723_s0 + $0x100] sm:$0xff]  ;;  %v50_v51 = vld [vmem:[%s7723_s0 + $0x110] sm:$0xff] }
  0x12   :  { %4889 = vmatprep.mubr.msk.f32.mxu0 %vm5275_vm0, %v5276_v4  ;;  %v51_v52 = vld [vmem:[%s7723_s0 + $0x118] sm:$0xff]  ;;  %v52_v53 = vld [vmem:[%s7723_s0 + $0x120] sm:$0xff]  ;;  %v53_v54 = vld [vmem:[%s7723_s0 + $0x128] sm:$0xff] }
  0x13   :  { %1435 = vrot.lane.b32.xlu1 %v1348_v37, %s5278_s20  ;;  %v54_v55 = vld [vmem:[%s7723_s0 + $0x130] sm:$0xff]  ;;  %v55_v56 = vld [vmem:[%s7723_s0 + $0x138] sm:$0xff]  ;;  %v56_v57 = vld [vmem:[%s7723_s0 + $0x140] sm:$0xff] }
  0x14   :  { %1437 = vrot.lane.b32.xlu0 %v1349_v27, %s5278_s20  ;;  %v57_v58 = vld [vmem:[%s7723_s0 + $0x148] sm:$0xff]  ;;  %v58_v59 = vld [vmem:[%s7723_s0 + $0x150] sm:$0xf]  ;;  %v1003_v63 = vld [vmem:[#allocation2 + $0x14] sm:$0xff]  ;;  %s5279_s0 = smov 112  }
  0x15   :  { %4890 = vmatmul.mubr.msk.f32.gmra.mrb[4].mxu0 %vm59_vm2, %v18_v11  ;;  %v1001_v61 = vld [vmem:[#allocation2 + $0x4] sm:$0xff]  ;;  %1046 = vst.msk [vmem:[#allocation3 + $0x20] sm:$0xff] %vm946_vm3, %v1003_v63  ;;  %v1002_v3 = vld [vmem:[#allocation2 + $0xc] sm:$0xff]  ;;  %v1004_v7 = vld [vmem:[#allocation2 + $0x1c] sm:$0xff] }
  0x16   :  { %4892 = vmatprep.mubr.msk.f32.mxu0 %vm5275_vm0, %v5276_v4  ;;  %1044 = vst.msk [vmem:[#allocation3] sm:$0xff] %vm946_vm3, %v1001_v61  ;;  %1045 = vst.msk [vmem:[#allocation3 + $0x10] sm:$0xff] %vm946_vm3, %v1002_v3 }
  0x17   :  { %1179 = vrot.lane.b32.xlu1 %v1090_v39, %s5277_s19  ;;  %1047 = vst.msk [vmem:[#allocation3 + $0x30] sm:$0xff] %vm946_vm3, %v1004_v7 }
  0x19   :  { %4893 = vmatmul.mubr.msk.f32.gmra.mrb[6].mxu0 %vm59_vm2, %v19_v12 }
  0x1a   :  { %4895 = vmatprep.mubr.msk.f32.mxu0 %vm5275_vm0, %v5276_v4 }
  0x1b   :  { %1439 = vrot.lane.b32.xlu1 %v1350_v41, %s5278_s20 }
  0x1d   :  { %4896 = vmatmul.mubr.msk.f32.gmra.mrb[8].mxu0 %vm59_vm2, %v20_v13 }
  0x1e   :  { %4898 = vmatprep.mubr.msk.f32.mxu0 %vm5275_vm0, %v5276_v4 }
  0x21   :  { %4899 = vmatmul.mubr.msk.f32.gmra.mrb[10].mxu0 %vm59_vm2, %v21_v14 }
  0x22   :  { %4901 = vmatprep.mubr.msk.f32.mxu0 %vm5275_vm0, %v5276_v4 }
  0x25   :  { %4902 = vmatmul.mubr.msk.f32.gmra.mrb[12].mxu0 %vm59_vm2, %v22_v15 }
  0x26   :  { %4904 = vmatprep.mubr.msk.f32.mxu0 %vm5275_vm0, %v5276_v4 }
  0x29   :  { %4905 = vmatmul.mubr.msk.f32.gmra.mrb[14].mxu0 %vm59_vm2, %v23_v16 }
  0x2a   :  { %4907 = vmatprep.mubr.msk.f32.mxu0 %vm5275_vm0, %v5276_v4 }
  0x2d   :  { %4908 = vmatmul.mubr.msk.f32.gmra.mrb[16].mxu0 %vm59_vm2, %v24_v17 }
  0x2e   :  { %4910 = vmatprep.mubr.msk.f32.mxu0 %vm5275_vm0, %v5276_v4 }
  0x31   :  { %4911 = vmatmul.mubr.msk.f32.gmra.mrb[18].mxu0 %vm59_vm2, %v25_v18 }
  0x32   :  { %4913 = vmatprep.mubr.msk.f32.mxu0 %vm5275_vm0, %v5276_v4 }
  0x35   :  { %4914 = vmatmul.mubr.msk.f32.gmra.mrb[20].mxu0 %vm59_vm2, %v26_v19 }
  0x36   :  { %4916 = vmatprep.mubr.msk.f32.mxu0 %vm5275_vm0, %v5276_v4 }
  0x39   :  { %4917 = vmatmul.mubr.msk.f32.gmra.mrb[22].mxu0 %vm59_vm2, %v27_v20 }
  0x3a   :  { %4919 = vmatprep.mubr.msk.f32.mxu0 %vm5275_vm0, %v5276_v4 }
  0x3d   :  { %4920 = vmatmul.mubr.msk.f32.gmra.mrb[24].mxu0 %vm59_vm2, %v28_v21 }
  0x3e   :  { %4922 = vmatprep.mubr.msk.f32.mxu0 %vm5275_vm0, %v5276_v4 }
  0x41   :  { %4923 = vmatmul.mubr.msk.f32.gmra.mrb[26].mxu0 %vm59_vm2, %v29_v24 }
  0x42   :  { %4925 = vmatprep.mubr.msk.f32.mxu0 %vm5275_vm0, %v5276_v4 }
  0x45   :  { %4926 = vmatmul.mubr.msk.f32.gmra.mrb[28].mxu0 %vm59_vm2, %v30_v26 }
  0x46   :  { %4928 = vmatprep.mubr.msk.f32.mxu0 %vm5275_vm0, %v5276_v4 }
  0x49   :  { %4929 = vmatmul.mubr.msk.f32.gmra.mrb[30].mxu0 %vm59_vm2, %v31_v28 }
  0x4a   :  { %4931 = vmatprep.mubr.msk.f32.mxu0 %vm5275_vm0, %v5276_v4 }
  0x4d   :  { %4932 = vmatmul.mubr.msk.f32.gmra.mrb[32].mxu0 %vm59_vm2, %v32_v29 }
  0x4e   :  { %4934 = vmatprep.mubr.msk.f32.mxu0 %vm5275_vm0, %v5276_v4 }
  0x51   :  { %4935 = vmatmul.mubr.msk.f32.gmra.mrb[34].mxu0 %vm59_vm2, %v33_v30 }
  0x52   :  { %4937 = vmatprep.mubr.msk.f32.mxu0 %vm5275_vm0, %v5276_v4 }
  0x55   :  { %4938 = vmatmul.mubr.msk.f32.gmra.mrb[36].mxu0 %vm59_vm2, %v34_v31 }
  0x56   :  { %4940 = vmatprep.mubr.msk.f32.mxu0 %vm5275_vm0, %v5276_v4 }
  0x59   :  { %4941 = vmatmul.mubr.msk.f32.gmra.mrb[38].mxu0 %vm59_vm2, %v35_v32 }
  0x5a   :  { %4943 = vmatprep.mubr.msk.f32.mxu0 %vm5275_vm0, %v5276_v4 }
  0x5d   :  { %4944 = vmatmul.mubr.msk.f32.gmra.mrb[40].mxu0 %vm59_vm2, %v36_v33 }
  0x5e   :  { %4946 = vmatprep.mubr.msk.f32.mxu0 %vm5275_vm0, %v5276_v4 }
  0x61   :  { %4947 = vmatmul.mubr.msk.f32.gmra.mrb[42].mxu0 %vm59_vm2, %v37_v34 }
  0x62   :  { %4949 = vmatprep.mubr.msk.f32.mxu0 %vm5275_vm0, %v5276_v4 }
  0x65   :  { %4950 = vmatmul.mubr.msk.f32.gmra.mrb[44].mxu0 %vm59_vm2, %v38_v36 }
  0x66   :  { %4952 = vmatprep.mubr.msk.f32.mxu0 %vm5275_vm0, %v5276_v4 }
  0x69   :  { %4953 = vmatmul.mubr.msk.f32.gmra.mrb[46].mxu0 %vm59_vm2, %v39_v38 }
  0x6a   :  { %4955 = vmatprep.mubr.msk.f32.mxu0 %vm5275_vm0, %v5276_v4 }
  0x6d   :  { %4956 = vmatmul.mubr.msk.f32.gmra.mrb[48].mxu0 %vm59_vm2, %v40_v40 }
  0x6e   :  { %4958 = vmatprep.mubr.msk.f32.mxu0 %vm5275_vm0, %v5276_v4 }
  0x71   :  { %4959 = vmatmul.mubr.msk.f32.gmra.mrb[50].mxu0 %vm59_vm2, %v41_v42 }
  0x72   :  { %4961 = vmatprep.mubr.msk.f32.mxu0 %vm5275_vm0, %v5276_v4 }
  0x75   :  { %4962 = vmatmul.mubr.msk.f32.gmra.mrb[52].mxu0 %vm59_vm2, %v42_v43 }
  0x76   :  { %4964 = vmatprep.mubr.msk.f32.mxu0 %vm5275_vm0, %v5276_v4 }
  0x79   :  { %4965 = vmatmul.mubr.msk.f32.gmra.mrb[54].mxu0 %vm59_vm2, %v43_v44 }
  0x7a   :  { %4967 = vmatprep.mubr.msk.f32.mxu0 %vm5275_vm0, %v5276_v4 }
  0x7d   :  { %4968 = vmatmul.mubr.msk.f32.gmra.mrb[56].mxu0 %vm59_vm2, %v44_v45  ;;  %v1174_v60 = vpop.permute.xlu1 %1173 }
  0x7e   :  { %4970 = vmatprep.mubr.msk.f32.mxu0 %vm5275_vm0, %v5276_v4  ;;  %v1434_v62 = vpop.permute.xlu0 %1433  ;;  %1303 = vst.msk [vmem:[#allocation3] sm:$0xff] %vm1302_vm4, %v1174_v60 }
  0x7f   :  { %1563 = vst.msk [vmem:[#allocation3] sm:$0xff] %vm1562_vm5, %v1434_v62 }
  0x81   :  { %4971 = vmatmul.mubr.msk.f32.gmra.mrb[58].mxu0 %vm59_vm2, %v45_v46  ;;  %v1176_v5 = vpop.permute.xlu1 %1175 }
  0x82   :  { %4973 = vmatprep.mubr.msk.f32.mxu0 %vm5275_vm0, %v5276_v4  ;;  %v1178_v1 = vpop.permute.xlu0 %1177  ;;  %1304 = vst.msk [vmem:[#allocation3 + $0x10] sm:$0xff] %vm1302_vm4, %v1176_v5 }
  0x83   :  { %1305 = vst.msk [vmem:[#allocation3 + $0x20] sm:$0xff] %vm1302_vm4, %v1178_v1 }
  0x85   :  { %4974 = vmatmul.mubr.msk.f32.gmra.mrb[60].mxu0 %vm59_vm2, %v46_v47  ;;  %v1436_v6 = vpop.permute.xlu1 %1435 }
  0x86   :  { %4976 = vmatprep.mubr.msk.f32.mxu0 %vm5275_vm0, %v5276_v4  ;;  %v1438_v2 = vpop.permute.xlu0 %1437  ;;  %1564 = vst.msk [vmem:[#allocation3 + $0x10] sm:$0xff] %vm1562_vm5, %v1436_v6 }
  0x87   :  { %1565 = vst.msk [vmem:[#allocation3 + $0x20] sm:$0xff] %vm1562_vm5, %v1438_v2 }
  0x89   :  { %4977 = vmatmul.mubr.msk.f32.gmra.mrb[62].mxu0 %vm59_vm2, %v47_v48  ;;  %v1180_v8 = vpop.permute.xlu1 %1179 }
  0x8a   :  { %4979 = vmatprep.mubr.msk.f32.mxu0 %vm5275_vm0, %v5276_v4  ;;  %1306 = vst.msk [vmem:[#allocation3 + $0x30] sm:$0xff] %vm1302_vm4, %v1180_v8 }
  0x8d   :  { %4980 = vmatmul.mubr.msk.f32.gmra.mrb[64].mxu0 %vm59_vm2, %v48_v49  ;;  %v1440_v9 = vpop.permute.xlu1 %1439 }
  0x8e   :  { %4982 = vmatprep.mubr.msk.f32.mxu0 %vm5275_vm0, %v5276_v4  ;;  %1566 = vst.msk [vmem:[#allocation3 + $0x30] sm:$0xff] %vm1562_vm5, %v1440_v9 }
  0x91   :  { %4983 = vmatmul.mubr.msk.f32.gmra.mrb[66].mxu0 %vm59_vm2, %v49_v50 }
  0x92   :  { %4985 = vmatprep.mubr.msk.f32.mxu0 %vm5275_vm0, %v5276_v4 }
  0x95   :  { %4986 = vmatmul.mubr.msk.f32.gmra.mrb[68].mxu0 %vm59_vm2, %v50_v51 }
  0x96   :  { %4988 = vmatprep.mubr.msk.f32.mxu0 %vm5275_vm0, %v5276_v4 }
  0x99   :  { %4989 = vmatmul.mubr.msk.f32.gmra.mrb[70].mxu0 %vm59_vm2, %v51_v52 }
  0x9a   :  { %4991 = vmatprep.mubr.msk.f32.mxu0 %vm5275_vm0, %v5276_v4 }
  0x9d   :  { %4992 = vmatmul.mubr.msk.f32.gmra.mrb[72].mxu0 %vm59_vm2, %v52_v53 }
  0x9e   :  { %4994 = vmatprep.mubr.msk.f32.mxu0 %vm5275_vm0, %v5276_v4 }
  0xa1   :  { %4995 = vmatmul.mubr.msk.f32.gmra.mrb[74].mxu0 %vm59_vm2, %v53_v54 }
  0xa2   :  { %4997 = vmatprep.mubr.msk.f32.mxu0 %vm5275_vm0, %v5276_v4 }
  0xa5   :  { %4998 = vmatmul.mubr.msk.f32.gmra.mrb[76].mxu0 %vm59_vm2, %v54_v55 }
  0xa6   :  { %5000 = vmatprep.mubr.msk.f32.mxu0 %vm5275_vm0, %v5276_v4 }
  0xa9   :  { %5001 = vmatmul.mubr.msk.f32.gmra.mrb[78].mxu0 %vm59_vm2, %v55_v56 }
  0xaa   :  { %5003 = vmatprep.mubr.msk.f32.mxu0 %vm5275_vm0, %v5276_v4 }
  0xad   :  { %5004 = vmatmul.mubr.msk.f32.gmra.mrb[80].mxu0 %vm59_vm2, %v56_v57 }
  0xae   :  { %5006 = vmatprep.mubr.msk.f32.mxu0 %vm5275_vm0, %v5276_v4 }
  0xb1   :  { %5007 = vmatmul.mubr.msk.f32.gmra.mrb[82].mxu0 %vm59_vm2, %v57_v58 }
  0xb2   :  { %5009 = vmatprep.mubr.msk.f32.mxu0 %vm5275_vm0, %v5276_v4 }
  0xb5   :  { %5010 = vmatmul.mubr.msk.f32.gmra.mrb[84].mxu0 %vm59_vm2, %v58_v59  ;;  %vm3626_vm2 = vcmask 517376  }
  0xe0   :  { %v5616_v10 = vpop.f32.mrb[0].mxu0 }
  0xe1   :  { %516 = vrot.lane.b32.xlu0 %v5616_v10, %s5279_s0  ;;  %v4885_v11 = vpop.f32.mrb[1].mxu0 }
  0xe4   :  { %v5621_v12 = vpop.f32.mrb[2].mxu0 }
  0xe5   :  { %518 = vrot.lane.b32.xlu0 %v5621_v12, %s5279_s0  ;;  %v4888_v13 = vpop.f32.mrb[3].mxu0 }
  0xe8   :  { %v5625_v14 = vpop.f32.mrb[4].mxu0 }
  0xe9   :  { %520 = vrot.lane.b32.xlu0 %v5625_v14, %s5279_s0  ;;  %v4891_v15 = vpop.f32.mrb[5].mxu0 }
  0xec   :  { %v5629_v16 = vpop.f32.mrb[6].mxu0 }
  0xed   :  { %522 = vrot.lane.b32.xlu0 %v5629_v16, %s5279_s0  ;;  %v4894_v17 = vpop.f32.mrb[7].mxu0 }
  0xf0   :  { %v5633_v18 = vpop.f32.mrb[8].mxu0 }
  0xf1   :  { %524 = vrot.lane.b32.xlu1 %v5633_v18, %s5279_s0  ;;  %v4897_v19 = vpop.f32.mrb[9].mxu0 }
  0xf4   :  { %v5637_v20 = vpop.f32.mrb[10].mxu0 }
  0xf5   :  { %526 = vrot.lane.b32.xlu1 %v5637_v20, %s5279_s0  ;;  %v4900_v21 = vpop.f32.mrb[11].mxu0 }
  0xf8   :  { %v5641_v22 = vpop.f32.mrb[12].mxu0 }
  0xf9   :  { %528 = vrot.lane.b32.xlu1 %v5641_v22, %s5279_s0  ;;  %v4903_v23 = vpop.f32.mrb[13].mxu0 }
  0xfc   :  { %v5645_v24 = vpop.f32.mrb[14].mxu0 }
  0xfd   :  { %530 = vrot.lane.b32.xlu1 %v5645_v24, %s5279_s0  ;;  %v4906_v25 = vpop.f32.mrb[15].mxu0 }
 0x100   :  { %v5649_v26 = vpop.f32.mrb[16].mxu0 }
 0x101   :  { %532 = vrot.lane.b32.xlu0 %v5649_v26, %s5279_s0  ;;  %v4909_v27 = vpop.f32.mrb[17].mxu0 }
 0x104   :  { %v5653_v28 = vpop.f32.mrb[18].mxu0 }
 0x105   :  { %534 = vrot.lane.b32.xlu1 %v5653_v28, %s5279_s0  ;;  %v4912_v29 = vpop.f32.mrb[19].mxu0 }
 0x108   :  { %v5657_v30 = vpop.f32.mrb[20].mxu0 }
 0x109   :  { %536 = vrot.lane.b32.xlu0 %v5657_v30, %s5279_s0  ;;  %v4915_v31 = vpop.f32.mrb[21].mxu0 }
 0x10c   :  { %v5661_v32 = vpop.f32.mrb[22].mxu0 }
 0x10d   :  { %538 = vrot.lane.b32.xlu1 %v5661_v32, %s5279_s0  ;;  %v4918_v33 = vpop.f32.mrb[23].mxu0 }
 0x110   :  { %v5665_v34 = vpop.f32.mrb[24].mxu0 }
 0x111   :  { %540 = vrot.lane.b32.xlu0 %v5665_v34, %s5279_s0  ;;  %v4921_v35 = vpop.f32.mrb[25].mxu0 }
 0x114   :  { %v5669_v36 = vpop.f32.mrb[26].mxu0 }
 0x115   :  { %542 = vrot.lane.b32.xlu1 %v5669_v36, %s5279_s0  ;;  %v4924_v37 = vpop.f32.mrb[27].mxu0 }
 0x118   :  { %v5673_v38 = vpop.f32.mrb[28].mxu0 }
 0x119   :  { %544 = vrot.lane.b32.xlu0 %v5673_v38, %s5279_s0  ;;  %v4927_v39 = vpop.f32.mrb[29].mxu0 }
 0x11c   :  { %v5677_v40 = vpop.f32.mrb[30].mxu0 }
 0x11d   :  { %546 = vrot.lane.b32.xlu1 %v5677_v40, %s5279_s0  ;;  %v4930_v41 = vpop.f32.mrb[31].mxu0 }
 0x120   :  { %v5681_v42 = vpop.f32.mrb[32].mxu0 }
 0x121   :  { %548 = vrot.lane.b32.xlu0 %v5681_v42, %s5279_s0  ;;  %v4933_v43 = vpop.f32.mrb[33].mxu0 }
 0x124   :  { %v5685_v44 = vpop.f32.mrb[34].mxu0 }
 0x125   :  { %550 = vrot.lane.b32.xlu1 %v5685_v44, %s5279_s0  ;;  %v4936_v45 = vpop.f32.mrb[35].mxu0 }
 0x128   :  { %v5689_v46 = vpop.f32.mrb[36].mxu0 }
 0x129   :  { %552 = vrot.lane.b32.xlu0 %v5689_v46, %s5279_s0  ;;  %v4939_v47 = vpop.f32.mrb[37].mxu0 }
 0x12c   :  { %v5693_v48 = vpop.f32.mrb[38].mxu0 }
 0x12d   :  { %554 = vrot.lane.b32.xlu1 %v5693_v48, %s5279_s0  ;;  %v4942_v49 = vpop.f32.mrb[39].mxu0 }
 0x130   :  { %v5697_v50 = vpop.f32.mrb[40].mxu0 }
 0x131   :  { %556 = vrot.lane.b32.xlu1 %v5697_v50, %s5279_s0  ;;  %v4945_v51 = vpop.f32.mrb[41].mxu0 }
 0x134   :  { %v5701_v52 = vpop.f32.mrb[42].mxu0 }
 0x135   :  { %558 = vrot.lane.b32.xlu0 %v5701_v52, %s5279_s0  ;;  %v4948_v53 = vpop.f32.mrb[43].mxu0 }
 0x138   :  { %v5705_v54 = vpop.f32.mrb[44].mxu0 }
 0x139   :  { %560 = vrot.lane.b32.xlu1 %v5705_v54, %s5279_s0  ;;  %v4951_v55 = vpop.f32.mrb[45].mxu0 }
 0x13c   :  { %v5709_v56 = vpop.f32.mrb[46].mxu0 }
 0x13d   :  { %562 = vrot.lane.b32.xlu1 %v5709_v56, %s5279_s0  ;;  %v4954_v57 = vpop.f32.mrb[47].mxu0 }
 0x140   :  { %v5713_v58 = vpop.f32.mrb[48].mxu0 }
 0x141   :  { %564 = vrot.lane.b32.xlu1 %v5713_v58, %s5279_s0  ;;  %v4957_v59 = vpop.f32.mrb[49].mxu0 }
 0x144   :  { %v5717_v60 = vpop.f32.mrb[50].mxu0 }
 0x145   :  { %566 = vrot.lane.b32.xlu1 %v5717_v60, %s5279_s0  ;;  %v4960_v61 = vpop.f32.mrb[51].mxu0 }
 0x148   :  { %v5721_v62 = vpop.f32.mrb[52].mxu0 }
 0x149   :  { %568 = vrot.lane.b32.xlu1 %v5721_v62, %s5279_s0  ;;  %v4963_v63 = vpop.f32.mrb[53].mxu0 }
 0x14c   :  { %v5725_v1 = vpop.f32.mrb[54].mxu0 }
 0x14d   :  { %570 = vrot.lane.b32.xlu1 %v5725_v1, %s5279_s0  ;;  %v4966_v2 = vpop.f32.mrb[55].mxu0 }
 0x150   :  { %v5729_v3 = vpop.f32.mrb[56].mxu0 }
 0x151   :  { %572 = vrot.lane.b32.xlu1 %v5729_v3, %s5279_s0  ;;  %v4969_v5 = vpop.f32.mrb[57].mxu0 }
 0x153   :  { %v517_v6 = vpop.permute.xlu0 %516 }
 0x154   :  { %v5734_v7 = vmax.f32 %v5616_v10, %v517_v6  ;;  %v5736_v8 = vpop.f32.mrb[58].mxu0 }
 0x155   :  { %574 = vrot.lane.b32.xlu1 %v5736_v8, %s5279_s0  ;;  %v4972_v9 = vpop.f32.mrb[59].mxu0 }
 0x156   :  { %731 = vrot.lane.b32.xlu0 %v5734_v7, %s5280_s27 }
 0x157   :  { %v519_v11 = vpop.permute.xlu0 %518 }
 0x158   :  { %v5742_v13 = vpop.f32.mrb[60].mxu0  ;;  %v5747_v10 = vmax.f32 %v5621_v12, %v519_v11 }
 0x159   :  { %576 = vrot.lane.b32.xlu1 %v5742_v13, %s5279_s0  ;;  %v4975_v15 = vpop.f32.mrb[61].mxu0 }
 0x15b   :  { %v521_v17 = vpop.permute.xlu0 %520 }
 0x15c   :  { %v5749_v19 = vpop.f32.mrb[62].mxu0  ;;  %v5763_v12 = vmax.f32 %v5625_v14, %v521_v17 }
 0x15d   :  { %733 = vrot.lane.b32.xlu1 %v5747_v10, %s5280_s27  ;;  %v4978_v21 = vpop.f32.mrb[63].mxu0 }
 0x15f   :  { %v523_v23 = vpop.permute.xlu0 %522 }
 0x160   :  { %v5754_v25 = vmax.f32 %v5629_v16, %v523_v23  ;;  %v5756_v27 = vpop.f32.mrb[64].mxu0 }
 0x161   :  { %578 = vrot.lane.b32.xlu1 %v5749_v19, %s5279_s0  ;;  %v4981_v29 = vpop.f32.mrb[65].mxu0 }
 0x162   :  { %737 = vrot.lane.b32.xlu0 %v5754_v25, %s5280_s27 }
 0x163   :  { %v525_v31 = vpop.permute.xlu1 %524 }
 0x164   :  { %v5766_v33 = vmax.f32 %v5633_v18, %v525_v31  ;;  %v5768_v35 = vpop.f32.mrb[66].mxu0 }
 0x165   :  { %735 = vrot.lane.b32.xlu1 %v5763_v12, %s5280_s27  ;;  %v4984_v16 = vpop.f32.mrb[67].mxu0 }
 0x166   :  { %739 = vrot.lane.b32.xlu0 %v5766_v33, %s5280_s27 }
 0x167   :  { %v527_v37 = vpop.permute.xlu1 %526 }
 0x168   :  { %v5775_v39 = vmax.f32 %v5637_v20, %v527_v37  ;;  %v5777_v41 = vpop.f32.mrb[68].mxu0 }
 0x169   :  { %580 = vrot.lane.b32.xlu1 %v5756_v27, %s5279_s0  ;;  %v4987_v14 = vpop.f32.mrb[69].mxu0 }
 0x16a   :  { %741 = vrot.lane.b32.xlu0 %v5775_v39, %s5280_s27 }
 0x16b   :  { %v529_v18 = vpop.permute.xlu1 %528 }
 0x16c   :  { %v5783_v43 = vpop.f32.mrb[70].mxu0  ;;  %v5806_v59 = vmax.f32 %v5641_v22, %v529_v18 }
 0x16d   :  { %582 = vrot.lane.b32.xlu1 %v5768_v35, %s5279_s0  ;;  %v4990_v45 = vpop.f32.mrb[71].mxu0 }
 0x16f   :  { %v531_v47 = vpop.permute.xlu1 %530 }
 0x170   :  { %v5788_v20 = vmax.f32 %v5645_v24, %v531_v47  ;;  %v5790_v49 = vpop.f32.mrb[72].mxu0 }
 0x171   :  { %584 = vrot.lane.b32.xlu1 %v5777_v41, %s5279_s0  ;;  %v4993_v51 = vpop.f32.mrb[73].mxu0 }
 0x172   :  { %745 = vrot.lane.b32.xlu0 %v5788_v20, %s5280_s27 }
 0x173   :  { %v533_v53 = vpop.permute.xlu0 %532 }
 0x174   :  { %v5797_v55 = vmax.f32 %v5649_v26, %v533_v53  ;;  %v5799_v57 = vpop.f32.mrb[74].mxu0 }
 0x175   :  { %586 = vrot.lane.b32.xlu1 %v5783_v43, %s5279_s0  ;;  %v4996_v24 = vpop.f32.mrb[75].mxu0 }
 0x176   :  { %747 = vrot.lane.b32.xlu0 %v5797_v55, %s5280_s27 }
 0x177   :  { %v535_v63 = vpop.permute.xlu1 %534 }
 0x178   :  { %v5808_v61 = vpop.f32.mrb[76].mxu0  ;;  %v5815_v2 = vmax.f32 %v5653_v28, %v535_v63 }
 0x179   :  { %743 = vrot.lane.b32.xlu1 %v5806_v59, %s5280_s27  ;;  %v4999_v26 = vpop.f32.mrb[77].mxu0 }
 0x17a   :  { %592 = vrot.lane.b32.xlu0 %v5808_v61, %s5279_s0 }
 0x17b   :  { %v537_v6 = vpop.permute.xlu0 %536 }
 0x17c   :  { %v5817_v5 = vpop.f32.mrb[78].mxu0  ;;  %v5824_v9 = vmax.f32 %v5657_v30, %v537_v6 }
 0x17d   :  { %588 = vrot.lane.b32.xlu1 %v5790_v49, %s5279_s0  ;;  %v5002_v22 = vpop.f32.mrb[79].mxu0 }
 0x17e   :  { %749 = vrot.lane.b32.xlu0 %v5815_v2, %s5280_s27 }
 0x17f   :  { %v539_v17 = vpop.permute.xlu1 %538 }
 0x180   :  { %v5826_v11 = vpop.f32.mrb[80].mxu0  ;;  %v5839_v30 = vmax.f32 %v5661_v32, %v539_v17 }
 0x181   :  { %590 = vrot.lane.b32.xlu1 %v5799_v57, %s5279_s0  ;;  %v5005_v28 = vpop.f32.mrb[81].mxu0 }
 0x182   :  { %751 = vrot.lane.b32.xlu0 %v5824_v9, %s5280_s27 }
 0x183   :  { %v541_v29 = vpop.permute.xlu0 %540 }
 0x184   :  { %v5832_v15 = vpop.f32.mrb[82].mxu0  ;;  %v5848_v16 = vmax.f32 %v5665_v34, %v541_v29 }
 0x185   :  { %594 = vrot.lane.b32.xlu1 %v5817_v5, %s5279_s0  ;;  %v5008_v21 = vpop.f32.mrb[83].mxu0 }
 0x186   :  { %596 = vrot.lane.b32.xlu0 %v5826_v11, %s5279_s0 }
 0x187   :  { %v543_v37 = vpop.permute.xlu1 %542 }
 0x188   :  { %v5841_v23 = vpop.f32.mrb[84].mxu0  ;;  %v5855_v32 = vmax.f32 %v5669_v36, %v543_v37 }
 0x189   :  { %598 = vrot.lane.b32.xlu1 %v5832_v15, %s5279_s0  ;;  %v5011_v31 = vpop.f32.mrb[85].mxu0 }
 0x18a   :  { %753 = vrot.lane.b32.xlu0 %v5839_v30, %s5280_s27 }
 0x18b   :  { %v545_v14 = vpop.permute.xlu0 %544 }
 0x18c   :  { %v5860_v18 = vmax.f32 %v5673_v38, %v545_v14 }
 0x18e   :  { %755 = vrot.lane.b32.xlu0 %v5848_v16, %s5280_s27 }
 0x18f   :  { %v547_v45 = vpop.permute.xlu1 %546 }
 0x190   :  { %v5865_v34 = vmax.f32 %v5677_v40, %v547_v45 }
 0x192   :  { %600 = vrot.lane.b32.xlu0 %v5841_v23, %s5279_s0 }
 0x193   :  { %v549_v47 = vpop.permute.xlu0 %548 }
 0x194   :  { %v5870_v36 = vmax.f32 %v5681_v42, %v549_v47 }
 0x196   :  { %757 = vrot.lane.b32.xlu0 %v5855_v32, %s5280_s27 }
 0x197   :  { %v551_v51 = vpop.permute.xlu1 %550 }
 0x198   :  { %v5875_v38 = vmax.f32 %v5685_v44, %v551_v51 }
 0x19a   :  { %759 = vrot.lane.b32.xlu0 %v5860_v18, %s5280_s27 }
 0x19b   :  { %v553_v24 = vpop.permute.xlu0 %552 }
 0x19c   :  { %v5880_v63 = vmax.f32 %v5689_v46, %v553_v24 }
 0x19e   :  { %761 = vrot.lane.b32.xlu0 %v5865_v34, %s5280_s27 }
 0x19f   :  { %v555_v53 = vpop.permute.xlu1 %554 }
 0x1a0   :  { %v5885_v26 = vmax.f32 %v5693_v48, %v555_v53 }
 0x1a2   :  { %763 = vrot.lane.b32.xlu0 %v5870_v36, %s5280_s27 }
 0x1a3   :  { %v557_v40 = vpop.permute.xlu1 %556 }
 0x1a4   :  { %v5890_v6 = vmax.f32 %v5697_v50, %v557_v40 }
 0x1a6   :  { %765 = vrot.lane.b32.xlu0 %v5875_v38, %s5280_s27 }
 0x1a7   :  { %v559_v28 = vpop.permute.xlu0 %558 }
 0x1a8   :  { %v5900_v48 = vmax.f32 %v5701_v52, %v559_v28 }
 0x1aa   :  { %767 = vrot.lane.b32.xlu0 %v5880_v63, %s5280_s27 }
 0x1ab   :  { %v561_v42 = vpop.permute.xlu1 %560 }
 0x1ac   :  { %v5905_v50 = vmax.f32 %v5705_v54, %v561_v42 }
 0x1ae   :  { %769 = vrot.lane.b32.xlu0 %v5885_v26, %s5280_s27 }
 0x1af   :  { %v563_v44 = vpop.permute.xlu1 %562 }
 0x1b0   :  { %v5893_v22 = vmax.f32 %v5709_v56, %v563_v44 }
 0x1b2   :  { %777 = vrot.lane.b32.xlu1 %v5893_v22, %s5280_s27  ;;  %771 = vrot.lane.b32.xlu0 %v5890_v6, %s5280_s27 }
 0x1b3   :  { %v565_v46 = vpop.permute.xlu1 %564 }
 0x1b4   :  { %v5915_v52 = vmax.f32 %v5713_v58, %v565_v46 }
 0x1b6   :  { %773 = vrot.lane.b32.xlu0 %v5900_v48, %s5280_s27 }
 0x1b7   :  { %v567_v17 = vpop.permute.xlu1 %566 }
 0x1b8   :  { %v5908_v56 = vmax.f32 %v5717_v60, %v567_v17 }
 0x1ba   :  { %781 = vrot.lane.b32.xlu1 %v5908_v56, %s5280_s27  ;;  %775 = vrot.lane.b32.xlu0 %v5905_v50, %s5280_s27 }
 0x1bb   :  { %v569_v21 = vpop.permute.xlu1 %568 }
 0x1bc   :  { %v5920_v54 = vmax.f32 %v5721_v62, %v569_v21 }
 0x1be   :  { %779 = vrot.lane.b32.xlu0 %v5915_v52, %s5280_s27 }
 0x1bf   :  { %v571_v29 = vpop.permute.xlu1 %570 }
 0x1c0   :  { %v5923_v60 = vmax.f32 %v5725_v1, %v571_v29 }
 0x1c2   :  { %785 = vrot.lane.b32.xlu1 %v5923_v60, %s5280_s27  ;;  %783 = vrot.lane.b32.xlu0 %v5920_v54, %s5280_s27 }
 0x1c3   :  { %v573_v31 = vpop.permute.xlu1 %572 }
 0x1c4   :  { %v5930_v58 = vmax.f32 %v5729_v3, %v573_v31 }
 0x1c6   :  { %787 = vrot.lane.b32.xlu1 %v5930_v58, %s5280_s27 }
 0x1c7   :  { %v575_v37 = vpop.permute.xlu1 %574 }
 0x1c8   :  { %v5935_v62 = vmax.f32 %v5736_v8, %v575_v37  ;;  %v732_v14 = vpop.permute.xlu0 %731 }
 0x1c9   :  { %v860_v1 = vmax.f32 %v5734_v7, %v732_v14 }
 0x1ca   :  { %789 = vrot.lane.b32.xlu1 %v5935_v62, %s5280_s27 }
 0x1cb   :  { %v903_v45 = vmax.f32 %v860_v1, 0.0  ;;  %v577_v47 = vpop.permute.xlu1 %576 }
 0x1cc   :  { %v5941_v51 = vmax.f32 %v5742_v13, %v577_v47 }
 0x1cd   :  { %957 = vst.msk [vmem:[#allocation2 + $0x28] sm:$0xff] %vm946_vm3, %v903_v45 }
 0x1ce   :  { %791 = vrot.lane.b32.xlu1 %v5941_v51, %s5280_s27 }
 0x1cf   :  { %v734_v3 = vpop.permute.xlu1 %733 }
 0x1d0   :  { %v861_v8 = vmax.f32 %v5747_v10, %v734_v3 }
 0x1d2   :  { %v904_v53 = vmax.f32 %v861_v8, 0.0 }
 0x1d3   :  { %v579_v24 = vpop.permute.xlu1 %578 }
 0x1d4   :  { %958 = vst.msk [vmem:[#allocation2 + $0x30] sm:$0xff] %vm946_vm3, %v904_v53  ;;  %v5949_v7 = vmax.f32 %v5749_v19, %v579_v24  ;;  %v738_v40 = vpop.permute.xlu0 %737  ;;  %v1867_v42 = vld [vmem:[#allocation2 + $0x28] sm:$0xff] }
 0x1d5   :  { %v1005_v44 = vld [vmem:[#allocation2 + $0x24] sm:$0xff]  ;;  %v863_v13 = vmax.f32 %v5754_v25, %v738_v40  ;;  %1953 = vrot.lane.b32.xlu0 %v1867_v42, %s5281_s28 }
 0x1d6   :  { %1048 = vst.msk [vmem:[#allocation3 + $0x40] sm:$0xff] %vm946_vm3, %v1005_v44  ;;  %793 = vrot.lane.b32.xlu1 %v5949_v7, %s5280_s27  ;;  %v1091_v19 = vld [vmem:[#allocation2 + $0x26] sm:$0xff] }
 0x1d7   :  { %v906_v10 = vmax.f32 %v863_v13, 0.0  ;;  %v736_v28 = vpop.permute.xlu1 %735 }
 0x1d8   :  { %v862_v46 = vmax.f32 %v5763_v12, %v736_v28  ;;  %v740_v17 = vpop.permute.xlu0 %739 }
 0x1d9   :  { %960 = vst.msk [vmem:[#allocation2 + $0x40] sm:$0xff] %vm946_vm3, %v906_v10  ;;  %v864_v21 = vmax.f32 %v5766_v33, %v740_v17  ;;  %1181 = vrot.lane.b32.xlu0 %v1091_v19, %s5277_s19 }
 0x1da   :  { %v905_v25 = vmax.f32 %v862_v46, 0.0  ;;  %1693 = vrot.lane.b32.xlu1 %v1091_v19, %s5282_s29 }
 0x1db   :  { %v907_v29 = vmax.f32 %v864_v21, 0.0  ;;  %v581_v31 = vpop.permute.xlu1 %580  ;;  %v1006_v14 = vld [vmem:[#allocation2 + $0x2c] sm:$0xff] }
 0x1dc   :  { %959 = vst.msk [vmem:[#allocation2 + $0x38] sm:$0xff] %vm946_vm3, %v905_v25  ;;  %v5963_v37 = vmax.f32 %v5756_v27, %v581_v31  ;;  %v742_v12 = vpop.permute.xlu0 %741  ;;  %1049 = vst.msk [vmem:[#allocation3 + $0x50] sm:$0xff] %vm946_vm3, %v1006_v14  ;;  %v2127_v47 = vld [vmem:[#allocation2 + $0x2a] sm:$0xff] }
 0x1dd   :  { %961 = vst.msk [vmem:[#allocation2 + $0x48] sm:$0xff] %vm946_vm3, %v907_v29  ;;  %v865_v1 = vmax.f32 %v5775_v39, %v742_v12  ;;  %1441 = vrot.lane.b32.xlu0 %v1867_v42, %s5278_s20  ;;  %v1608_v27 = vld [vmem:[#allocation2 + $0x2e] sm:$0xff] }
 0x1de   :  { %795 = vrot.lane.b32.xlu1 %v5963_v37, %s5280_s27  ;;  %v1868_v24 = vld [vmem:[#allocation2 + $0x30] sm:$0xff] }
 0x1df   :  { %v908_v33 = vmax.f32 %v865_v1, 0.0  ;;  %v583_v45 = vpop.permute.xlu1 %582  ;;  %v2994_v31 = vld [vmem:[%s7722_s1 + $0x30] sm:$0xff] }
 0x1e1   :  { %962 = vst.msk [vmem:[#allocation2 + $0x50] sm:$0xff] %vm946_vm3, %v908_v33  ;;  %2213 = vrot.lane.b32.xlu0 %v2127_v47, %s5283_s30 }
 0x1e2   :  { %1695 = vrot.lane.b32.xlu1 %v1608_v27, %s5282_s29 }
 0x1e3   :  { %v5974_v3 = vpop.permute.xlu1 %584  ;;  %v1609_v39 = vld [vmem:[#allocation2 + $0x36] sm:$0xff] }
 0x1e4   :  { %v746_v8 = vpop.permute.xlu0 %745  ;;  %v1007_v40 = vld [vmem:[#allocation2 + $0x34] sm:$0xff]  ;;  %v1008_v42 = vld [vmem:[#allocation2 + $0x3c] sm:$0xff]  ;;  %v1009_v44 = vld [vmem:[#allocation2 + $0x44] sm:$0xff] }
 0x1e5   :  { %v867_v53 = vmax.f32 %v5788_v20, %v746_v8  ;;  %1697 = vrot.lane.b32.xlu0 %v1609_v39, %s5282_s29  ;;  %1050 = vst.msk [vmem:[#allocation3 + $0x60] sm:$0xff] %vm946_vm3, %v1007_v40  ;;  %1051 = vst.msk [vmem:[#allocation3 + $0x70] sm:$0xff] %vm946_vm3, %v1008_v42  ;;  %v1869_v46 = vld [vmem:[#allocation2 + $0x38] sm:$0xff]  ;;  %v2997_v42 = vld [vmem:[%s7722_s1 + $0x48] sm:$0xff] }
 0x1e6   :  { %1955 = vrot.lane.b32.xlu1 %v1868_v24, %s5281_s28  ;;  %1052 = vst.msk [vmem:[#allocation3 + $0x80] sm:$0xff] %vm946_vm3, %v1009_v44  ;;  %v2128_v40 = vld [vmem:[#allocation2 + $0x32] sm:$0xff] }
 0x1e7   :  { %v910_v13 = vmax.f32 %v867_v53, 0.0  ;;  %v5980_v10 = vpop.permute.xlu1 %586  ;;  %v2129_v53 = vld [vmem:[#allocation2 + $0x3a] sm:$0xff]  ;;  %v2998_v44 = vld [vmem:[%s7722_s1 + $0x50] sm:$0xff] }
 0x1e8   :  { %v748_v28 = vpop.permute.xlu0 %747  ;;  %v2907_v20 = vld [vmem:[#allocation2 + $0x4c] sm:$0xff] }
 0x1e9   :  { %964 = vst.msk [vmem:[#allocation2 + $0x60] sm:$0xff] %vm946_vm3, %v910_v13  ;;  %v868_v17 = vmax.f32 %v5797_v55, %v748_v28  ;;  %1957 = vrot.lane.b32.xlu0 %v1869_v46, %s5281_s28  ;;  %2950 = vst.msk [vmem:[#allocation3 + $0x8] sm:$0xff] %vm946_vm3, %v2907_v20  ;;  %v2993_v55 = vld [vmem:[%s7722_s1 + $0x28] sm:$0xff]  ;;  %v5095_v13 = vpack.c.bf16 %v2998_v44, %v2997_v42 }
 0x1ea   :  { %1053 = vst.msk [vmem:[#allocation3 + $0x90] sm:$0xff] %vm946_vm3, %v2907_v20  ;;  %1183 = vrot.lane.b32.xlu1 %v1608_v27, %s5277_s19  ;;  %v5089_v14 = vpack.c.bf16 %v2994_v31, %v2993_v55  ;;  %v2995_v27 = vld [vmem:[%s7722_s1 + $0x38] sm:$0xff] }
 0x1eb   :  { %v911_v19 = vmax.f32 %v868_v17, 0.0  ;;  %v744_v21 = vpop.permute.xlu1 %743  ;;  %v6033_v17 = vmax.f32 %v5777_v41, %v5974_v3  ;;  %v3000_v41 = vld [vmem:[%s7722_s1 + $0x60] sm:$0xff] }
 0x1ec   :  { %v866_v25 = vmax.f32 %v5806_v59, %v744_v21  ;;  %v5991_v29 = vpop.permute.xlu0 %592  ;;  %v6003_v59 = vmax.f32 %v5768_v35, %v583_v45  ;;  %5090 = vmatpush1.bf16.msra.mxu1 %v5089_v14  ;;  %v2996_v35 = vld [vmem:[%s7722_s1 + $0x40] sm:$0xff] }
 0x1ed   :  { %965 = vst.msk [vmem:[#allocation2 + $0x68] sm:$0xff] %vm946_vm3, %v911_v19  ;;  %1185 = vrot.lane.b32.xlu0 %v1609_v39, %s5277_s19  ;;  %5091 = vmatprep.subr.bf16.mxu1 %v5274_v0  ;;  %v5092_v45 = vpack.c.bf16 %v2996_v35, %v2995_v27  ;;  %v1094_v21 = vld [vmem:[#allocation2 + $0x3e] sm:$0xff]  ;;  %v3002_v27 = vld [vmem:[%s7722_s1 + $0x70] sm:$0xff] }
 0x1ee   :  { %v909_v12 = vmax.f32 %v866_v25, 0.0  ;;  %1443 = vrot.lane.b32.xlu1 %v1868_v24, %s5278_s20  ;;  %v2999_v25 = vld [vmem:[%s7722_s1 + $0x58] sm:$0xff] }
 0x1ef   :  { %v5098_v3 = vpack.c.bf16 %v3000_v41, %v2999_v25  ;;  %v589_v25 = vpop.permute.xlu1 %588 }
 0x1f0   :  { %963 = vst.msk [vmem:[#allocation2 + $0x58] sm:$0xff] %vm946_vm3, %v909_v12  ;;  %v750_v1 = vpop.permute.xlu0 %749  ;;  %v3013_v33 = vld [vmem:[#allocation3 + $0x8] sm:$0xff]  ;;  %5093 = vmatpush1.bf16.msra.mxu1 %v5092_v45 }
 0x1f1   :  { %v869_v47 = vmax.f32 %v5815_v2, %v750_v1  ;;  %4641 = vmatprep.mubr.msk.f32.mxu1 %vm946_vm3, %v3013_v33  ;;  %1445 = vrot.lane.b32.xlu0 %v1869_v46, %s5278_s20  ;;  %v1354_v1 = vld [vmem:[#allocation2 + $0x40] sm:$0xff] }
 0x1f2   :  { %797 = vrot.lane.b32.xlu1 %v6003_v59, %s5280_s27  ;;  %5094 = vmatprep.subr.bf16.mxu1 %v5274_v0 }
 0x1f3   :  { %v912_v39 = vmax.f32 %v869_v47, 0.0  ;;  %v3001_v47 = vld [vmem:[%s7722_s1 + $0x68] sm:$0xff] }
 0x1f4   :  { %v2910_v2 = vld [vmem:[#allocation2 + $0x64] sm:$0xff]  ;;  %v752_v8 = vpop.permute.xlu0 %751  ;;  %5096 = vmatpush1.bf16.msra.mxu1 %v5095_v13  ;;  %v5101_v35 = vpack.c.bf16 %v3002_v27, %v3001_v47 }
 0x1f5   :  { %2953 = vst.msk [vmem:[#allocation3 + $0x38] sm:$0xff] %vm946_vm3, %v2910_v2  ;;  %966 = vst.msk [vmem:[#allocation2 + $0x70] sm:$0xff] %vm946_vm3, %v912_v39  ;;  %v870_v24 = vmax.f32 %v5824_v9, %v752_v8  ;;  %2217 = vrot.lane.b32.xlu0 %v2129_v53, %s5283_s30  ;;  %v1013_v28 = vld [vmem:[#allocation2 + $0x64] sm:$0xff]  ;;  %5097 = vmatprep.subr.bf16.mxu1 %v5274_v0 }
 0x1f6   :  { %2215 = vrot.lane.b32.xlu1 %v2128_v40, %s5283_s30  ;;  %1056 = vst.msk [vmem:[#allocation3 + $0xc0] sm:$0xff] %vm946_vm3, %v1013_v28  ;;  %v2387_v8 = vld [vmem:[#allocation2 + $0x48] sm:$0xff]  ;;  %v3004_v40 = vld [vmem:[%s7722_s1 + $0x80] sm:$0xff] }
 0x1f7   :  { %v2908_v46 = vld [vmem:[#allocation2 + $0x54] sm:$0xff]  ;;  %v2909_v20 = vld [vmem:[#allocation2 + $0x5c] sm:$0xff]  ;;  %v913_v9 = vmax.f32 %v870_v24, 0.0 }
 0x1f8   :  { %2951 = vst.msk [vmem:[#allocation3 + $0x18] sm:$0xff] %vm946_vm3, %v2908_v46  ;;  %2952 = vst.msk [vmem:[#allocation3 + $0x28] sm:$0xff] %vm946_vm3, %v2909_v20  ;;  %v6037_v19 = vpop.permute.xlu0 %596  ;;  %v1011_v55 = vld [vmem:[#allocation2 + $0x54] sm:$0xff]  ;;  %v1012_v31 = vld [vmem:[#allocation2 + $0x5c] sm:$0xff]  ;;  %5099 = vmatpush1.bf16.msra.mxu1 %v5098_v3 }
 0x1f9   :  { %967 = vst.msk [vmem:[#allocation2 + $0x78] sm:$0xff] %vm946_vm3, %v913_v9  ;;  %1187 = vrot.lane.b32.xlu0 %v1094_v21, %s5277_s19  ;;  %1054 = vst.msk [vmem:[#allocation3 + $0xa0] sm:$0xff] %vm946_vm3, %v1011_v55  ;;  %5100 = vmatprep.subr.bf16.mxu1 %v5274_v0  ;;  %v3003_v24 = vld [vmem:[%s7722_s1 + $0x78] sm:$0xff]  ;;  %v1611_v46 = vld [vmem:[#allocation2 + $0x46] sm:$0xff] }
 0x1fa   :  { %799 = vrot.lane.b32.xlu1 %v6033_v17, %s5280_s27  ;;  %1055 = vst.msk [vmem:[#allocation3 + $0xb0] sm:$0xff] %vm946_vm3, %v1012_v31  ;;  %v5104_v42 = vpack.c.bf16 %v3004_v40, %v3003_v24  ;;  %v3005_v20 = vld [vmem:[%s7722_s1 + $0x88] sm:$0xff]  ;;  %v3006_v9 = vld [vmem:[%s7722_s1 + $0x90] sm:$0xff]  ;;  %v3007_v55 = vld [vmem:[%s7722_s1 + $0x98] sm:$0xff]  ;;  %v591_v40 = vpop.permute.xlu1 %590 }
 0x1fb   :  { %v2130_v3 = vld [vmem:[#allocation2 + $0x42] sm:$0xff] }
 0x1fc   :  { %v2911_v12 = vld [vmem:[#allocation2 + $0x6c] sm:$0xff]  ;;  %v754_v14 = vpop.permute.xlu0 %753  ;;  %5102 = vmatpush1.bf16.msra.mxu1 %v5101_v35  ;;  %v3008_v31 = vld [vmem:[%s7722_s1 + $0xa0] sm:$0xff] }
 0x1fd   :  { %2954 = vst.msk [vmem:[#allocation3 + $0x48] sm:$0xff] %vm946_vm3, %v2911_v12  ;;  %v871_v33 = vmax.f32 %v5839_v30, %v754_v14  ;;  %1447 = vrot.lane.b32.xlu0 %v1354_v1, %s5278_s20  ;;  %v1014_v45 = vld [vmem:[#allocation2 + $0x6c] sm:$0xff]  ;;  %5103 = vmatprep.subr.bf16.mxu1 %v5274_v0  ;;  %v5110_v12 = vpack.c.bf16 %v3008_v31, %v3007_v55 }
 0x1fe   :  { %1699 = vrot.lane.b32.xlu1 %v1094_v21, %s5282_s29  ;;  %1057 = vst.msk [vmem:[#allocation3 + $0xd0] sm:$0xff] %vm946_vm3, %v1014_v45  ;;  %v3009_v35 = vld [vmem:[%s7722_s1 + $0xa8] sm:$0xff] }
 0x1ff   :  { %v914_v39 = vmax.f32 %v871_v33, 0.0 }
 0x200   :  { %v2912_v30 = vld [vmem:[#allocation2 + $0x74] sm:$0xff]  ;;  %v756_v2 = vpop.permute.xlu0 %755  ;;  %5105 = vmatpush1.bf16.msra.mxu1 %v5104_v42 }
 0x201   :  { %2955 = vst.msk [vmem:[#allocation3 + $0x58] sm:$0xff] %vm946_vm3, %v2912_v30  ;;  %968 = vst.msk [vmem:[#allocation2 + $0x80] sm:$0xff] %vm946_vm3, %v914_v39  ;;  %v872_v53 = vmax.f32 %v5848_v16, %v756_v2  ;;  %2473 = vrot.lane.b32.xlu0 %v2387_v8, %s5280_s27  ;;  %v1015_v44 = vld [vmem:[#allocation2 + $0x74] sm:$0xff]  ;;  %v6079_v16 = vmax.f32 %v5783_v43, %v5980_v10  ;;  %5106 = vmatprep.subr.bf16.mxu1 %v5274_v0 }
 0x202   :  { %1959 = vrot.lane.b32.xlu1 %v1354_v1, %s5281_s28  ;;  %1058 = vst.msk [vmem:[#allocation3 + $0xe0] sm:$0xff] %vm946_vm3, %v1015_v44  ;;  %v5107_v43 = vpack.c.bf16 %v3006_v9, %v3005_v20  ;;  %v1612_v20 = vld [vmem:[#allocation2 + $0x4e] sm:$0xff] }
 0x203   :  { %v915_v13 = vmax.f32 %v872_v53, 0.0  ;;  %v2388_v53 = vld [vmem:[#allocation2 + $0x50] sm:$0xff] }
 0x204   :  { %v6081_v28 = vpop.permute.xlu0 %600  ;;  %5108 = vmatpush1.bf16.msra.mxu1 %v5107_v43 }
 0x205   :  { %969 = vst.msk [vmem:[#allocation2 + $0x88] sm:$0xff] %vm946_vm3, %v915_v13  ;;  %1701 = vrot.lane.b32.xlu0 %v1611_v46, %s5282_s29  ;;  %5109 = vmatprep.subr.bf16.mxu1 %v5274_v0  ;;  %v2647_v13 = vld [vmem:[#allocation2 + $0x4a] sm:$0xff] }
 0x206   :  { %801 = vrot.lane.b32.xlu1 %v6079_v16, %s5280_s27 }
 0x208   :  { %v2913_v10 = vld [vmem:[#allocation2 + $0x7c] sm:$0xff]  ;;  %v758_v21 = vpop.permute.xlu0 %757  ;;  %5111 = vmatpush1.bf16.msra.mxu1 %v5110_v12 }
 0x209   :  { %2956 = vst.msk [vmem:[#allocation3 + $0x68] sm:$0xff] %vm946_vm3, %v2913_v10  ;;  %v873_v41 = vmax.f32 %v5855_v32, %v758_v21  ;;  %1961 = vrot.lane.b32.xlu0 %v2387_v8, %s5281_s28  ;;  %v1016_v14 = vld [vmem:[#allocation2 + $0x7c] sm:$0xff]  ;;  %v6107_v32 = vmax.f32 %v5790_v49, %v589_v25  ;;  %5112 = vmatprep.subr.bf16.mxu1 %v5274_v0  ;;  %v3010_v49 = vld [vmem:[%s7722_s1 + $0xb0] sm:$0xff]  ;;  %v6137_v21 = vpop.permute.xlu1 %594 }
 0x20a   :  { %2219 = vrot.lane.b32.xlu1 %v2130_v3, %s5283_s30  ;;  %1059 = vst.msk [vmem:[#allocation3 + $0xf0] sm:$0xff] %vm946_vm3, %v1016_v14  ;;  %v5113_v45 = vpack.c.bf16 %v3010_v49, %v3009_v35 }
 0x20b   :  { %v916_v1 = vmax.f32 %v873_v41, 0.0  ;;  %v6142_v41 = vmax.f32 %v5799_v57, %v591_v40 }
 0x20c   :  { %v2914_v33 = vld [vmem:[#allocation2 + $0x84] sm:$0xff]  ;;  %v760_v47 = vpop.permute.xlu0 %759  ;;  %5114 = vmatpush1.bf16.msra.mxu1 %v5113_v45 }
 0x20d   :  { %2957 = vst.msk [vmem:[#allocation3 + $0x78] sm:$0xff] %vm946_vm3, %v2914_v33  ;;  %970 = vst.msk [vmem:[#allocation2 + $0x90] sm:$0xff] %vm946_vm3, %v916_v1  ;;  %v874_v27 = vmax.f32 %v5860_v18, %v760_v47  ;;  %1189 = vrot.lane.b32.xlu0 %v1611_v46, %s5277_s19  ;;  %v1017_v39 = vld [vmem:[#allocation2 + $0x84] sm:$0xff]  ;;  %v6151_v14 = vpop.permute.xlu1 %598 }
 0x20e   :  { %803 = vrot.lane.b32.xlu1 %v6107_v32, %s5280_s27  ;;  %1060 = vst.msk [vmem:[#allocation3 + $0x100] sm:$0xff] %vm946_vm3, %v1017_v39  ;;  %v2389_v39 = vld [vmem:[#allocation2 + $0x58] sm:$0xff] }
 0x20f   :  { %v917_v30 = vmax.f32 %v874_v27, 0.0 }
 0x210   :  { %v762_v18 = vpop.permute.xlu0 %761 }
 0x211   :  { %971 = vst.msk [vmem:[#allocation2 + $0x98] sm:$0xff] %vm946_vm3, %v917_v30  ;;  %v875_v2 = vmax.f32 %v5865_v34, %v762_v18  ;;  %1449 = vrot.lane.b32.xlu0 %v2387_v8, %s5278_s20 }
 0x212   :  { %2475 = vrot.lane.b32.xlu1 %v2388_v53, %s5280_s27 }
 0x213   :  { %v918_v24 = vmax.f32 %v875_v2, 0.0 }
 0x214   :  { %v2915_v42 = vld [vmem:[#allocation2 + $0x8c] sm:$0xff]  ;;  %v764_v44 = vpop.permute.xlu0 %763 }
 0x215   :  { %2958 = vst.msk [vmem:[#allocation3 + $0x88] sm:$0xff] %vm946_vm3, %v2915_v42  ;;  %972 = vst.msk [vmem:[#allocation2 + $0xa0] sm:$0xff] %vm946_vm3, %v918_v24  ;;  %v876_v46 = vmax.f32 %v5870_v36, %v764_v44  ;;  %2733 = vrot.lane.b32.xlu0 %v2647_v13, %s5279_s0  ;;  %v1018_v34 = vld [vmem:[#allocation2 + $0x8c] sm:$0xff]  ;;  %v6168_v24 = vmax.f32 %v5808_v61, %v5991_v29  ;;  %v1613_v44 = vld [vmem:[#allocation2 + $0x56] sm:$0xff] }
 0x216   :  { %1703 = vrot.lane.b32.xlu1 %v1612_v20, %s5282_s29  ;;  %1061 = vst.msk [vmem:[#allocation3 + $0x110] sm:$0xff] %vm946_vm3, %v1018_v34  ;;  %v6183_v34 = vld [vmem:[#allocation2 + $0x60] sm:$0xff] }
 0x217   :  { %v919_v8 = vmax.f32 %v876_v46, 0.0 }
 0x218   :  { %v2916_v9 = vld [vmem:[#allocation2 + $0x94] sm:$0xff]  ;;  %v766_v43 = vpop.permute.xlu0 %765 }
 0x219   :  { %2959 = vst.msk [vmem:[#allocation3 + $0x98] sm:$0xff] %vm946_vm3, %v2916_v9  ;;  %973 = vst.msk [vmem:[#allocation2 + $0xa8] sm:$0xff] %vm946_vm3, %v919_v8  ;;  %v877_v10 = vmax.f32 %v5875_v38, %v766_v43  ;;  %2221 = vrot.lane.b32.xlu0 %v2647_v13, %s5283_s30  ;;  %v1019_v36 = vld [vmem:[#allocation2 + $0x94] sm:$0xff] }
 0x21a   :  { %1963 = vrot.lane.b32.xlu1 %v2388_v53, %s5281_s28  ;;  %1062 = vst.msk [vmem:[#allocation3 + $0x120] sm:$0xff] %vm946_vm3, %v1019_v36 }
 0x21b   :  { %v920_v25 = vmax.f32 %v877_v10, 0.0 }
 0x21c   :  { %v2917_v3 = vld [vmem:[#allocation2 + $0x9c] sm:$0xff]  ;;  %v768_v55 = vpop.permute.xlu0 %767 }
 0x21d   :  { %2960 = vst.msk [vmem:[#allocation3 + $0xa8] sm:$0xff] %vm946_vm3, %v2917_v3  ;;  %974 = vst.msk [vmem:[#allocation2 + $0xb0] sm:$0xff] %vm946_vm3, %v920_v25  ;;  %v878_v38 = vmax.f32 %v5880_v63, %v768_v55  ;;  %1191 = vrot.lane.b32.xlu0 %v1612_v20, %s5277_s19  ;;  %v1020_v31 = vld [vmem:[#allocation2 + $0x9c] sm:$0xff]  ;;  %v2648_v63 = vld [vmem:[#allocation2 + $0x52] sm:$0xff]  ;;  %v6197_v55 = vmax.f32 %v5817_v5, %v6137_v21 }
 0x21e   :  { %805 = vrot.lane.b32.xlu1 %v6142_v41, %s5280_s27  ;;  %1063 = vst.msk [vmem:[#allocation3 + $0x130] sm:$0xff] %vm946_vm3, %v1020_v31 }
 0x21f   :  { %v921_v12 = vmax.f32 %v878_v38, 0.0 }
 0x220   :  { %v2918_v57 = vld [vmem:[#allocation2 + $0xa4] sm:$0xff]  ;;  %v770_v1 = vpop.permute.xlu0 %769 }
 0x221   :  { %2961 = vst.msk [vmem:[#allocation3 + $0xb8] sm:$0xff] %vm946_vm3, %v2918_v57  ;;  %975 = vst.msk [vmem:[#allocation2 + $0xb8] sm:$0xff] %vm946_vm3, %v921_v12  ;;  %v879_v33 = vmax.f32 %v5885_v26, %v770_v1  ;;  %1451 = vrot.lane.b32.xlu0 %v2388_v53, %s5278_s20  ;;  %v1021_v47 = vld [vmem:[#allocation2 + $0xa4] sm:$0xff] }
 0x222   :  { %2735 = vrot.lane.b32.xlu1 %v2648_v63, %s5279_s0  ;;  %1064 = vst.msk [vmem:[#allocation3 + $0x140] sm:$0xff] %vm946_vm3, %v1021_v47 }
 0x223   :  { %v922_v27 = vmax.f32 %v879_v33, 0.0 }
 0x224   :  { %v2919_v35 = vld [vmem:[#allocation2 + $0xac] sm:$0xff]  ;;  %v778_v49 = vpop.permute.xlu1 %777  ;;  %v772_v45 = vpop.permute.xlu0 %771 }
 0x225   :  { %2962 = vst.msk [vmem:[#allocation3 + $0xc8] sm:$0xff] %vm946_vm3, %v2919_v35  ;;  %976 = vst.msk [vmem:[#allocation2 + $0xc0] sm:$0xff] %vm946_vm3, %v922_v27  ;;  %v883_v30 = vmax.f32 %v5893_v22, %v778_v49  ;;  %v880_v26 = vmax.f32 %v5890_v6, %v772_v45  ;;  %2477 = vrot.lane.b32.xlu0 %v2389_v39, %s5280_s27  ;;  %v1022_v18 = vld [vmem:[#allocation2 + $0xac] sm:$0xff] }
 0x226   :  { %2223 = vrot.lane.b32.xlu1 %v2648_v63, %s5283_s30  ;;  %1065 = vst.msk [vmem:[#allocation3 + $0x150] sm:$0xff] %vm946_vm3, %v1022_v18 }
 0x227   :  { %v926_v2 = vmax.f32 %v883_v30, 0.0  ;;  %v923_v53 = vmax.f32 %v880_v26, 0.0  ;;  %v1614_v26 = vld [vmem:[#allocation2 + $0x5e] sm:$0xff] }
 0x228   :  { %v2920_v40 = vld [vmem:[#allocation2 + $0xb4] sm:$0xff]  ;;  %v774_v42 = vpop.permute.xlu0 %773 }
 0x229   :  { %2963 = vst.msk [vmem:[#allocation3 + $0xd8] sm:$0xff] %vm946_vm3, %v2920_v40  ;;  %980 = vst.msk [vmem:[#allocation2 + $0xe0] sm:$0xff] %vm946_vm3, %v926_v2  ;;  %v881_v6 = vmax.f32 %v5900_v48, %v774_v42  ;;  %1705 = vrot.lane.b32.xlu0 %v1613_v44, %s5282_s29  ;;  %v1023_v22 = vld [vmem:[#allocation2 + $0xb4] sm:$0xff]  ;;  %v6225_v40 = vmax.f32 %v5826_v11, %v6037_v19 }
 0x22a   :  { %977 = vst.msk [vmem:[#allocation2 + $0xc8] sm:$0xff] %vm946_vm3, %v923_v53  ;;  %807 = vrot.lane.b32.xlu1 %v6168_v24, %s5280_s27  ;;  %1066 = vst.msk [vmem:[#allocation3 + $0x160] sm:$0xff] %vm946_vm3, %v1023_v22 }
 0x22b   :  { %v924_v61 = vmax.f32 %v881_v6, 0.0 }
 0x22c   :  { %v2921_v29 = vld [vmem:[#allocation2 + $0xbc] sm:$0xff]  ;;  %v782_v13 = vpop.permute.xlu1 %781  ;;  %v776_v46 = vpop.permute.xlu0 %775 }
 0x22d   :  { %2964 = vst.msk [vmem:[#allocation3 + $0xe8] sm:$0xff] %vm946_vm3, %v2921_v29  ;;  %978 = vst.msk [vmem:[#allocation2 + $0xd0] sm:$0xff] %vm946_vm3, %v924_v61  ;;  %v885_v20 = vmax.f32 %v5908_v56, %v782_v13  ;;  %v882_v48 = vmax.f32 %v5905_v50, %v776_v46  ;;  %1965 = vrot.lane.b32.xlu0 %v2389_v39, %s5281_s28  ;;  %v1024_v8 = vld [vmem:[#allocation2 + $0xbc] sm:$0xff] }
 0x22e   :  { %2479 = vrot.lane.b32.xlu1 %v6183_v34, %s5280_s27  ;;  %1067 = vst.msk [vmem:[#allocation3 + $0x170] sm:$0xff] %vm946_vm3, %v1024_v8  ;;  %v2133_v56 = vld [vmem:[#allocation2 + $0x5a] sm:$0xff]  ;;  %v6250_v8 = vld [vmem:[#allocation2 + $0x6a] sm:$0xff] }
 0x22f   :  { %v928_v9 = vmax.f32 %v885_v20, 0.0  ;;  %v925_v43 = vmax.f32 %v882_v48, 0.0 }
 0x230   :  { %v780_v36 = vpop.permute.xlu0 %779 }
 0x231   :  { %v2922_v10 = vld [vmem:[#allocation2 + $0xc4] sm:$0xff]  ;;  %982 = vst.msk [vmem:[#allocation2 + $0xf0] sm:$0xff] %vm946_vm3, %v928_v9  ;;  %979 = vst.msk [vmem:[#allocation2 + $0xd8] sm:$0xff] %vm946_vm3, %v925_v43  ;;  %v884_v50 = vmax.f32 %v5915_v52, %v780_v36  ;;  %1193 = vrot.lane.b32.xlu0 %v1613_v44, %s5277_s19  ;;  %v6257_v36 = vmax.f32 %v5832_v15, %v6151_v14 }
 0x232   :  { %2965 = vst.msk [vmem:[#allocation3 + $0xf8] sm:$0xff] %vm946_vm3, %v2922_v10  ;;  %2225 = vrot.lane.b32.xlu1 %v2133_v56, %s5283_s30  ;;  %v1025_v25 = vld [vmem:[#allocation2 + $0xc4] sm:$0xff] }
 0x233   :  { %v927_v3 = vmax.f32 %v884_v50, 0.0  ;;  %1068 = vst.msk [vmem:[#allocation3 + $0x180] sm:$0xff] %vm946_vm3, %v1025_v25  ;;  %v2391_v50 = vld [vmem:[#allocation2 + $0x68] sm:$0xff] }
 0x234   :  { %v2923_v38 = vld [vmem:[#allocation2 + $0xcc] sm:$0xff]  ;;  %v786_v31 = vpop.permute.xlu1 %785  ;;  %v784_v12 = vpop.permute.xlu0 %783 }
 0x235   :  { %2966 = vst.msk [vmem:[#allocation3 + $0x108] sm:$0xff] %vm946_vm3, %v2923_v38  ;;  %981 = vst.msk [vmem:[#allocation2 + $0xe8] sm:$0xff] %vm946_vm3, %v927_v3  ;;  %v887_v52 = vmax.f32 %v5923_v60, %v786_v31  ;;  %v886_v57 = vmax.f32 %v5920_v54, %v784_v12  ;;  %1453 = vrot.lane.b32.xlu0 %v2389_v39, %s5278_s20  ;;  %v1026_v1 = vld [vmem:[#allocation2 + $0xcc] sm:$0xff]  ;;  %v2650_v60 = vld [vmem:[#allocation2 + $0x62] sm:$0xff] }
 0x236   :  { %809 = vrot.lane.b32.xlu1 %v6197_v55, %s5280_s27  ;;  %1069 = vst.msk [vmem:[#allocation3 + $0x190] sm:$0xff] %vm946_vm3, %v1026_v1  ;;  %v1615_v25 = vld [vmem:[#allocation2 + $0x66] sm:$0xff]  ;;  %v2949_v3 = vld [vmem:[#allocation2 + $0x19c] sm:$0xf]  ;;  %v2652_v31 = vld [vmem:[#allocation2 + $0x72] sm:$0xff] }
 0x237   :  { %v930_v5 = vmax.f32 %v887_v52, 0.0  ;;  %v929_v21 = vmax.f32 %v886_v57, 0.0  ;;  %2992 = vst.msk [vmem:[#allocation3 + $0x2a8] sm:$0xf] %vm999_vm8, %v2949_v3 }
 0x238   :  { %v2924_v33 = vld [vmem:[#allocation2 + $0xd4] sm:$0xff]  ;;  %v2925_v63 = vld [vmem:[#allocation2 + $0xdc] sm:$0xff]  ;;  %v788_v47 = vpop.permute.xlu1 %787 }
 0x239   :  { %2967 = vst.msk [vmem:[#allocation3 + $0x118] sm:$0xff] %vm946_vm3, %v2924_v33  ;;  %2968 = vst.msk [vmem:[#allocation3 + $0x128] sm:$0xff] %vm946_vm3, %v2925_v63  ;;  %v888_v54 = vmax.f32 %v5930_v58, %v788_v47  ;;  %2737 = vrot.lane.b32.xlu0 %v2133_v56, %s5279_s0  ;;  %v1027_v35 = vld [vmem:[#allocation2 + $0xd4] sm:$0xff]  ;;  %v1028_v49 = vld [vmem:[#allocation2 + $0xdc] sm:$0xff]  ;;  %v6289_v47 = vmax.f32 %v5841_v23, %v6081_v28 }
 0x23a   :  { %984 = vst.msk [vmem:[#allocation2 + $0x100] sm:$0xff] %vm946_vm3, %v930_v5  ;;  %983 = vst.msk [vmem:[#allocation2 + $0xf8] sm:$0xff] %vm946_vm3, %v929_v21  ;;  %2739 = vrot.lane.b32.xlu1 %v2650_v60, %s5279_s0  ;;  %v2653_v28 = vld [vmem:[#allocation2 + $0x7a] sm:$0xff] }
 0x23b   :  { %v931_v27 = vmax.f32 %v888_v54, 0.0  ;;  %1070 = vst.msk [vmem:[#allocation3 + $0x1a0] sm:$0xff] %vm946_vm3, %v1027_v35  ;;  %1071 = vst.msk [vmem:[#allocation3 + $0x1b0] sm:$0xff] %vm946_vm3, %v1028_v49 }
 0x23c   :  { %v2926_v45 = vld [vmem:[#allocation2 + $0xe4] sm:$0xff]  ;;  %v2927_v39 = vld [vmem:[#allocation2 + $0xec] sm:$0xff]  ;;  %v790_v30 = vpop.permute.xlu1 %789 }
 0x23d   :  { %2969 = vst.msk [vmem:[#allocation3 + $0x138] sm:$0xff] %vm946_vm3, %v2926_v45  ;;  %2970 = vst.msk [vmem:[#allocation3 + $0x148] sm:$0xff] %vm946_vm3, %v2927_v39  ;;  %v889_v58 = vmax.f32 %v5935_v62, %v790_v30  ;;  %1707 = vrot.lane.b32.xlu0 %v1614_v26, %s5282_s29  ;;  %v1029_v18 = vld [vmem:[#allocation2 + $0xe4] sm:$0xff]  ;;  %v1030_v53 = vld [vmem:[#allocation2 + $0xec] sm:$0xff] }
 0x23e   :  { %985 = vst.msk [vmem:[#allocation2 + $0x108] sm:$0xff] %vm946_vm3, %v931_v27  ;;  %2227 = vrot.lane.b32.xlu1 %v2650_v60, %s5283_s30  ;;  %1072 = vst.msk [vmem:[#allocation3 + $0x1c0] sm:$0xff] %vm946_vm3, %v1029_v18  ;;  %v1616_v39 = vld [vmem:[#allocation2 + $0x6e] sm:$0xff] }
 0x23f   :  { %v932_v2 = vmax.f32 %v889_v58, 0.0  ;;  %1073 = vst.msk [vmem:[#allocation3 + $0x1d0] sm:$0xff] %vm946_vm3, %v1030_v53 }
 0x240   :  { %v792_v6 = vpop.permute.xlu1 %791 }
 0x241   :  { %v2928_v42 = vld [vmem:[#allocation2 + $0xf4] sm:$0xff]  ;;  %v2929_v44 = vld [vmem:[#allocation2 + $0xfc] sm:$0xff]  ;;  %986 = vst.msk [vmem:[#allocation2 + $0x110] sm:$0xff] %vm946_vm3, %v932_v2  ;;  %v890_v62 = vmax.f32 %v5941_v51, %v792_v6  ;;  %1967 = vrot.lane.b32.xlu0 %v6183_v34, %s5281_s28 }
 0x242   :  { %2971 = vst.msk [vmem:[#allocation3 + $0x158] sm:$0xff] %vm946_vm3, %v2928_v42  ;;  %2972 = vst.msk [vmem:[#allocation3 + $0x168] sm:$0xff] %vm946_vm3, %v2929_v44  ;;  %811 = vrot.lane.b32.xlu1 %v6225_v40, %s5280_s27  ;;  %v1031_v19 = vld [vmem:[#allocation2 + $0xf4] sm:$0xff]  ;;  %v1032_v22 = vld [vmem:[#allocation2 + $0xfc] sm:$0xff] }
 0x243   :  { %v933_v11 = vmax.f32 %v890_v62, 0.0  ;;  %1074 = vst.msk [vmem:[#allocation3 + $0x1e0] sm:$0xff] %vm946_vm3, %v1031_v19  ;;  %1075 = vst.msk [vmem:[#allocation3 + $0x1f0] sm:$0xff] %vm946_vm3, %v1032_v22  ;;  %v6241_v51 = vld [vmem:[#allocation2 + $0x70] sm:$0xff]  ;;  %v2654_v44 = vld [vmem:[#allocation2 + $0x82] sm:$0xff] }
 0x245   :  { %v2930_v61 = vld [vmem:[#allocation2 + $0x104] sm:$0xff]  ;;  %987 = vst.msk [vmem:[#allocation2 + $0x118] sm:$0xff] %vm946_vm3, %v933_v11  ;;  %1195 = vrot.lane.b32.xlu0 %v1614_v26, %s5277_s19 }
 0x246   :  { %2973 = vst.msk [vmem:[#allocation3 + $0x178] sm:$0xff] %vm946_vm3, %v2930_v61  ;;  %2483 = vrot.lane.b32.xlu1 %v6241_v51, %s5280_s27  ;;  %v1033_v29 = vld [vmem:[#allocation2 + $0x104] sm:$0xff] }
 0x247   :  { %v1954_v13 = vpop.permute.xlu0 %1953  ;;  %1076 = vst.msk [vmem:[#allocation3 + $0x200] sm:$0xff] %vm946_vm3, %v1033_v29  ;;  %v6306_v26 = vld [vmem:[#allocation2 + $0x80] sm:$0xff] }
 0x248   :  { %v2931_v46 = vld [vmem:[#allocation2 + $0x10c] sm:$0xff]  ;;  %v794_v20 = vpop.permute.xlu1 %793 }
 0x249   :  { %2974 = vst.msk [vmem:[#allocation3 + $0x188] sm:$0xff] %vm946_vm3, %v2931_v46  ;;  %v891_v48 = vmax.f32 %v5949_v7, %v794_v20  ;;  %1455 = vrot.lane.b32.xlu0 %v6183_v34, %s5278_s20  ;;  %v1034_v9 = vld [vmem:[#allocation2 + $0x10c] sm:$0xff] }
 0x24a   :  { %2229 = vrot.lane.b32.xlu1 %v6250_v8, %s5283_s30  ;;  %1077 = vst.msk [vmem:[#allocation3 + $0x210] sm:$0xff] %vm946_vm3, %v1034_v9 }
 0x24b   :  { %v934_v43 = vmax.f32 %v891_v48, 0.0  ;;  %v1182_v10 = vpop.permute.xlu0 %1181 }
 0x24c   :  { %v2932_v7 = vld [vmem:[#allocation2 + $0x114] sm:$0xff]  ;;  %1307 = vst.msk [vmem:[#allocation3 + $0x40] sm:$0xff] %vm1302_vm4, %v1182_v10  ;;  %v1694_v34 = vpop.permute.xlu1 %1693 }
 0x24d   :  { %2975 = vst.msk [vmem:[#allocation3 + $0x198] sm:$0xff] %vm946_vm3, %v2932_v7  ;;  %988 = vst.msk [vmem:[#allocation2 + $0x120] sm:$0xff] %vm946_vm3, %v934_v43  ;;  %2481 = vrot.lane.b32.xlu0 %v2391_v50, %s5280_s27  ;;  %v1035_v56 = vld [vmem:[#allocation2 + $0x114] sm:$0xff] }
 0x24e   :  { %1823 = vst.msk [vmem:[#allocation3] sm:$0xff] %vm1822_vm6, %v1694_v34  ;;  %813 = vrot.lane.b32.xlu1 %v6257_v36, %s5280_s27 }
 0x24f   :  { %2083 = vst.msk [vmem:[#allocation3] sm:$0xff] %vm2082_vm7, %v1954_v13  ;;  %v1442_v15 = vpop.permute.xlu0 %1441  ;;  %v1617_v13 = vld [vmem:[#allocation2 + $0x76] sm:$0xff] }
 0x250   :  { %1078 = vst.msk [vmem:[#allocation3 + $0x220] sm:$0xff] %vm946_vm3, %v1035_v56  ;;  %v796_v14 = vpop.permute.xlu1 %795 }
 0x251   :  { %1567 = vst.msk [vmem:[#allocation3 + $0x40] sm:$0xff] %vm1562_vm5, %v1442_v15  ;;  %v892_v38 = vmax.f32 %v5963_v37, %v796_v14  ;;  %1709 = vrot.lane.b32.xlu0 %v1615_v25, %s5282_s29  ;;  %v6278_v37 = vld [vmem:[#allocation2 + $0x78] sm:$0xff] }
 0x252   :  { %2743 = vrot.lane.b32.xlu1 %v2652_v31, %s5279_s0 }
 0x253   :  { %v935_v12 = vmax.f32 %v892_v38, 0.0  ;;  %v2214_v52 = vpop.permute.xlu0 %2213  ;;  %v1618_v38 = vld [vmem:[#allocation2 + $0x7e] sm:$0xff] }
 0x254   :  { %v2933_v57 = vld [vmem:[#allocation2 + $0x11c] sm:$0xff]  ;;  %2343 = vst.msk [vmem:[#allocation3] sm:$0xff] %vm2342_vm9, %v2214_v52  ;;  %v1696_v1 = vpop.permute.xlu1 %1695 }
 0x255   :  { %2976 = vst.msk [vmem:[#allocation3 + $0x1a8] sm:$0xff] %vm946_vm3, %v2933_v57  ;;  %989 = vst.msk [vmem:[#allocation2 + $0x128] sm:$0xff] %vm946_vm3, %v935_v12  ;;  %1969 = vrot.lane.b32.xlu0 %v2391_v50, %s5281_s28  ;;  %v1036_v5 = vld [vmem:[#allocation2 + $0x11c] sm:$0xff] }
 0x256   :  { %1824 = vst.msk [vmem:[#allocation3 + $0x10] sm:$0xff] %vm1822_vm6, %v1696_v1  ;;  %2485 = vrot.lane.b32.xlu1 %v6278_v37, %s5280_s27  ;;  %v6366_v57 = vld [vmem:[#allocation2 + $0x98] sm:$0xff] }
 0x257   :  { %1079 = vst.msk [vmem:[#allocation3 + $0x230] sm:$0xff] %vm946_vm3, %v1036_v5  ;;  %v1698_v21 = vpop.permute.xlu0 %1697 }
 0x258   :  { %1825 = vst.msk [vmem:[#allocation3 + $0x20] sm:$0xff] %vm1822_vm6, %v1698_v21  ;;  %v1956_v33 = vpop.permute.xlu1 %1955 }
 0x259   :  { %2084 = vst.msk [vmem:[#allocation3 + $0x10] sm:$0xff] %vm2082_vm7, %v1956_v33  ;;  %1197 = vrot.lane.b32.xlu0 %v1615_v25, %s5277_s19 }
 0x25a   :  { %2231 = vrot.lane.b32.xlu1 %v2652_v31, %s5283_s30 }
 0x25b   :  { %v1958_v63 = vpop.permute.xlu0 %1957 }
 0x25c   :  { %v2934_v54 = vld [vmem:[#allocation2 + $0x124] sm:$0xff]  ;;  %2085 = vst.msk [vmem:[#allocation3 + $0x20] sm:$0xff] %vm2082_vm7, %v1958_v63  ;;  %v1184_v60 = vpop.permute.xlu1 %1183 }
 0x25d   :  { %2977 = vst.msk [vmem:[#allocation3 + $0x1b8] sm:$0xff] %vm946_vm3, %v2934_v54  ;;  %1457 = vrot.lane.b32.xlu0 %v2391_v50, %s5278_s20  ;;  %v1037_v27 = vld [vmem:[#allocation2 + $0x124] sm:$0xff] }
 0x25e   :  { %1308 = vst.msk [vmem:[#allocation3 + $0x50] sm:$0xff] %vm1302_vm4, %v1184_v60  ;;  %815 = vrot.lane.b32.xlu1 %v6289_v47, %s5280_s27  ;;  %v3015_v60 = vld [vmem:[#allocation3 + $0x18] sm:$0xff] }
 0x25f   :  { %1080 = vst.msk [vmem:[#allocation3 + $0x240] sm:$0xff] %vm946_vm3, %v1037_v27  ;;  %v1186_v35 = vpop.permute.xlu0 %1185 }
 0x260   :  { %1309 = vst.msk [vmem:[#allocation3 + $0x60] sm:$0xff] %vm1302_vm4, %v1186_v35  ;;  %v1444_v23 = vpop.permute.xlu1 %1443  ;;  %v2657_v35 = vld [vmem:[#allocation2 + $0x9a] sm:$0xff] }
 0x261   :  { %1568 = vst.msk [vmem:[#allocation3 + $0x50] sm:$0xff] %vm1562_vm5, %v1444_v23  ;;  %2741 = vrot.lane.b32.xlu0 %v6250_v8, %s5279_s0  ;;  %v2655_v8 = vld [vmem:[#allocation2 + $0x8a] sm:$0xff] }
 0x262   :  { %2745 = vrot.lane.b32.xlu1 %v2653_v28, %s5279_s0 }
 0x263   :  { %v1446_v49 = vpop.permute.xlu0 %1445 }
 0x264   :  { %1569 = vst.msk [vmem:[#allocation3 + $0x60] sm:$0xff] %vm1562_vm5, %v1446_v49  ;;  %v798_v45 = vpop.permute.xlu1 %797 }
 0x265   :  { %v893_v30 = vmax.f32 %v6003_v59, %v798_v45  ;;  %1711 = vrot.lane.b32.xlu0 %v1616_v39, %s5282_s29  ;;  %v1619_v45 = vld [vmem:[#allocation2 + $0x86] sm:$0xff] }
 0x266   :  { %2487 = vrot.lane.b32.xlu1 %v6306_v26, %s5280_s27 }
 0x267   :  { %v936_v58 = vmax.f32 %v893_v30, 0.0  ;;  %v2218_v18 = vpop.permute.xlu0 %2217 }
 0x268   :  { %2345 = vst.msk [vmem:[#allocation3 + $0x20] sm:$0xff] %vm2342_vm9, %v2218_v18  ;;  %v2216_v2 = vpop.permute.xlu1 %2215 }
 0x269   :  { %990 = vst.msk [vmem:[#allocation2 + $0x130] sm:$0xff] %vm946_vm3, %v936_v58  ;;  %1971 = vrot.lane.b32.xlu0 %v6241_v51, %s5281_s28 }
 0x26a   :  { %2344 = vst.msk [vmem:[#allocation3 + $0x10] sm:$0xff] %vm2342_vm9, %v2216_v2  ;;  %2233 = vrot.lane.b32.xlu1 %v2653_v28, %s5283_s30 }
 0x26b   :  { %v1188_v59 = vpop.permute.xlu0 %1187 }
 0x26c   :  { %1310 = vst.msk [vmem:[#allocation3 + $0x70] sm:$0xff] %vm1302_vm4, %v1188_v59  ;;  %v800_v53 = vpop.permute.xlu1 %799 }
 0x26d   :  { %v894_v42 = vmax.f32 %v6033_v17, %v800_v53  ;;  %1199 = vrot.lane.b32.xlu0 %v1616_v39, %s5277_s19  ;;  %v6326_v17 = vld [vmem:[#allocation2 + $0x88] sm:$0xff] }
 0x26e   :  { %2747 = vrot.lane.b32.xlu1 %v2654_v44, %s5279_s0  ;;  %v2658_v53 = vld [vmem:[#allocation2 + $0xa2] sm:$0xff] }
 0x26f   :  { %v937_v6 = vmax.f32 %v894_v42, 0.0  ;;  %v1448_v62 = vpop.permute.xlu0 %1447  ;;  %v3017_v42 = vld [vmem:[#allocation3 + $0x28] sm:$0xff] }
 0x270   :  { %v2935_v11 = vld [vmem:[#allocation2 + $0x12c] sm:$0xff]  ;;  %1570 = vst.msk [vmem:[#allocation3 + $0x70] sm:$0xff] %vm1562_vm5, %v1448_v62  ;;  %v1700_v19 = vpop.permute.xlu1 %1699 }
 0x271   :  { %2978 = vst.msk [vmem:[#allocation3 + $0x1c8] sm:$0xff] %vm946_vm3, %v2935_v11  ;;  %991 = vst.msk [vmem:[#allocation2 + $0x138] sm:$0xff] %vm946_vm3, %v937_v6  ;;  %1459 = vrot.lane.b32.xlu0 %v6241_v51, %s5278_s20  ;;  %v1038_v22 = vld [vmem:[#allocation2 + $0x12c] sm:$0xff] }
 0x272   :  { %1826 = vst.msk [vmem:[#allocation3 + $0x30] sm:$0xff] %vm1822_vm6, %v1700_v19  ;;  %2489 = vrot.lane.b32.xlu1 %v6326_v17, %s5280_s27  ;;  %v6408_v19 = vld [vmem:[#allocation2 + $0xa8] sm:$0xff] }
 0x273   :  { %1081 = vst.msk [vmem:[#allocation3 + $0x250] sm:$0xff] %vm946_vm3, %v1038_v22  ;;  %v2474_v61 = vpop.permute.xlu0 %2473 }
 0x274   :  { %2603 = vst.msk [vmem:[#allocation3] sm:$0xff] %vm2602_vm10, %v2474_v61  ;;  %v1960_v29 = vpop.permute.xlu1 %1959 }
 0x275   :  { %2086 = vst.msk [vmem:[#allocation3 + $0x30] sm:$0xff] %vm2082_vm7, %v1960_v29  ;;  %1713 = vrot.lane.b32.xlu0 %v1617_v13, %s5282_s29  ;;  %v1620_v29 = vld [vmem:[#allocation2 + $0x8e] sm:$0xff] }
 0x276   :  { %2235 = vrot.lane.b32.xlu1 %v2654_v44, %s5283_s30 }
 0x277   :  { %v1702_v51 = vpop.permute.xlu0 %1701 }
 0x278   :  { %v2936_v46 = vld [vmem:[#allocation2 + $0x134] sm:$0xff]  ;;  %1827 = vst.msk [vmem:[#allocation3 + $0x40] sm:$0xff] %vm1822_vm6, %v1702_v51  ;;  %v802_v20 = vpop.permute.xlu1 %801 }
 0x279   :  { %2979 = vst.msk [vmem:[#allocation3 + $0x1d8] sm:$0xff] %vm946_vm3, %v2936_v46  ;;  %v895_v48 = vmax.f32 %v6079_v16, %v802_v20  ;;  %1973 = vrot.lane.b32.xlu0 %v6278_v37, %s5281_s28  ;;  %v1039_v9 = vld [vmem:[#allocation2 + $0x134] sm:$0xff]  ;;  %v2659_v20 = vld [vmem:[#allocation2 + $0xaa] sm:$0xff] }
 0x27a   :  { %2749 = vrot.lane.b32.xlu1 %v2655_v8, %s5279_s0  ;;  %1082 = vst.msk [vmem:[#allocation3 + $0x260] sm:$0xff] %vm946_vm3, %v1039_v9  ;;  %v6346_v16 = vld [vmem:[#allocation2 + $0x90] sm:$0xff] }
 0x27b   :  { %v938_v43 = vmax.f32 %v895_v48, 0.0  ;;  %v1962_v10 = vpop.permute.xlu0 %1961 }
 0x27c   :  { %2087 = vst.msk [vmem:[#allocation3 + $0x40] sm:$0xff] %vm2082_vm7, %v1962_v10  ;;  %v2220_v7 = vpop.permute.xlu1 %2219 }
 0x27d   :  { %992 = vst.msk [vmem:[#allocation2 + $0x140] sm:$0xff] %vm946_vm3, %v938_v43  ;;  %1201 = vrot.lane.b32.xlu0 %v1617_v13, %s5277_s19  ;;  %v6426_v43 = vld [vmem:[#allocation2 + $0xb0] sm:$0xff] }
 0x27e   :  { %2346 = vst.msk [vmem:[#allocation3 + $0x30] sm:$0xff] %vm2342_vm9, %v2220_v7  ;;  %2491 = vrot.lane.b32.xlu1 %v6346_v16, %s5280_s27 }
 0x27f   :  { %v1190_v34 = vpop.permute.xlu0 %1189 }
 0x280   :  { %1311 = vst.msk [vmem:[#allocation3 + $0x80] sm:$0xff] %vm1302_vm4, %v1190_v34  ;;  %v804_v50 = vpop.permute.xlu1 %803 }
 0x281   :  { %v896_v56 = vmax.f32 %v6107_v32, %v804_v50  ;;  %1461 = vrot.lane.b32.xlu0 %v6278_v37, %s5278_s20  ;;  %v2656_v32 = vld [vmem:[#allocation2 + $0x92] sm:$0xff] }
 0x282   :  { %2237 = vrot.lane.b32.xlu1 %v2655_v8, %s5283_s30 }
 0x283   :  { %v939_v15 = vmax.f32 %v896_v56, 0.0  ;;  %v1450_v14 = vpop.permute.xlu0 %1449 }
 0x284   :  { %v2937_v25 = vld [vmem:[#allocation2 + $0x13c] sm:$0xff]  ;;  %1571 = vst.msk [vmem:[#allocation3 + $0x80] sm:$0xff] %vm1562_vm5, %v1450_v14  ;;  %v2476_v3 = vpop.permute.xlu1 %2475 }
 0x285   :  { %2980 = vst.msk [vmem:[#allocation3 + $0x1e8] sm:$0xff] %vm946_vm3, %v2937_v25  ;;  %993 = vst.msk [vmem:[#allocation2 + $0x148] sm:$0xff] %vm946_vm3, %v939_v15  ;;  %1715 = vrot.lane.b32.xlu0 %v1618_v38, %s5282_s29  ;;  %v1040_v31 = vld [vmem:[#allocation2 + $0x13c] sm:$0xff] }
 0x286   :  { %2604 = vst.msk [vmem:[#allocation3 + $0x10] sm:$0xff] %vm2602_vm10, %v2476_v3  ;;  %2751 = vrot.lane.b32.xlu1 %v2656_v32, %s5279_s0  ;;  %v1621_v15 = vld [vmem:[#allocation2 + $0x96] sm:$0xff]  ;;  %v3019_v14 = vld [vmem:[#allocation3 + $0x38] sm:$0xff] }
 0x287   :  { %1083 = vst.msk [vmem:[#allocation3 + $0x270] sm:$0xff] %vm946_vm3, %v1040_v31  ;;  %v2734_v12 = vpop.permute.xlu0 %2733 }
 0x288   :  { %2863 = vst.msk [vmem:[#allocation3] sm:$0xff] %vm2862_vm11, %v2734_v12  ;;  %v1704_v52 = vpop.permute.xlu1 %1703  ;;  %v3021_v12 = vld [vmem:[#allocation3 + $0x48] sm:$0xff] }
 0x289   :  { %1828 = vst.msk [vmem:[#allocation3 + $0x50] sm:$0xff] %vm1822_vm6, %v1704_v52  ;;  %1975 = vrot.lane.b32.xlu0 %v6306_v26, %s5281_s28 }
 0x28a   :  { %2493 = vrot.lane.b32.xlu1 %v6366_v57, %s5280_s27 }
 0x28b   :  { %v2222_v1 = vpop.permute.xlu0 %2221 }
 0x28c   :  { %v2938_v37 = vld [vmem:[#allocation2 + $0x144] sm:$0xff]  ;;  %2347 = vst.msk [vmem:[#allocation3 + $0x40] sm:$0xff] %vm2342_vm9, %v2222_v1  ;;  %v1964_v5 = vpop.permute.xlu1 %1963 }
 0x28d   :  { %2981 = vst.msk [vmem:[#allocation3 + $0x1f8] sm:$0xff] %vm946_vm3, %v2938_v37  ;;  %1203 = vrot.lane.b32.xlu0 %v1618_v38, %s5277_s19  ;;  %v1041_v21 = vld [vmem:[#allocation2 + $0x144] sm:$0xff] }
 0x28e   :  { %2088 = vst.msk [vmem:[#allocation3 + $0x50] sm:$0xff] %vm2082_vm7, %v1964_v5  ;;  %2239 = vrot.lane.b32.xlu1 %v2656_v32, %s5283_s30 }
 0x28f   :  { %1084 = vst.msk [vmem:[#allocation3 + $0x280] sm:$0xff] %vm946_vm3, %v1041_v21  ;;  %v1192_v33 = vpop.permute.xlu0 %1191  ;;  %v3012_v63 = vld [vmem:[#allocation3] sm:$0xff] }
 0x290   :  { %1312 = vst.msk [vmem:[#allocation3 + $0x90] sm:$0xff] %vm1302_vm4, %v1192_v33  ;;  %v806_v54 = vpop.permute.xlu1 %805  ;;  %3296 = vmatmul.mubr.f32.vlgmr.msra.gmra.mrb[0].mxu1 %v3012_v63  ;;  %v6459_v63 = vld [vmem:[#allocation2 + $0xb6] sm:$0xff] }
 0x291   :  { %v897_v27 = vmax.f32 %v6142_v41, %v806_v54  ;;  %1463 = vrot.lane.b32.xlu0 %v6306_v26, %s5278_s20  ;;  %4642 = vmatprep.mubr.msk.f32.mxu1 %vm946_vm3, %v3015_v60  ;;  %v6386_v41 = vld [vmem:[#allocation2 + $0xa0] sm:$0xff] }
 0x292   :  { %2753 = vrot.lane.b32.xlu1 %v2657_v35, %s5279_s0 }
 0x293   :  { %v940_v23 = vmax.f32 %v897_v27, 0.0  ;;  %v1452_v28 = vpop.permute.xlu0 %1451 }
 0x294   :  { %1572 = vst.msk [vmem:[#allocation3 + $0x90] sm:$0xff] %vm1562_vm5, %v1452_v28  ;;  %v2736_v49 = vpop.permute.xlu1 %2735 }
 0x295   :  { %994 = vst.msk [vmem:[#allocation2 + $0x150] sm:$0xff] %vm946_vm3, %v940_v23  ;;  %1717 = vrot.lane.b32.xlu0 %v1619_v45, %s5282_s29  ;;  %v2661_v23 = vld [vmem:[#allocation2 + $0xba] sm:$0xff] }
 0x296   :  { %2864 = vst.msk [vmem:[#allocation3 + $0x10] sm:$0xff] %vm2862_vm11, %v2736_v49  ;;  %2495 = vrot.lane.b32.xlu1 %v6386_v41, %s5280_s27 }
 0x297   :  { %v2478_v39 = vpop.permute.xlu0 %2477 }
 0x298   :  { %2605 = vst.msk [vmem:[#allocation3 + $0x20] sm:$0xff] %vm2602_vm10, %v2478_v39  ;;  %v2224_v30 = vpop.permute.xlu1 %2223  ;;  %v6478_v39 = vld [vmem:[#allocation2 + $0xc0] sm:$0xff] }
 0x299   :  { %2348 = vst.msk [vmem:[#allocation3 + $0x50] sm:$0xff] %vm2342_vm9, %v2224_v30  ;;  %1977 = vrot.lane.b32.xlu0 %v6326_v17, %s5281_s28 }
 0x29a   :  { %2241 = vrot.lane.b32.xlu1 %v2657_v35, %s5283_s30  ;;  %v1622_v35 = vld [vmem:[#allocation2 + $0x9e] sm:$0xff] }
 0x29b   :  { %v1706_v26 = vpop.permute.xlu0 %1705 }
 0x29c   :  { %v2939_v58 = vld [vmem:[#allocation2 + $0x14c] sm:$0xff]  ;;  %1829 = vst.msk [vmem:[#allocation3 + $0x60] sm:$0xff] %vm1822_vm6, %v1706_v26  ;;  %v808_v18 = vpop.permute.xlu1 %807  ;;  %v1043_v44 = vld [vmem:[#allocation2 + $0x154] sm:$0xf] }
 0x29d   :  { %v3014_v2 = vld [vmem:[#allocation3 + $0x10] sm:$0xff]  ;;  %2982 = vst.msk [vmem:[#allocation3 + $0x208] sm:$0xff] %vm946_vm3, %v2939_v58  ;;  %v898_v59 = vmax.f32 %v6168_v24, %v808_v18  ;;  %1205 = vrot.lane.b32.xlu0 %v1619_v45, %s5277_s19  ;;  %v1042_v6 = vld [vmem:[#allocation2 + $0x14c] sm:$0xff] }
 0x29e   :  { %3301 = vmatmul.mubr.f32.gmra.mrb[2].mxu1 %v3014_v2  ;;  %2755 = vrot.lane.b32.xlu1 %v2658_v53, %s5279_s0  ;;  %1086 = vst.msk [vmem:[#allocation3 + $0x2a0] sm:$0xf] %vm999_vm8, %v1043_v44  ;;  %v6496_v44 = vld [vmem:[#allocation2 + $0xc8] sm:$0xff] }
 0x29f   :  { %4643 = vmatprep.mubr.msk.f32.mxu1 %vm946_vm3, %v3017_v42  ;;  %v941_v62 = vmax.f32 %v898_v59, 0.0  ;;  %v1966_v11 = vpop.permute.xlu0 %1965  ;;  %1085 = vst.msk [vmem:[#allocation3 + $0x290] sm:$0xff] %vm946_vm3, %v1042_v6  ;;  %v2662_v42 = vld [vmem:[#allocation2 + $0xc2] sm:$0xff] }
 0x2a0   :  { %2089 = vst.msk [vmem:[#allocation3 + $0x60] sm:$0xff] %vm2082_vm7, %v1966_v11  ;;  %v2480_v24 = vpop.permute.xlu1 %2479 }
 0x2a1   :  { %995 = vst.msk [vmem:[#allocation2 + $0x158] sm:$0xff] %vm946_vm3, %v941_v62  ;;  %1465 = vrot.lane.b32.xlu0 %v6326_v17, %s5278_s20 }
 0x2a2   :  { %2606 = vst.msk [vmem:[#allocation3 + $0x30] sm:$0xff] %vm2602_vm10, %v2480_v24  ;;  %2497 = vrot.lane.b32.xlu1 %v6408_v19, %s5280_s27 }
 0x2a3   :  { %v1194_v22 = vpop.permute.xlu0 %1193 }
 0x2a4   :  { %1313 = vst.msk [vmem:[#allocation3 + $0xa0] sm:$0xff] %vm1302_vm4, %v1194_v22  ;;  %v2226_v61 = vpop.permute.xlu1 %2225  ;;  %v3023_v22 = vld [vmem:[#allocation3 + $0x58] sm:$0xff] }
 0x2a5   :  { %2349 = vst.msk [vmem:[#allocation3 + $0x60] sm:$0xff] %vm2342_vm9, %v2226_v61  ;;  %1719 = vrot.lane.b32.xlu0 %v1620_v29, %s5282_s29 }
 0x2a6   :  { %2243 = vrot.lane.b32.xlu1 %v2658_v53, %s5283_s30  ;;  %v1623_v53 = vld [vmem:[#allocation2 + $0xa6] sm:$0xff] }
 0x2a7   :  { %v1454_v13 = vpop.permute.xlu0 %1453 }
 0x2a8   :  { %v2940_v51 = vld [vmem:[#allocation2 + $0x154] sm:$0xff]  ;;  %1573 = vst.msk [vmem:[#allocation3 + $0xa0] sm:$0xff] %vm1562_vm5, %v1454_v13  ;;  %v810_v17 = vpop.permute.xlu1 %809 }
 0x2a9   :  { %2983 = vst.msk [vmem:[#allocation3 + $0x218] sm:$0xff] %vm946_vm3, %v2940_v51  ;;  %v899_v46 = vmax.f32 %v6197_v55, %v810_v17  ;;  %1979 = vrot.lane.b32.xlu0 %v6346_v16, %s5281_s28  ;;  %v3025_v51 = vld [vmem:[#allocation3 + $0x68] sm:$0xff]  ;;  %v6511_v17 = vld [vmem:[#allocation2 + $0xc6] sm:$0xff] }
 0x2aa   :  { %2757 = vrot.lane.b32.xlu1 %v2659_v20, %s5279_s0 }
 0x2ab   :  { %v942_v48 = vmax.f32 %v899_v46, 0.0  ;;  %v2738_v8 = vpop.permute.xlu0 %2737 }
 0x2ac   :  { %2865 = vst.msk [vmem:[#allocation3 + $0x20] sm:$0xff] %vm2862_vm11, %v2738_v8  ;;  %v2740_v9 = vpop.permute.xlu1 %2739  ;;  %v1624_v8 = vld [vmem:[#allocation2 + $0xae] sm:$0xff] }
 0x2ad   :  { %996 = vst.msk [vmem:[#allocation2 + $0x160] sm:$0xff] %vm946_vm3, %v942_v48  ;;  %1207 = vrot.lane.b32.xlu0 %v1620_v29, %s5277_s19 }
 0x2ae   :  { %2866 = vst.msk [vmem:[#allocation3 + $0x30] sm:$0xff] %vm2862_vm11, %v2740_v9  ;;  %2499 = vrot.lane.b32.xlu1 %v6426_v43, %s5280_s27  ;;  %v3027_v9 = vld [vmem:[#allocation3 + $0x78] sm:$0xff] }
 0x2af   :  { %v1708_v55 = vpop.permute.xlu0 %1707 }
 0x2b0   :  { %1830 = vst.msk [vmem:[#allocation3 + $0x70] sm:$0xff] %vm1822_vm6, %v1708_v55  ;;  %v2228_v10 = vpop.permute.xlu1 %2227 }
 0x2b1   :  { %1467 = vrot.lane.b32.xlu0 %v6346_v16, %s5278_s20  ;;  %v2660_v16 = vld [vmem:[#allocation2 + $0xb2] sm:$0xff] }
 0x2b2   :  { %2245 = vrot.lane.b32.xlu1 %v2659_v20, %s5283_s30 }
 0x2b3   :  { %v1968_v7 = vpop.permute.xlu0 %1967  ;;  %v3016_v34 = vld [vmem:[#allocation3 + $0x20] sm:$0xff] }
 0x2b4   :  { %v2941_v50 = vld [vmem:[#allocation2 + $0x15c] sm:$0xff]  ;;  %2090 = vst.msk [vmem:[#allocation3 + $0x70] sm:$0xff] %vm2082_vm7, %v1968_v7  ;;  %v812_v56 = vpop.permute.xlu1 %811  ;;  %3306 = vmatmul.mubr.f32.gmra.mrb[4].mxu1 %v3016_v34  ;;  %v2663_v7 = vld [vmem:[#allocation2 + $0xca] sm:$0xff] }
 0x2b5   :  { %2984 = vst.msk [vmem:[#allocation3 + $0x228] sm:$0xff] %vm946_vm3, %v2941_v50  ;;  %v900_v25 = vmax.f32 %v6225_v40, %v812_v56  ;;  %1721 = vrot.lane.b32.xlu0 %v1621_v15, %s5282_s29  ;;  %4644 = vmatprep.mubr.msk.f32.mxu1 %vm946_vm3, %v3019_v14  ;;  %v3018_v32 = vld [vmem:[#allocation3 + $0x30] sm:$0xff]  ;;  %v3029_v34 = vld [vmem:[#allocation3 + $0x88] sm:$0xff] }
 0x2b6   :  { %2350 = vst.msk [vmem:[#allocation3 + $0x70] sm:$0xff] %vm2342_vm9, %v2228_v10  ;;  %2759 = vrot.lane.b32.xlu1 %v2660_v16, %s5279_s0  ;;  %v6447_v40 = vld [vmem:[#allocation2 + $0xb8] sm:$0xff] }
 0x2b7   :  { %v943_v3 = vmax.f32 %v900_v25, 0.0  ;;  %v1196_v38 = vpop.permute.xlu0 %1195 }
 0x2b8   :  { %1314 = vst.msk [vmem:[#allocation3 + $0xb0] sm:$0xff] %vm1302_vm4, %v1196_v38  ;;  %v2484_v31 = vpop.permute.xlu1 %2483  ;;  %3311 = vmatmul.mubr.f32.gmra.mrb[6].mxu1 %v3018_v32  ;;  %v6542_v32 = vld [vmem:[#allocation2 + $0xd2] sm:$0xff] }
 0x2b9   :  { %997 = vst.msk [vmem:[#allocation2 + $0x168] sm:$0xff] %vm946_vm3, %v943_v3  ;;  %1981 = vrot.lane.b32.xlu0 %v6366_v57, %s5281_s28  ;;  %4645 = vmatprep.mubr.msk.f32.mxu1 %vm946_vm3, %v3021_v12 }
 0x2ba   :  { %2608 = vst.msk [vmem:[#allocation3 + $0x50] sm:$0xff] %vm2602_vm10, %v2484_v31  ;;  %2501 = vrot.lane.b32.xlu1 %v6447_v40, %s5280_s27  ;;  %v3031_v31 = vld [vmem:[#allocation3 + $0x98] sm:$0xff] }
 0x2bb   :  { %v1456_v52 = vpop.permute.xlu0 %1455 }
 0x2bc   :  { %1574 = vst.msk [vmem:[#allocation3 + $0xb0] sm:$0xff] %vm1562_vm5, %v1456_v52  ;;  %v2230_v1 = vpop.permute.xlu1 %2229  ;;  %v2405_v52 = vld [vmem:[#allocation2 + $0xd8] sm:$0xff] }
 0x2bd   :  { %1209 = vrot.lane.b32.xlu0 %v1621_v15, %s5277_s19  ;;  %v6530_v15 = vld [vmem:[#allocation2 + $0xd0] sm:$0xff] }
 0x2be   :  { %2247 = vrot.lane.b32.xlu1 %v2660_v16, %s5283_s30 }
 0x2bf   :  { %v2482_v37 = vpop.permute.xlu0 %2481 }
 0x2c0   :  { %v2942_v5 = vld [vmem:[#allocation2 + $0x164] sm:$0xff]  ;;  %2607 = vst.msk [vmem:[#allocation3 + $0x40] sm:$0xff] %vm2602_vm10, %v2482_v37  ;;  %v814_v21 = vpop.permute.xlu1 %813 }
 0x2c1   :  { %2985 = vst.msk [vmem:[#allocation3 + $0x238] sm:$0xff] %vm946_vm3, %v2942_v5  ;;  %v901_v33 = vmax.f32 %v6257_v36, %v814_v21  ;;  %1469 = vrot.lane.b32.xlu0 %v6366_v57, %s5278_s20  ;;  %v1626_v5 = vld [vmem:[#allocation2 + $0xbe] sm:$0xff]  ;;  %v1629_v21 = vld [vmem:[#allocation2 + $0xd6] sm:$0xff] }
 0x2c2   :  { %1217 = vrot.lane.b32.xlu1 %v6459_v63, %s5277_s19 }
 0x2c3   :  { %v944_v54 = vmax.f32 %v901_v33, 0.0  ;;  %v1710_v60 = vpop.permute.xlu0 %1709 }
 0x2c4   :  { %1831 = vst.msk [vmem:[#allocation3 + $0x80] sm:$0xff] %vm1822_vm6, %v1710_v60  ;;  %v2744_v27 = vpop.permute.xlu1 %2743 }
 0x2c5   :  { %998 = vst.msk [vmem:[#allocation2 + $0x170] sm:$0xff] %vm946_vm3, %v944_v54  ;;  %1723 = vrot.lane.b32.xlu0 %v1622_v35, %s5282_s29  ;;  %v3033_v54 = vld [vmem:[#allocation3 + $0xa8] sm:$0xff] }
 0x2c6   :  { %2868 = vst.msk [vmem:[#allocation3 + $0x50] sm:$0xff] %vm2862_vm11, %v2744_v27  ;;  %1477 = vrot.lane.b32.xlu1 %v6447_v40, %s5278_s20 }
 0x2c7   :  { %v1970_v36 = vpop.permute.xlu0 %1969 }
 0x2c8   :  { %2091 = vst.msk [vmem:[#allocation3 + $0x80] sm:$0xff] %vm2082_vm7, %v1970_v36  ;;  %v2486_v57 = vpop.permute.xlu1 %2485 }
 0x2c9   :  { %2351 = vst.msk [vmem:[#allocation3 + $0x80] sm:$0xff] %vm2342_vm9, %v2230_v1  ;;  %1983 = vrot.lane.b32.xlu0 %v6386_v41, %s5281_s28 }
 0x2ca   :  { %2609 = vst.msk [vmem:[#allocation3 + $0x60] sm:$0xff] %vm2602_vm10, %v2486_v57  ;;  %2761 = vrot.lane.b32.xlu1 %v2661_v23, %s5279_s0 }
 0x2cb   :  { %v1198_v28 = vpop.permute.xlu0 %1197 }
 0x2cc   :  { %v2943_v49 = vld [vmem:[#allocation2 + $0x16c] sm:$0xff]  ;;  %1315 = vst.msk [vmem:[#allocation3 + $0xc0] sm:$0xff] %vm1302_vm4, %v1198_v28  ;;  %v2232_v45 = vpop.permute.xlu1 %2231 }
 0x2cd   :  { %2986 = vst.msk [vmem:[#allocation3 + $0x248] sm:$0xff] %vm946_vm3, %v2943_v49  ;;  %1211 = vrot.lane.b32.xlu0 %v1622_v35, %s5277_s19  ;;  %v3022_v29 = vld [vmem:[#allocation3 + $0x50] sm:$0xff] }
 0x2ce   :  { %2503 = vrot.lane.b32.xlu1 %v6478_v39, %s5280_s27  ;;  %v2665_v49 = vld [vmem:[#allocation2 + $0xda] sm:$0xff] }
 0x2cf   :  { %v1458_v30 = vpop.permute.xlu0 %1457 }
 0x2d0   :  { %1575 = vst.msk [vmem:[#allocation3 + $0xc0] sm:$0xff] %vm1562_vm5, %v1458_v30  ;;  %v816_v26 = vpop.permute.xlu1 %815 }
 0x2d1   :  { %v902_v58 = vmax.f32 %v6289_v47, %v816_v26  ;;  %1471 = vrot.lane.b32.xlu0 %v6386_v41, %s5278_s20  ;;  %v6583_v26 = vld [vmem:[#allocation2 + $0xe0] sm:$0xff] }
 0x2d2   :  { %2249 = vrot.lane.b32.xlu1 %v2661_v23, %s5283_s30 }
 0x2d3   :  { %v945_v18 = vmax.f32 %v902_v58, 0.0  ;;  %v2742_v2 = vpop.permute.xlu0 %2741 }
 0x2d4   :  { %2867 = vst.msk [vmem:[#allocation3 + $0x40] sm:$0xff] %vm2862_vm11, %v2742_v2  ;;  %v2746_v59 = vpop.permute.xlu1 %2745  ;;  %v1628_v2 = vld [vmem:[#allocation2 + $0xce] sm:$0xff] }
 0x2d5   :  { %1000 = vst.msk [vmem:[#allocation2 + $0x178] sm:$0xf] %vm999_vm8, %v945_v18  ;;  %1725 = vrot.lane.b32.xlu0 %v1623_v53, %s5282_s29  ;;  %vm2905_vm8 = vcmask 1044352  }
 0x2d6   :  { %2869 = vst.msk [vmem:[#allocation3 + $0x60] sm:$0xff] %vm2862_vm11, %v2746_v59  ;;  %2763 = vrot.lane.b32.xlu1 %v2662_v42, %s5279_s0 }
 0x2d7   :  { %v1712_v47 = vpop.permute.xlu0 %1711 }
 0x2d8   :  { %1832 = vst.msk [vmem:[#allocation3 + $0x90] sm:$0xff] %vm1822_vm6, %v1712_v47  ;;  %v2488_v41 = vpop.permute.xlu1 %2487  ;;  %v2666_v47 = vld [vmem:[#allocation2 + $0xe2] sm:$0xff] }
 0x2d9   :  { %2610 = vst.msk [vmem:[#allocation3 + $0x70] sm:$0xff] %vm2602_vm10, %v2488_v41  ;;  %1985 = vrot.lane.b32.xlu0 %v6408_v19, %s5281_s28  ;;  %v3037_v41 = vld [vmem:[#allocation3 + $0xc8] sm:$0xff] }
 0x2da   :  { %2505 = vrot.lane.b32.xlu1 %v6496_v44, %s5280_s27 }
 0x2db   :  { %v1972_v6 = vpop.permute.xlu0 %1971  ;;  %v3020_v62 = vld [vmem:[#allocation3 + $0x40] sm:$0xff] }
 0x2dc   :  { %v2944_v11 = vld [vmem:[#allocation2 + $0x174] sm:$0xff]  ;;  %2092 = vst.msk [vmem:[#allocation3 + $0x90] sm:$0xff] %vm2082_vm7, %v1972_v6  ;;  %v2234_v24 = vpop.permute.xlu1 %2233  ;;  %3316 = vmatmul.mubr.f32.gmra.mrb[8].mxu1 %v3020_v62  ;;  %v2407_v62 = vld [vmem:[#allocation2 + $0xe8] sm:$0xff] }
 0x2dd   :  { %2987 = vst.msk [vmem:[#allocation3 + $0x258] sm:$0xff] %vm946_vm3, %v2944_v11  ;;  %1213 = vrot.lane.b32.xlu0 %v1623_v53, %s5277_s19  ;;  %4646 = vmatprep.mubr.msk.f32.mxu1 %vm946_vm3, %v3023_v22  ;;  %v3024_v20 = vld [vmem:[#allocation3 + $0x60] sm:$0xff] }
 0x2de   :  { %2352 = vst.msk [vmem:[#allocation3 + $0x90] sm:$0xff] %vm2342_vm9, %v2232_v45  ;;  %2251 = vrot.lane.b32.xlu1 %v2662_v42, %s5283_s30  ;;  %v3035_v45 = vld [vmem:[#allocation3 + $0xb8] sm:$0xff] }
 0x2df   :  { %v1200_v61 = vpop.permute.xlu0 %1199  ;;  %v1631_v22 = vld [vmem:[#allocation2 + $0xe6] sm:$0xff] }
 0x2e0   :  { %1316 = vst.msk [vmem:[#allocation3 + $0xd0] sm:$0xff] %vm1302_vm4, %v1200_v61  ;;  %v2748_v13 = vpop.permute.xlu1 %2747  ;;  %3321 = vmatmul.mubr.f32.gmra.mrb[10].mxu1 %v3022_v29 }
 0x2e1   :  { %2870 = vst.msk [vmem:[#allocation3 + $0x70] sm:$0xff] %vm2862_vm11, %v2748_v13  ;;  %1473 = vrot.lane.b32.xlu0 %v6408_v19, %s5278_s20  ;;  %4647 = vmatprep.mubr.msk.f32.mxu1 %vm946_vm3, %v3025_v51  ;;  %v3039_v51 = vld [vmem:[#allocation3 + $0xd8] sm:$0xff] }
 0x2e2   :  { %1221 = vrot.lane.b32.xlu1 %v6511_v17, %s5277_s19 }
 0x2e3   :  { %v1460_v46 = vpop.permute.xlu0 %1459 }
 0x2e4   :  { %1576 = vst.msk [vmem:[#allocation3 + $0xd0] sm:$0xff] %vm1562_vm5, %v1460_v46  ;;  %v2490_v48 = vpop.permute.xlu1 %2489  ;;  %3326 = vmatmul.mubr.f32.gmra.mrb[12].mxu1 %v3024_v20  ;;  %v1630_v20 = vld [vmem:[#allocation2 + $0xde] sm:$0xff] }
 0x2e5   :  { %2611 = vst.msk [vmem:[#allocation3 + $0x80] sm:$0xff] %vm2602_vm10, %v2490_v48  ;;  %1727 = vrot.lane.b32.xlu0 %v1624_v8, %s5282_s29  ;;  %4648 = vmatprep.mubr.msk.f32.mxu1 %vm946_vm3, %v3027_v9 }
 0x2e6   :  { %1481 = vrot.lane.b32.xlu1 %v6496_v44, %s5278_s20 }
 0x2e7   :  { %v1714_v19 = vpop.permute.xlu0 %1713 }
 0x2e8   :  { %1833 = vst.msk [vmem:[#allocation3 + $0xa0] sm:$0xff] %vm1822_vm6, %v1714_v19  ;;  %v2236_v55 = vpop.permute.xlu1 %2235  ;;  %v3026_v10 = vld [vmem:[#allocation3 + $0x70] sm:$0xff] }
 0x2e9   :  { %1987 = vrot.lane.b32.xlu0 %v6426_v43, %s5281_s28  ;;  %3331 = vmatmul.mubr.f32.gmra.mrb[14].mxu1 %v3026_v10  ;;  %v2667_v10 = vld [vmem:[#allocation2 + $0xea] sm:$0xff] }
 0x2ea   :  { %2765 = vrot.lane.b32.xlu1 %v2663_v7, %s5279_s0  ;;  %4649 = vmatprep.mubr.msk.f32.mxu1 %vm946_vm3, %v3029_v34 }
 0x2eb   :  { %v1974_v50 = vpop.permute.xlu0 %1973 }
 0x2ec   :  { %2093 = vst.msk [vmem:[#allocation3 + $0xa0] sm:$0xff] %vm2082_vm7, %v1974_v50  ;;  %v2750_v56 = vpop.permute.xlu1 %2749 }
 0x2ed   :  { %2353 = vst.msk [vmem:[#allocation3 + $0xa0] sm:$0xff] %vm2342_vm9, %v2234_v24  ;;  %1215 = vrot.lane.b32.xlu0 %v1624_v8, %s5277_s19 }
 0x2ee   :  { %2871 = vst.msk [vmem:[#allocation3 + $0x80] sm:$0xff] %vm2862_vm11, %v2750_v56  ;;  %2507 = vrot.lane.b32.xlu1 %v6530_v15, %s5280_s27 }
 0x2ef   :  { %v1202_v14 = vpop.permute.xlu0 %1201 }
 0x2f0   :  { %1317 = vst.msk [vmem:[#allocation3 + $0xe0] sm:$0xff] %vm1302_vm4, %v1202_v14  ;;  %v2492_v25 = vpop.permute.xlu1 %2491  ;;  %v2409_v14 = vld [vmem:[#allocation2 + $0xf8] sm:$0xff] }
 0x2f1   :  { %2612 = vst.msk [vmem:[#allocation3 + $0x90] sm:$0xff] %vm2602_vm10, %v2492_v25  ;;  %1475 = vrot.lane.b32.xlu0 %v6426_v43, %s5278_s20 }
 0x2f2   :  { %2253 = vrot.lane.b32.xlu1 %v2663_v7, %s5283_s30  ;;  %v3041_v7 = vld [vmem:[#allocation3 + $0xe8] sm:$0xff] }
 0x2f3   :  { %v1462_v16 = vpop.permute.xlu0 %1461 }
 0x2f4   :  { %1577 = vst.msk [vmem:[#allocation3 + $0xe0] sm:$0xff] %vm1562_vm5, %v1462_v16  ;;  %v2238_v3 = vpop.permute.xlu1 %2237 }
 0x2f5   :  { %v3028_v38 = vld [vmem:[#allocation3 + $0x80] sm:$0xff]  ;;  %1729 = vrot.lane.b32.xlu0 %v6459_v63, %s5282_s29 }
 0x2f6   :  { %3336 = vmatmul.mubr.f32.gmra.mrb[16].mxu1 %v3028_v38  ;;  %2767 = vrot.lane.b32.xlu1 %v6542_v32, %s5279_s0  ;;  %v1633_v38 = vld [vmem:[#allocation2 + $0xf6] sm:$0xff] }
 0x2f7   :  { %4650 = vmatprep.mubr.msk.f32.mxu1 %vm946_vm3, %v3031_v31  ;;  %v1716_v43 = vpop.permute.xlu0 %1715 }
 0x2f8   :  { %1834 = vst.msk [vmem:[#allocation3 + $0xb0] sm:$0xff] %vm1822_vm6, %v1716_v43  ;;  %v2752_v12 = vpop.permute.xlu1 %2751  ;;  %v1632_v43 = vld [vmem:[#allocation2 + $0xee] sm:$0xff] }
 0x2f9   :  { %2872 = vst.msk [vmem:[#allocation3 + $0x90] sm:$0xff] %vm2862_vm11, %v2752_v12  ;;  %1989 = vrot.lane.b32.xlu0 %v6447_v40, %s5281_s28 }
 0x2fa   :  { %2509 = vrot.lane.b32.xlu1 %v2405_v52, %s5280_s27 }
 0x2fb   :  { %v1976_v1 = vpop.permute.xlu0 %1975 }
 0x2fc   :  { %2094 = vst.msk [vmem:[#allocation3 + $0xb0] sm:$0xff] %vm2082_vm7, %v1976_v1  ;;  %v2494_v37 = vpop.permute.xlu1 %2493 }
 0x2fd   :  { %2354 = vst.msk [vmem:[#allocation3 + $0xb0] sm:$0xff] %vm2342_vm9, %v2236_v55  ;;  %1731 = vrot.lane.b32.xlu0 %v1626_v5, %s5282_s29 }
 0x2fe   :  { %2613 = vst.msk [vmem:[#allocation3 + $0xa0] sm:$0xff] %vm2602_vm10, %v2494_v37  ;;  %1737 = vrot.lane.b32.xlu1 %v1629_v21, %s5282_s29  ;;  %v3043_v37 = vld [vmem:[#allocation3 + $0xf8] sm:$0xff] }
 0x2ff   :  { %v1204_v33 = vpop.permute.xlu0 %1203 }
 0x300   :  { %1318 = vst.msk [vmem:[#allocation3 + $0xf0] sm:$0xff] %vm1302_vm4, %v1204_v33  ;;  %v2240_v40 = vpop.permute.xlu1 %2239  ;;  %v3030_v63 = vld [vmem:[#allocation3 + $0x90] sm:$0xff] }
 0x301   :  { %1991 = vrot.lane.b32.xlu0 %v6478_v39, %s5281_s28  ;;  %3341 = vmatmul.mubr.f32.gmra.mrb[18].mxu1 %v3030_v63  ;;  %v2669_v63 = vld [vmem:[#allocation2 + $0xfa] sm:$0xff] }
 0x302   :  { %1997 = vrot.lane.b32.xlu1 %v2405_v52, %s5281_s28  ;;  %4651 = vmatprep.mubr.msk.f32.mxu1 %vm946_vm3, %v3033_v54 }
 0x303   :  { %v1464_v60 = vpop.permute.xlu0 %1463 }
 0x304   :  { %1578 = vst.msk [vmem:[#allocation3 + $0xf0] sm:$0xff] %vm1562_vm5, %v1464_v60  ;;  %v2754_v27 = vpop.permute.xlu1 %2753 }
 0x305   :  { %2873 = vst.msk [vmem:[#allocation3 + $0xa0] sm:$0xff] %vm2862_vm11, %v2754_v27  ;;  %1219 = vrot.lane.b32.xlu0 %v1626_v5, %s5277_s19  ;;  %v2668_v27 = vld [vmem:[#allocation2 + $0xf2] sm:$0xff] }
 0x306   :  { %1225 = vrot.lane.b32.xlu1 %v1629_v21, %s5277_s19 }
 0x307   :  { %v1718_v35 = vpop.permute.xlu0 %1717 }
 0x308   :  { %1835 = vst.msk [vmem:[#allocation3 + $0xc0] sm:$0xff] %vm1822_vm6, %v1718_v35  ;;  %v2496_v36 = vpop.permute.xlu1 %2495 }
 0x309   :  { %2614 = vst.msk [vmem:[#allocation3 + $0xb0] sm:$0xff] %vm2602_vm10, %v2496_v36  ;;  %1479 = vrot.lane.b32.xlu0 %v6478_v39, %s5278_s20  ;;  %v3045_v36 = vld [vmem:[#allocation3 + $0x108] sm:$0xff] }
 0x30a   :  { %1485 = vrot.lane.b32.xlu1 %v2405_v52, %s5278_s20 }
 0x30b   :  { %v1978_v57 = vpop.permute.xlu0 %1977 }
 0x30c   :  { %2095 = vst.msk [vmem:[#allocation3 + $0xc0] sm:$0xff] %vm2082_vm7, %v1978_v57  ;;  %v6572_v23 = vpop.permute.xlu1 %2241  ;;  %v3032_v28 = vld [vmem:[#allocation3 + $0xa0] sm:$0xff] }
 0x30d   :  { %2355 = vst.msk [vmem:[#allocation3 + $0xc0] sm:$0xff] %vm2342_vm9, %v2238_v3  ;;  %1733 = vrot.lane.b32.xlu0 %v6511_v17, %s5282_s29  ;;  %3346 = vmatmul.mubr.f32.gmra.mrb[20].mxu1 %v3032_v28  ;;  %v2408_v3 = vld [vmem:[#allocation2 + $0xf0] sm:$0xff]  ;;  %v6676_v28 = vld [vmem:[#allocation2 + $0x108] sm:$0xff] }
 0x30e   :  { %2769 = vrot.lane.b32.xlu1 %v2665_v49, %s5279_s0  ;;  %4652 = vmatprep.mubr.msk.f32.mxu1 %vm946_vm3, %v3035_v45 }
 0x30f   :  { %v1206_v39 = vpop.permute.xlu0 %1205 }
 0x310   :  { %1319 = vst.msk [vmem:[#allocation3 + $0x100] sm:$0xff] %vm1302_vm4, %v1206_v39  ;;  %v2756_v30 = vpop.permute.xlu1 %2755  ;;  %v2410_v39 = vld [vmem:[#allocation2 + $0x100] sm:$0xff] }
 0x311   :  { %2874 = vst.msk [vmem:[#allocation3 + $0xb0] sm:$0xff] %vm2862_vm11, %v2756_v30  ;;  %1993 = vrot.lane.b32.xlu0 %v6496_v44, %s5281_s28  ;;  %v6683_v30 = vld [vmem:[#allocation2 + $0x106] sm:$0xff] }
 0x312   :  { %2511 = vrot.lane.b32.xlu1 %v6583_v26, %s5280_s27 }
 0x313   :  { %v1466_v58 = vpop.permute.xlu0 %1465 }
 0x314   :  { %1579 = vst.msk [vmem:[#allocation3 + $0x100] sm:$0xff] %vm1562_vm5, %v1466_v58  ;;  %v2498_v18 = vpop.permute.xlu1 %2497 }
 0x315   :  { %2615 = vst.msk [vmem:[#allocation3 + $0xc0] sm:$0xff] %vm2602_vm10, %v2498_v18  ;;  %1735 = vrot.lane.b32.xlu0 %v1628_v2, %s5282_s29  ;;  %v1634_v18 = vld [vmem:[#allocation2 + $0xfe] sm:$0xff] }
 0x316   :  { %2257 = vrot.lane.b32.xlu1 %v2665_v49, %s5283_s30 }
 0x317   :  { %v1720_v59 = vpop.permute.xlu0 %1719 }
 0x318   :  { %1836 = vst.msk [vmem:[#allocation3 + $0xd0] sm:$0xff] %vm1822_vm6, %v1720_v59  ;;  %v6592_v53 = vpop.permute.xlu1 %2243  ;;  %v3034_v42 = vld [vmem:[#allocation3 + $0xb0] sm:$0xff] }
 0x319   :  { %1995 = vrot.lane.b32.xlu0 %v6530_v15, %s5281_s28  ;;  %3351 = vmatmul.mubr.f32.gmra.mrb[22].mxu1 %v3034_v42  ;;  %v6700_v42 = vld [vmem:[%s7722_s1 + $0xb8] ss:$0 sm:$0xff] }
 0x31a   :  { %2771 = vrot.lane.b32.xlu1 %v2666_v47, %s5279_s0  ;;  %4653 = vmatprep.mubr.msk.f32.mxu1 %vm946_vm3, %v3037_v41 }
 0x31b   :  { %v1980_v44 = vpop.permute.xlu0 %1979 }
 0x31c   :  { %2096 = vst.msk [vmem:[#allocation3 + $0xd0] sm:$0xff] %vm2082_vm7, %v1980_v44  ;;  %v2758_v6 = vpop.permute.xlu1 %2757 }
 0x31d   :  { %2356 = vst.msk [vmem:[#allocation3 + $0xd0] sm:$0xff] %vm2342_vm9, %v2240_v40  ;;  %1223 = vrot.lane.b32.xlu0 %v1628_v2, %s5277_s19 }
 0x31e   :  { %2875 = vst.msk [vmem:[#allocation3 + $0xc0] sm:$0xff] %vm2862_vm11, %v2758_v6  ;;  %2513 = vrot.lane.b32.xlu1 %v2407_v62, %s5280_s27 }
 0x31f   :  { %v1208_v11 = vpop.permute.xlu0 %1207 }
 0x320   :  { %1320 = vst.msk [vmem:[#allocation3 + $0x110] sm:$0xff] %vm1302_vm4, %v1208_v11  ;;  %v2500_v24 = vpop.permute.xlu1 %2499  ;;  %v3047_v11 = vld [vmem:[#allocation3 + $0x118] sm:$0xff] }
 0x321   :  { %2616 = vst.msk [vmem:[#allocation3 + $0xd0] sm:$0xff] %vm2602_vm10, %v2500_v24  ;;  %1483 = vrot.lane.b32.xlu0 %v6530_v15, %s5278_s20 }
 0x322   :  { %1741 = vrot.lane.b32.xlu1 %v1631_v22, %s5282_s29 }
 0x323   :  { %v1468_v61 = vpop.permute.xlu0 %1467 }
 0x324   :  { %1580 = vst.msk [vmem:[#allocation3 + $0x110] sm:$0xff] %vm1562_vm5, %v1468_v61  ;;  %v6609_v29 = vpop.permute.xlu1 %2245  ;;  %v6712_v61 = vld [vmem:[#allocation2 + $0x118] sm:$0xff] }
 0x325   :  { %v3036_v13 = vld [vmem:[#allocation3 + $0xc0] sm:$0xff]  ;;  %2255 = vrot.lane.b32.xlu0 %v6542_v32, %s5283_s30 }
 0x326   :  { %3356 = vmatmul.mubr.f32.gmra.mrb[24].mxu1 %v3036_v13  ;;  %2001 = vrot.lane.b32.xlu1 %v2407_v62, %s5281_s28 }
 0x327   :  { %4654 = vmatprep.mubr.msk.f32.mxu1 %vm946_vm3, %v3039_v51  ;;  %v1722_v17 = vpop.permute.xlu0 %1721  ;;  %v2670_v51 = vld [vmem:[#allocation2 + $0x102] sm:$0xff] }
 0x328   :  { %1837 = vst.msk [vmem:[#allocation3 + $0xe0] sm:$0xff] %vm1822_vm6, %v1722_v17  ;;  %v2760_v46 = vpop.permute.xlu1 %2759  ;;  %v6720_v17 = vld [vmem:[#allocation2 + $0x116] sm:$0xff] }
 0x329   :  { %2876 = vst.msk [vmem:[#allocation3 + $0xd0] sm:$0xff] %vm2862_vm11, %v2760_v46  ;;  %1739 = vrot.lane.b32.xlu0 %v1630_v20, %s5282_s29 }
 0x32a   :  { %1229 = vrot.lane.b32.xlu1 %v1631_v22, %s5277_s19 }
 0x32b   :  { %v1982_v48 = vpop.permute.xlu0 %1981 }
 0x32c   :  { %2097 = vst.msk [vmem:[#allocation3 + $0xe0] sm:$0xff] %vm2082_vm7, %v1982_v48  ;;  %v2502_v8 = vpop.permute.xlu1 %2501 }
 0x32d   :  { %2357 = vst.msk [vmem:[#allocation3 + $0xe0] sm:$0xff] %vm2342_vm9, %v6572_v23  ;;  %1999 = vrot.lane.b32.xlu0 %v6583_v26, %s5281_s28 }
 0x32e   :  { %2617 = vst.msk [vmem:[#allocation3 + $0xe0] sm:$0xff] %vm2602_vm10, %v2502_v8  ;;  %1489 = vrot.lane.b32.xlu1 %v2407_v62, %s5278_s20 }
 0x32f   :  { %v1210_v9 = vpop.permute.xlu0 %1209 }
 0x330   :  { %1321 = vst.msk [vmem:[#allocation3 + $0x120] sm:$0xff] %vm1302_vm4, %v1210_v9  ;;  %v6627_v19 = vpop.permute.xlu1 %2247  ;;  %v3038_v55 = vld [vmem:[#allocation3 + $0xd0] sm:$0xff] }
 0x331   :  { %1227 = vrot.lane.b32.xlu0 %v1630_v20, %s5277_s19  ;;  %3361 = vmatmul.mubr.f32.gmra.mrb[26].mxu1 %v3038_v55 }
 0x332   :  { %2773 = vrot.lane.b32.xlu1 %v2667_v10, %s5279_s0  ;;  %4655 = vmatprep.mubr.msk.f32.mxu1 %vm946_vm3, %v3041_v7  ;;  %v6732_v7 = vld [vmem:[#allocation2 + $0x110] sm:$0xff] }
 0x333   :  { %v1470_v34 = vpop.permute.xlu0 %1469 }
 0x334   :  { %1581 = vst.msk [vmem:[#allocation3 + $0x120] sm:$0xff] %vm1562_vm5, %v1470_v34  ;;  %v1218_v50 = vpop.permute.xlu1 %1217  ;;  %v2673_v34 = vld [vmem:[#allocation2 + $0x11a] sm:$0xff] }
 0x335   :  { %1325 = vst.msk [vmem:[#allocation3 + $0x160] sm:$0xff] %vm1302_vm4, %v1218_v50  ;;  %1487 = vrot.lane.b32.xlu0 %v6583_v26, %s5278_s20 }
 0x336   :  { %2261 = vrot.lane.b32.xlu1 %v2667_v10, %s5283_s30 }
 0x337   :  { %v1724_v56 = vpop.permute.xlu0 %1723 }
 0x338   :  { %1838 = vst.msk [vmem:[#allocation3 + $0xf0] sm:$0xff] %vm1822_vm6, %v1724_v56  ;;  %v1478_v15 = vpop.permute.xlu1 %1477 }
 0x339   :  { %1585 = vst.msk [vmem:[#allocation3 + $0x160] sm:$0xff] %vm1562_vm5, %v1478_v15  ;;  %2259 = vrot.lane.b32.xlu0 %v2666_v47, %s5283_s30  ;;  %v6741_v15 = vld [vmem:[#allocation2 + $0x10e] sm:$0xff] }
 0x33a   :  { %2517 = vrot.lane.b32.xlu1 %v2409_v14, %s5280_s27 }
 0x33b   :  { %v1984_v25 = vpop.permute.xlu0 %1983 }
 0x33c   :  { %2098 = vst.msk [vmem:[#allocation3 + $0xf0] sm:$0xff] %vm2082_vm7, %v1984_v25  ;;  %v2762_v16 = vpop.permute.xlu1 %2761 }
 0x33d   :  { %2358 = vst.msk [vmem:[#allocation3 + $0xf0] sm:$0xff] %vm2342_vm9, %v6592_v53  ;;  %2515 = vrot.lane.b32.xlu0 %v2408_v3, %s5280_s27  ;;  %v2671_v53 = vld [vmem:[#allocation2 + $0x10a] sm:$0xff] }
 0x33e   :  { %2877 = vst.msk [vmem:[#allocation3 + $0xe0] sm:$0xff] %vm2862_vm11, %v2762_v16  ;;  %1745 = vrot.lane.b32.xlu1 %v1633_v38, %s5282_s29  ;;  %v6751_v16 = vld [vmem:[#allocation2 + $0x128] sm:$0xff] }
 0x33f   :  { %v1212_v32 = vpop.permute.xlu0 %1211 }
 0x340   :  { %1322 = vst.msk [vmem:[#allocation3 + $0x130] sm:$0xff] %vm1302_vm4, %v1212_v32  ;;  %v2504_v31 = vpop.permute.xlu1 %2503  ;;  %v2672_v32 = vld [vmem:[#allocation2 + $0x112] sm:$0xff] }
 0x341   :  { %2618 = vst.msk [vmem:[#allocation3 + $0xf0] sm:$0xff] %vm2602_vm10, %v2504_v31  ;;  %1743 = vrot.lane.b32.xlu0 %v1632_v43, %s5282_s29  ;;  %v6758_v31 = vld [vmem:[#allocation2 + $0x12a] sm:$0xff] }
 0x342   :  { %2005 = vrot.lane.b32.xlu1 %v2409_v14, %s5281_s28 }
 0x343   :  { %v1472_v12 = vpop.permute.xlu0 %1471 }
 0x344   :  { %1582 = vst.msk [vmem:[#allocation3 + $0x130] sm:$0xff] %vm1562_vm5, %v1472_v12  ;;  %v6652_v52 = vpop.permute.xlu1 %2249 }
 0x345   :  { %v3040_v1 = vld [vmem:[#allocation3 + $0xe0] sm:$0xff]  ;;  %2003 = vrot.lane.b32.xlu0 %v2408_v3, %s5281_s28 }
 0x346   :  { %3366 = vmatmul.mubr.f32.gmra.mrb[28].mxu1 %v3040_v1  ;;  %1233 = vrot.lane.b32.xlu1 %v1633_v38, %s5277_s19 }
 0x347   :  { %4656 = vmatprep.mubr.msk.f32.mxu1 %vm946_vm3, %v3043_v37  ;;  %v1726_v5 = vpop.permute.xlu0 %1725 }
 0x348   :  { %1839 = vst.msk [vmem:[#allocation3 + $0x100] sm:$0xff] %vm1822_vm6, %v1726_v5  ;;  %v2764_v21 = vpop.permute.xlu1 %2763 }
 0x349   :  { %2878 = vst.msk [vmem:[#allocation3 + $0xf0] sm:$0xff] %vm2862_vm11, %v2764_v21  ;;  %1231 = vrot.lane.b32.xlu0 %v1632_v43, %s5277_s19 }
 0x34a   :  { %1493 = vrot.lane.b32.xlu1 %v2409_v14, %s5278_s20 }
 0x34b   :  { %v1986_v33 = vpop.permute.xlu0 %1985 }
 0x34c   :  { %2099 = vst.msk [vmem:[#allocation3 + $0x100] sm:$0xff] %vm2082_vm7, %v1986_v33  ;;  %v2506_v40 = vpop.permute.xlu1 %2505  ;;  %v6772_v33 = vld [vmem:[#allocation2 + $0x120] sm:$0xff] }
 0x34d   :  { %2359 = vst.msk [vmem:[#allocation3 + $0x100] sm:$0xff] %vm2342_vm9, %v6609_v29  ;;  %1491 = vrot.lane.b32.xlu0 %v2408_v3, %s5278_s20 }
 0x34e   :  { %2619 = vst.msk [vmem:[#allocation3 + $0x100] sm:$0xff] %vm2602_vm10, %v2506_v40  ;;  %2777 = vrot.lane.b32.xlu1 %v2669_v63, %s5279_s0 }
 0x34f   :  { %v1214_v54 = vpop.permute.xlu0 %1213 }
 0x350   :  { %1323 = vst.msk [vmem:[#allocation3 + $0x140] sm:$0xff] %vm1302_vm4, %v1214_v54  ;;  %v6668_v60 = vpop.permute.xlu1 %2251  ;;  %v3042_v35 = vld [vmem:[#allocation3 + $0xf0] sm:$0xff]  ;;  %v3051_v54 = vld [vmem:[#allocation3 + $0x138] sm:$0xff] }
 0x351   :  { %2775 = vrot.lane.b32.xlu0 %v2668_v27, %s5279_s0  ;;  %3371 = vmatmul.mubr.f32.gmra.mrb[30].mxu1 %v3042_v35 }
 0x352   :  { %2265 = vrot.lane.b32.xlu1 %v2669_v63, %s5283_s30  ;;  %4657 = vmatprep.mubr.msk.f32.mxu1 %vm946_vm3, %v3045_v36  ;;  %v6777_v63 = vld [vmem:[#allocation2 + $0x13a] sm:$0xff] }
 0x353   :  { %v1474_v57 = vpop.permute.xlu0 %1473 }
 0x354   :  { %1583 = vst.msk [vmem:[#allocation3 + $0x140] sm:$0xff] %vm1562_vm5, %v1474_v57  ;;  %v1222_v23 = vpop.permute.xlu1 %1221  ;;  %v2674_v57 = vld [vmem:[#allocation2 + $0x122] sm:$0xff] }
 0x355   :  { %1327 = vst.msk [vmem:[#allocation3 + $0x180] sm:$0xff] %vm1302_vm4, %v1222_v23  ;;  %2263 = vrot.lane.b32.xlu0 %v2668_v27, %s5283_s30 }
 0x356   :  { %2521 = vrot.lane.b32.xlu1 %v6676_v28, %s5280_s27 }
 0x357   :  { %v1728_v49 = vpop.permute.xlu0 %1727 }
 0x358   :  { %1840 = vst.msk [vmem:[#allocation3 + $0x110] sm:$0xff] %vm1822_vm6, %v1728_v49  ;;  %v1482_v45 = vpop.permute.xlu1 %1481 }
 0x359   :  { %1587 = vst.msk [vmem:[#allocation3 + $0x180] sm:$0xff] %vm1562_vm5, %v1482_v45  ;;  %2519 = vrot.lane.b32.xlu0 %v2410_v39, %s5280_s27  ;;  %v6788_v45 = vld [vmem:[#allocation2 + $0x130] sm:$0xff] }
 0x35a   :  { %1749 = vrot.lane.b32.xlu1 %v6683_v30, %s5282_s29 }
 0x35b   :  { %v1988_v26 = vpop.permute.xlu0 %1987 }
 0x35c   :  { %2100 = vst.msk [vmem:[#allocation3 + $0x110] sm:$0xff] %vm2082_vm7, %v1988_v26  ;;  %v2766_v58 = vpop.permute.xlu1 %2765 }
 0x35d   :  { %2360 = vst.msk [vmem:[#allocation3 + $0x110] sm:$0xff] %vm2342_vm9, %v6627_v19  ;;  %1747 = vrot.lane.b32.xlu0 %v1634_v18, %s5282_s29  ;;  %v3049_v19 = vld [vmem:[#allocation3 + $0x128] sm:$0xff] }
 0x35e   :  { %2879 = vst.msk [vmem:[#allocation3 + $0x100] sm:$0xff] %vm2862_vm11, %v2766_v58  ;;  %2009 = vrot.lane.b32.xlu1 %v6676_v28, %s5281_s28  ;;  %v6796_v58 = vld [vmem:[#allocation2 + $0x132] sm:$0xff] }
 0x35f   :  { %v1216_v2 = vpop.permute.xlu0 %1215 }
 0x360   :  { %1324 = vst.msk [vmem:[#allocation3 + $0x150] sm:$0xff] %vm1302_vm4, %v1216_v2  ;;  %v2508_v59 = vpop.permute.xlu1 %2507  ;;  %v3053_v2 = vld [vmem:[#allocation3 + $0x148] sm:$0xff] }
 0x361   :  { %2620 = vst.msk [vmem:[#allocation3 + $0x110] sm:$0xff] %vm2602_vm10, %v2508_v59  ;;  %2007 = vrot.lane.b32.xlu0 %v2410_v39, %s5281_s28 }
 0x362   :  { %2781 = vrot.lane.b32.xlu1 %v2671_v53, %s5279_s0 }
 0x363   :  { %v3297_v47 = vpop.f32.mrb[0].mxu1  ;;  %v1476_v41 = vpop.permute.xlu0 %1475 }
 0x364   :  { %1584 = vst.msk [vmem:[#allocation3 + $0x150] sm:$0xff] %vm1562_vm5, %v1476_v41  ;;  %v6704_v44 = vpop.permute.xlu1 %2253  ;;  %v3299_v6 = vpop.f32.mrb[1].mxu1 }
 0x365   :  { %v3044_v62 = vld [vmem:[#allocation3 + $0x100] sm:$0xff]  ;;  %1235 = vrot.lane.b32.xlu0 %v1634_v18, %s5277_s19 }
 0x366   :  { %3376 = vmatmul.mubr.f32.gmra.mrb[32].mxu1 %v3044_v62  ;;  %2269 = vrot.lane.b32.xlu1 %v2671_v53, %s5283_s30  ;;  %v6801_v18 = vld [vmem:[#allocation2 + $0x126] sm:$0xff]  ;;  %v6807_v53 = vld [vmem:[#allocation2 + $0x11e] sm:$0xff] }
 0x367   :  { %4658 = vmatprep.mubr.msk.f32.mxu1 %vm946_vm3, %v3047_v11  ;;  %v1730_v24 = vpop.permute.xlu0 %1729  ;;  %v6823_v62 = vld [vmem:[#allocation2 + $0x148] sm:$0xff] }
 0x368   :  { %1841 = vst.msk [vmem:[#allocation3 + $0x120] sm:$0xff] %vm1822_vm6, %v1730_v24  ;;  %v2768_v22 = vpop.permute.xlu1 %2767 }
 0x369   :  { %2880 = vst.msk [vmem:[#allocation3 + $0x110] sm:$0xff] %vm2862_vm11, %v2768_v22  ;;  %1495 = vrot.lane.b32.xlu0 %v2410_v39, %s5278_s20  ;;  %v6828_v22 = vld [vmem:[#allocation2 + $0x140] sm:$0xff] }
 0x36a   :  { %2525 = vrot.lane.b32.xlu1 %v6712_v61, %s5280_s27 }
 0x36b   :  { %v1990_v29 = vpop.permute.xlu0 %1989 }
 0x36c   :  { %2101 = vst.msk [vmem:[#allocation3 + $0x120] sm:$0xff] %vm2082_vm7, %v1990_v29  ;;  %v2510_v13 = vpop.permute.xlu1 %2509  ;;  %v6833_v29 = vld [vmem:[#allocation2 + $0x14a] sm:$0xff] }
 0x36d   :  { %2361 = vst.msk [vmem:[#allocation3 + $0x120] sm:$0xff] %vm2342_vm9, %v6652_v52  ;;  %2779 = vrot.lane.b32.xlu0 %v2670_v51, %s5279_s0  ;;  %v6767_v52 = vld [vmem:[#allocation2 + $0x138] sm:$0xff] }
 0x36e   :  { %2621 = vst.msk [vmem:[#allocation3 + $0x120] sm:$0xff] %vm2602_vm10, %v2510_v13  ;;  %1753 = vrot.lane.b32.xlu1 %v6720_v17, %s5282_s29 }
 0x36f   :  { %v1732_v46 = vpop.permute.xlu0 %1731 }
 0x370   :  { %1842 = vst.msk [vmem:[#allocation3 + $0x130] sm:$0xff] %vm1822_vm6, %v1732_v46  ;;  %v1738_v20 = vpop.permute.xlu1 %1737  ;;  %v3046_v8 = vld [vmem:[#allocation3 + $0x110] sm:$0xff]  ;;  %v6838_v46 = vld [vmem:[#allocation2 + $0x142] sm:$0xff] }
 0x371   :  { %v3302_v48 = vpop.f32.mrb[2].mxu1  ;;  %1845 = vst.msk [vmem:[#allocation3 + $0x160] sm:$0xff] %vm1822_vm6, %v1738_v20  ;;  %2267 = vrot.lane.b32.xlu0 %v2670_v51, %s5283_s30  ;;  %3381 = vmatmul.mubr.f32.gmra.mrb[34].mxu1 %v3046_v8 }
 0x372   :  { %v3304_v9 = vpop.f32.mrb[3].mxu1  ;;  %2013 = vrot.lane.b32.xlu1 %v6712_v61, %s5281_s28  ;;  %4659 = vmatprep.mubr.msk.f32.mxu1 %vm946_vm3, %v3049_v19 }
 0x373   :  { %v1992_v55 = vpop.permute.xlu0 %1991  ;;  %v3055_v9 = vld [vmem:[#allocation3 + $0x158] sm:$0xff] }
 0x374   :  { %2102 = vst.msk [vmem:[#allocation3 + $0x130] sm:$0xff] %vm2082_vm7, %v1992_v55  ;;  %v1998_v10 = vpop.permute.xlu1 %1997 }
 0x375   :  { %2362 = vst.msk [vmem:[#allocation3 + $0x130] sm:$0xff] %vm2342_vm9, %v6668_v60  ;;  %2523 = vrot.lane.b32.xlu0 %v6732_v7, %s5280_s27 }
 0x376   :  { %2105 = vst.msk [vmem:[#allocation3 + $0x160] sm:$0xff] %vm2082_vm7, %v1998_v10  ;;  %2785 = vrot.lane.b32.xlu1 %v2673_v34, %s5279_s0 }
 0x377   :  { %v1220_v50 = vpop.permute.xlu0 %1219 }
 0x378   :  { %1326 = vst.msk [vmem:[#allocation3 + $0x170] sm:$0xff] %vm1302_vm4, %v1220_v50  ;;  %v1226_v56 = vpop.permute.xlu1 %1225  ;;  %v6857_v50 = vld [vmem:[#allocation2 + $0x136] sm:$0xff] }
 0x379   :  { %1329 = vst.msk [vmem:[#allocation3 + $0x1a0] sm:$0xff] %vm1302_vm4, %v1226_v56  ;;  %1751 = vrot.lane.b32.xlu0 %v6741_v15, %s5282_s29 }
 0x37a   :  { %2273 = vrot.lane.b32.xlu1 %v2673_v34, %s5283_s30 }
 0x37b   :  { %v1480_v14 = vpop.permute.xlu0 %1479 }
 0x37c   :  { %1586 = vst.msk [vmem:[#allocation3 + $0x170] sm:$0xff] %vm1562_vm5, %v1480_v14  ;;  %v1486_v25 = vpop.permute.xlu1 %1485 }
 0x37d   :  { %1589 = vst.msk [vmem:[#allocation3 + $0x1a0] sm:$0xff] %vm1562_vm5, %v1486_v25  ;;  %2011 = vrot.lane.b32.xlu0 %v6732_v7, %s5281_s28 }
 0x37e   :  { %2529 = vrot.lane.b32.xlu1 %v6751_v16, %s5280_s27 }
 0x37f   :  { %v1734_v3 = vpop.permute.xlu0 %1733 }
 0x380   :  { %1843 = vst.msk [vmem:[#allocation3 + $0x140] sm:$0xff] %vm1822_vm6, %v1734_v3  ;;  %v2770_v38 = vpop.permute.xlu1 %2769 }
 0x381   :  { %2881 = vst.msk [vmem:[#allocation3 + $0x120] sm:$0xff] %vm2862_vm11, %v2770_v38  ;;  %2783 = vrot.lane.b32.xlu0 %v2672_v32, %s5279_s0  ;;  %v6864_v38 = vld [vmem:[#allocation2 + $0x12e] sm:$0xff] }
 0x382   :  { %2789 = vrot.lane.b32.xlu1 %v6758_v31, %s5279_s0 }
 0x383   :  { %v1994_v43 = vpop.permute.xlu0 %1993 }
 0x384   :  { %2103 = vst.msk [vmem:[#allocation3 + $0x140] sm:$0xff] %vm2082_vm7, %v1994_v43  ;;  %v2512_v12 = vpop.permute.xlu1 %2511 }
 0x385   :  { %2363 = vst.msk [vmem:[#allocation3 + $0x140] sm:$0xff] %vm2342_vm9, %v6704_v44  ;;  %2271 = vrot.lane.b32.xlu0 %v2672_v32, %s5283_s30 }
 0x386   :  { %2622 = vst.msk [vmem:[#allocation3 + $0x130] sm:$0xff] %vm2602_vm10, %v2512_v12  ;;  %2533 = vrot.lane.b32.xlu1 %v6767_v52, %s5280_s27 }
 0x387   :  { %v3307_v1 = vpop.f32.mrb[4].mxu1  ;;  %v1736_v37 = vpop.permute.xlu0 %1735 }
 0x388   :  { %1844 = vst.msk [vmem:[#allocation3 + $0x150] sm:$0xff] %vm1822_vm6, %v1736_v37  ;;  %v2258_v5 = vpop.permute.xlu1 %2257  ;;  %v3309_v21 = vpop.f32.mrb[5].mxu1  ;;  %v3048_v40 = vld [vmem:[#allocation3 + $0x120] sm:$0xff] }
 0x389   :  { %2365 = vst.msk [vmem:[#allocation3 + $0x160] sm:$0xff] %vm2342_vm9, %v2258_v5  ;;  %2527 = vrot.lane.b32.xlu0 %v6772_v33, %s5280_s27  ;;  %3386 = vmatmul.mubr.f32.gmra.mrb[36].mxu1 %v3048_v40 }
 0x38a   :  { %2793 = vrot.lane.b32.xlu1 %v6777_v63, %s5279_s0  ;;  %4660 = vmatprep.mubr.msk.f32.mxu1 %vm946_vm3, %v3051_v54 }
 0x38b   :  { %v3312_v60 = vpop.f32.mrb[6].mxu1  ;;  %v1996_v27 = vpop.permute.xlu0 %1995 }
 0x38c   :  { %2104 = vst.msk [vmem:[#allocation3 + $0x150] sm:$0xff] %vm2082_vm7, %v1996_v27  ;;  %v2772_v35 = vpop.permute.xlu1 %2771  ;;  %v3314_v36 = vpop.f32.mrb[7].mxu1  ;;  %v6885_v27 = vld [vmem:[#allocation2 + $0x158] sm:$0xff] }
 0x38d   :  { %2882 = vst.msk [vmem:[#allocation3 + $0x130] sm:$0xff] %vm2862_vm11, %v2772_v35  ;;  %2787 = vrot.lane.b32.xlu0 %v2674_v57, %s5279_s0 }
 0x38e   :  { %1237 = vrot.lane.b32.xlu1 %v6683_v30, %s5277_s19 }
 0x38f   :  { %v1224_v23 = vpop.permute.xlu0 %1223 }
 0x390   :  { %1328 = vst.msk [vmem:[#allocation3 + $0x190] sm:$0xff] %vm1302_vm4, %v1224_v23  ;;  %v2514_v49 = vpop.permute.xlu1 %2513  ;;  %v6896_v23 = vld [vmem:[#allocation2 + $0x15a] sm:$0xff] }
 0x391   :  { %2623 = vst.msk [vmem:[#allocation3 + $0x140] sm:$0xff] %vm2602_vm10, %v2514_v49  ;;  %2531 = vrot.lane.b32.xlu0 %v6788_v45, %s5280_s27 }
 0x392   :  { %1497 = vrot.lane.b32.xlu1 %v6676_v28, %s5278_s20 }
 0x393   :  { %v1484_v39 = vpop.permute.xlu0 %1483 }
 0x394   :  { %1588 = vst.msk [vmem:[#allocation3 + $0x190] sm:$0xff] %vm1562_vm5, %v1484_v39  ;;  %v1742_v26 = vpop.permute.xlu1 %1741  ;;  %v3050_v30 = vld [vmem:[#allocation3 + $0x130] sm:$0xff] }
 0x395   :  { %1847 = vst.msk [vmem:[#allocation3 + $0x180] sm:$0xff] %vm1822_vm6, %v1742_v26  ;;  %2791 = vrot.lane.b32.xlu0 %v6796_v58, %s5279_s0  ;;  %3391 = vmatmul.mubr.f32.gmra.mrb[38].mxu1 %v3050_v30  ;;  %v6901_v26 = vld [vmem:[#allocation2 + $0x152] sm:$0xff] }
 0x396   :  { %1757 = vrot.lane.b32.xlu1 %v6801_v18, %s5282_s29  ;;  %4661 = vmatprep.mubr.msk.f32.mxu1 %vm946_vm3, %v3053_v2 }
 0x397   :  { %v2256_v28 = vpop.permute.xlu0 %2255 }
 0x398   :  { %2364 = vst.msk [vmem:[#allocation3 + $0x150] sm:$0xff] %vm2342_vm9, %v2256_v28  ;;  %v2002_v59 = vpop.permute.xlu1 %2001 }
 0x399   :  { %2107 = vst.msk [vmem:[#allocation3 + $0x180] sm:$0xff] %vm2082_vm7, %v2002_v59  ;;  %1755 = vrot.lane.b32.xlu0 %v6807_v53, %s5282_s29 }
 0x39a   :  { %2017 = vrot.lane.b32.xlu1 %v6751_v16, %s5281_s28 }
 0x39b   :  { %v1740_v47 = vpop.permute.xlu0 %1739 }
 0x39c   :  { %1846 = vst.msk [vmem:[#allocation3 + $0x170] sm:$0xff] %vm1822_vm6, %v1740_v47  ;;  %v1230_v41 = vpop.permute.xlu1 %1229 }
 0x39d   :  { %1331 = vst.msk [vmem:[#allocation3 + $0x1c0] sm:$0xff] %vm1302_vm4, %v1230_v41  ;;  %2015 = vrot.lane.b32.xlu0 %v6772_v33, %s5281_s28 }
 0x39e   :  { %2277 = vrot.lane.b32.xlu1 %v6758_v31, %s5283_s30 }
 0x39f   :  { %v2000_v44 = vpop.permute.xlu0 %1999 }
 0x3a0   :  { %2106 = vst.msk [vmem:[#allocation3 + $0x170] sm:$0xff] %vm2082_vm7, %v2000_v44  ;;  %v1490_v6 = vpop.permute.xlu1 %1489 }
 0x3a1   :  { %1591 = vst.msk [vmem:[#allocation3 + $0x1c0] sm:$0xff] %vm1562_vm5, %v1490_v6  ;;  %2275 = vrot.lane.b32.xlu0 %v2674_v57, %s5283_s30  ;;  %v6890_v57 = vld [vmem:[#allocation2 + $0x150] sm:$0xff] }
 0x3a2   :  { %2537 = vrot.lane.b32.xlu1 %v6823_v62, %s5280_s27  ;;  %v3057_v6 = vld [vmem:[#allocation3 + $0x168] sm:$0xff] }
 0x3a3   :  { %v1228_v11 = vpop.permute.xlu0 %1227 }
 0x3a4   :  { %1330 = vst.msk [vmem:[#allocation3 + $0x1b0] sm:$0xff] %vm1302_vm4, %v1228_v11  ;;  %v2774_v24 = vpop.permute.xlu1 %2773 }
 0x3a5   :  { %2883 = vst.msk [vmem:[#allocation3 + $0x140] sm:$0xff] %vm2862_vm11, %v2774_v24  ;;  %2535 = vrot.lane.b32.xlu0 %v6828_v22, %s5280_s27 }
 0x3a6   :  { %2797 = vrot.lane.b32.xlu1 %v6833_v29, %s5279_s0 }
 0x3a7   :  { %v1488_v13 = vpop.permute.xlu0 %1487 }
 0x3a8   :  { %1590 = vst.msk [vmem:[#allocation3 + $0x1b0] sm:$0xff] %vm1562_vm5, %v1488_v13  ;;  %v2262_v51 = vpop.permute.xlu1 %2261  ;;  %v6926_v13 = vld [vmem:[#allocation2 + $0x13e] sm:$0xff] }
 0x3a9   :  { %2367 = vst.msk [vmem:[#allocation3 + $0x180] sm:$0xff] %vm2342_vm9, %v2262_v51  ;;  %2795 = vrot.lane.b32.xlu0 %v6838_v46, %s5279_s0  ;;  %v3059_v51 = vld [vmem:[#allocation3 + $0x178] sm:$0xff] }
 0x3aa   :  { %1241 = vrot.lane.b32.xlu1 %v6720_v17, %s5277_s19 }
 0x3ab   :  { %v2260_v20 = vpop.permute.xlu0 %2259 }
 0x3ac   :  { %2366 = vst.msk [vmem:[#allocation3 + $0x170] sm:$0xff] %vm2342_vm9, %v2260_v20  ;;  %v2518_v48 = vpop.permute.xlu1 %2517  ;;  %v3052_v8 = vld [vmem:[#allocation3 + $0x140] sm:$0xff] }
 0x3ad   :  { %2625 = vst.msk [vmem:[#allocation3 + $0x160] sm:$0xff] %vm2602_vm10, %v2518_v48  ;;  %1239 = vrot.lane.b32.xlu0 %v6741_v15, %s5277_s19  ;;  %3396 = vmatmul.mubr.f32.gmra.mrb[40].mxu1 %v3052_v8 }
 0x3ae   :  { %1501 = vrot.lane.b32.xlu1 %v6712_v61, %s5278_s20  ;;  %4662 = vmatprep.mubr.msk.f32.mxu1 %vm946_vm3, %v3055_v9 }
 0x3af   :  { %v3317_v19 = vpop.f32.mrb[8].mxu1  ;;  %v2516_v55 = vpop.permute.xlu0 %2515 }
 0x3b0   :  { %v3318_v17 = vadd.f32 %v6700_v42, %v3317_v19  ;;  %2624 = vst.msk [vmem:[#allocation3 + $0x150] sm:$0xff] %vm2602_vm10, %v2516_v55  ;;  %v1746_v10 = vpop.permute.xlu1 %1745  ;;  %v3319_v34 = vpop.f32.mrb[9].mxu1 }
 0x3b1   :  { %1849 = vst.msk [vmem:[#allocation3 + $0x1a0] sm:$0xff] %vm1822_vm6, %v1746_v10  ;;  %1499 = vrot.lane.b32.xlu0 %v6732_v7, %s5278_s20  ;;  %v6946_v10 = vld [vmem:[#allocation2 + $0x168] sm:$0xff] }
 0x3b2   :  { %v3515_v56 = vmax.f32 %v3318_v17, 0.0  ;;  %1761 = vrot.lane.b32.xlu1 %v6857_v50, %s5282_s29 }
 0x3b3   :  { %v3322_v61 = vpop.f32.mrb[10].mxu1  ;;  %v1744_v15 = vpop.permute.xlu0 %1743 }
 0x3b4   :  { %3559 = vst.msk [vmem:[#allocation4 + $0x20] sm:$0xff] %vm3554_vm12, %v3515_v56  ;;  %v3323_v14 = vadd.f32 %v6700_v42, %v3322_v61  ;;  %v2006_v25 = vpop.permute.xlu1 %2005  ;;  %v3324_v3 = vpop.f32.mrb[11].mxu1  ;;  %v6951_v56 = vld [vmem:[#allocation2 + $0x160] sm:$0xff]  ;;  %v6956_v61 = vld [vmem:[#allocation2 + $0x16a] sm:$0xff] }
 0x3b5   :  { %1848 = vst.msk [vmem:[#allocation3 + $0x190] sm:$0xff] %vm1822_vm6, %v1744_v15  ;;  %1759 = vrot.lane.b32.xlu0 %v6864_v38, %s5282_s29 }
 0x3b6   :  { %2109 = vst.msk [vmem:[#allocation3 + $0x1a0] sm:$0xff] %vm2082_vm7, %v2006_v25  ;;  %v3516_v7 = vmax.f32 %v3323_v14, 0.0  ;;  %2021 = vrot.lane.b32.xlu1 %v6767_v52, %s5281_s28 }
 0x3b7   :  { %v3327_v32 = vpop.f32.mrb[12].mxu1  ;;  %v2004_v31 = vpop.permute.xlu0 %2003 }
 0x3b8   :  { %3560 = vst.msk [vmem:[#allocation4 + $0x28] sm:$0xff] %vm3554_vm12, %v3516_v7  ;;  %v3328_v43 = vadd.f32 %v6700_v42, %v3327_v32  ;;  %v1234_v12 = vpop.permute.xlu1 %1233  ;;  %v3329_v1 = vpop.f32.mrb[13].mxu1  ;;  %v6961_v7 = vld [vmem:[#allocation2 + $0x162] sm:$0xff] }
 0x3b9   :  { %2108 = vst.msk [vmem:[#allocation3 + $0x190] sm:$0xff] %vm2082_vm7, %v2004_v31  ;;  %2019 = vrot.lane.b32.xlu0 %v6788_v45, %s5281_s28 }
 0x3ba   :  { %1333 = vst.msk [vmem:[#allocation3 + $0x1e0] sm:$0xff] %vm1302_vm4, %v1234_v12  ;;  %v3517_v37 = vmax.f32 %v3328_v43, 0.0  ;;  %2281 = vrot.lane.b32.xlu1 %v6777_v63, %s5283_s30 }
 0x3bb   :  { %v1232_v5 = vpop.permute.xlu0 %1231  ;;  %v3599_v15 = vld [vmem:[#allocation4 + $0x24] sm:$0x3]  ;;  %v3600_v14 = vld [vmem:[#allocation4 + $0x26] sm:$0x3] }
 0x3bc   :  { %3561 = vst.msk [vmem:[#allocation4 + $0x30] sm:$0xff] %vm3554_vm12, %v3517_v37  ;;  %v1494_v21 = vpop.permute.xlu1 %1493  ;;  %v3332_v40 = vpop.f32.mrb[14].mxu1  ;;  %v3601_v1 = vmax.f32 %v3599_v15, %v3600_v14  ;;  %v1645_v15 = vld [vmem:[#allocation2 + $0x156] sm:$0xff] }
 0x3bd   :  { %1332 = vst.msk [vmem:[#allocation3 + $0x1d0] sm:$0xff] %vm1302_vm4, %v1232_v5  ;;  %v3333_v54 = vadd.f32 %v6700_v42, %v3332_v40  ;;  %v3334_v60 = vpop.f32.mrb[15].mxu1  ;;  %2279 = vrot.lane.b32.xlu0 %v6796_v58, %s5283_s30  ;;  %v3065_v14 = vld [vmem:[#allocation3 + $0x1a8] sm:$0xff] }
 0x3be   :  { %1593 = vst.msk [vmem:[#allocation3 + $0x1e0] sm:$0xff] %vm1562_vm5, %v1494_v21  ;;  %2541 = vrot.lane.b32.xlu1 %v6885_v27, %s5280_s27  ;;  %v6974_v60 = vld [vmem:[#allocation2 + $0x172] sm:$0xff] }
 0x3bf   :  { %v3518_v63 = vmax.f32 %v3333_v54, 0.0  ;;  %v1492_v35 = vpop.permute.xlu0 %1491 }
 0x3c0   :  { %1592 = vst.msk [vmem:[#allocation3 + $0x1d0] sm:$0xff] %vm1562_vm5, %v1492_v35  ;;  %v2778_v36 = vpop.permute.xlu1 %2777 }
 0x3c1   :  { %3562 = vst.msk [vmem:[#allocation4 + $0x38] sm:$0xff] %vm3554_vm12, %v3518_v63  ;;  %2539 = vrot.lane.b32.xlu0 %v6890_v57, %s5280_s27 }
 0x3c2   :  { %2885 = vst.msk [vmem:[#allocation3 + $0x160] sm:$0xff] %vm2862_vm11, %v2778_v36  ;;  %2801 = vrot.lane.b32.xlu1 %v6896_v23, %s5279_s0 }
 0x3c3   :  { %v2776_v49 = vpop.permute.xlu0 %2775 }
 0x3c4   :  { %2884 = vst.msk [vmem:[#allocation3 + $0x150] sm:$0xff] %vm2862_vm11, %v2776_v49  ;;  %v2266_v39 = vpop.permute.xlu1 %2265  ;;  %v3061_v49 = vld [vmem:[#allocation3 + $0x188] sm:$0xff] }
 0x3c5   :  { %2369 = vst.msk [vmem:[#allocation3 + $0x1a0] sm:$0xff] %vm2342_vm9, %v2266_v39  ;;  %2799 = vrot.lane.b32.xlu0 %v6901_v26, %s5279_s0 }
 0x3c6   :  { %1245 = vrot.lane.b32.xlu1 %v6801_v18, %s5277_s19 }
 0x3c7   :  { %v2264_v58 = vpop.permute.xlu0 %2263 }
 0x3c8   :  { %2368 = vst.msk [vmem:[#allocation3 + $0x190] sm:$0xff] %vm2342_vm9, %v2264_v58  ;;  %v2522_v30 = vpop.permute.xlu1 %2521 }
 0x3c9   :  { %v3337_v2 = vpop.f32.mrb[16].mxu1  ;;  %2627 = vst.msk [vmem:[#allocation3 + $0x180] sm:$0xff] %vm2602_vm10, %v2522_v30  ;;  %1243 = vrot.lane.b32.xlu0 %v6807_v53, %s5277_s19  ;;  %v6921_v53 = vld [vmem:[#allocation2 + $0x146] sm:$0xff]  ;;  %v6987_v30 = vld [vmem:[#allocation2 + $0x14e] sm:$0xff] }
 0x3ca   :  { %v3338_v28 = vadd.f32 %v6700_v42, %v3337_v2  ;;  %v3339_v59 = vpop.f32.mrb[17].mxu1  ;;  %1505 = vrot.lane.b32.xlu1 %v6751_v16, %s5278_s20  ;;  %v3056_v11 = vld [vmem:[#allocation3 + $0x160] sm:$0xff]  ;;  %v3063_v2 = vld [vmem:[#allocation3 + $0x198] sm:$0xff] }
 0x3cb   :  { %v2520_v41 = vpop.permute.xlu0 %2519  ;;  %v3054_v44 = vld [vmem:[#allocation3 + $0x150] sm:$0xff] }
 0x3cc   :  { %v3519_v47 = vmax.f32 %v3338_v28, 0.0  ;;  %2626 = vst.msk [vmem:[#allocation3 + $0x170] sm:$0xff] %vm2602_vm10, %v2520_v41  ;;  %v1750_v18 = vpop.permute.xlu1 %1749  ;;  %3401 = vmatmul.mubr.f32.gmra.mrb[42].mxu1 %v3054_v44 }
 0x3cd   :  { %1851 = vst.msk [vmem:[#allocation3 + $0x1c0] sm:$0xff] %vm1822_vm6, %v1750_v18  ;;  %1503 = vrot.lane.b32.xlu0 %v6772_v33, %s5278_s20  ;;  %4663 = vmatprep.mubr.msk.f32.mxu1 %vm946_vm3, %v3057_v6  ;;  %v2425_v18 = vld [vmem:[#allocation2 + $0x178] sm:$0xff] }
 0x3ce   :  { %3563 = vst.msk [vmem:[#allocation4 + $0x40] sm:$0xff] %vm3554_vm12, %v3519_v47  ;;  %1765 = vrot.lane.b32.xlu1 %v6921_v53, %s5282_s29  ;;  %v2945_v6 = vld [vmem:[#allocation2 + $0x17c] sm:$0xff] }
 0x3cf   :  { %v1748_v16 = vpop.permute.xlu0 %1747  ;;  %2988 = vst.msk [vmem:[#allocation3 + $0x268] sm:$0xff] %vm946_vm3, %v2945_v6  ;;  %v1129_v6 = vld [vmem:[#allocation2 + $0x156] sm:$0xf] }
 0x3d0   :  { %1850 = vst.msk [vmem:[#allocation3 + $0x1b0] sm:$0xff] %vm1822_vm6, %v1748_v16  ;;  %v2010_v24 = vpop.permute.xlu1 %2009  ;;  %3406 = vmatmul.mubr.f32.gmra.mrb[44].mxu1 %v3056_v11  ;;  %v3668_v11 = vld [vmem:[#allocation4 + $0x34] sm:$0x3] }
 0x3d1   :  { %2111 = vst.msk [vmem:[#allocation3 + $0x1c0] sm:$0xff] %vm2082_vm7, %v2010_v24  ;;  %1763 = vrot.lane.b32.xlu0 %v6926_v13, %s5282_s29  ;;  %4664 = vmatprep.mubr.msk.f32.mxu1 %vm946_vm3, %v3059_v51 }
 0x3d2   :  { %2025 = vrot.lane.b32.xlu1 %v6823_v62, %s5281_s28 }
 0x3d3   :  { %v2008_v33 = vpop.permute.xlu0 %2007 }
 0x3d4   :  { %2110 = vst.msk [vmem:[#allocation3 + $0x1b0] sm:$0xff] %vm2082_vm7, %v2008_v33  ;;  %v2782_v20 = vpop.permute.xlu1 %2781  ;;  %v3342_v48 = vpop.f32.mrb[18].mxu1 }
 0x3d5   :  { %2887 = vst.msk [vmem:[#allocation3 + $0x180] sm:$0xff] %vm2862_vm11, %v2782_v20  ;;  %v3343_v8 = vadd.f32 %v6700_v42, %v3342_v48  ;;  %v3344_v9 = vpop.f32.mrb[19].mxu1  ;;  %2023 = vrot.lane.b32.xlu0 %v6828_v22, %s5281_s28  ;;  %v3602_v43 = vld [vmem:[#allocation4 + $0x46] sm:$0x3] }
 0x3d6   :  { %2285 = vrot.lane.b32.xlu1 %v6833_v29, %s5283_s30  ;;  %v2685_v48 = vld [vmem:[#allocation2 + $0x17a] sm:$0xff] }
 0x3d7   :  { %v3520_v19 = vmax.f32 %v3343_v8, 0.0  ;;  %v1236_v55 = vpop.permute.xlu0 %1235 }
 0x3d8   :  { %1334 = vst.msk [vmem:[#allocation3 + $0x1f0] sm:$0xff] %vm1302_vm4, %v1236_v55  ;;  %v2270_v17 = vpop.permute.xlu1 %2269 }
 0x3d9   :  { %3564 = vst.msk [vmem:[#allocation4 + $0x48] sm:$0xff] %vm3554_vm12, %v3520_v19  ;;  %2283 = vrot.lane.b32.xlu0 %v6838_v46, %s5283_s30 }
 0x3da   :  { %2371 = vst.msk [vmem:[#allocation3 + $0x1c0] sm:$0xff] %vm2342_vm9, %v2270_v17  ;;  %2545 = vrot.lane.b32.xlu1 %v6946_v10, %s5280_s27 }
 0x3db   :  { %v1496_v34 = vpop.permute.xlu0 %1495 }
 0x3dc   :  { %1594 = vst.msk [vmem:[#allocation3 + $0x1f0] sm:$0xff] %vm1562_vm5, %v1496_v34  ;;  %v2526_v29 = vpop.permute.xlu1 %2525  ;;  %v3060_v39 = vld [vmem:[#allocation3 + $0x180] sm:$0xff] }
 0x3dd   :  { %2629 = vst.msk [vmem:[#allocation3 + $0x1a0] sm:$0xff] %vm2602_vm10, %v2526_v29  ;;  %2543 = vrot.lane.b32.xlu0 %v6951_v56, %s5280_s27 }
 0x3de   :  { %2805 = vrot.lane.b32.xlu1 %v6956_v61, %s5279_s0 }
 0x3df   :  { %v2780_v46 = vpop.permute.xlu0 %2779 }
 0x3e0   :  { %2886 = vst.msk [vmem:[#allocation3 + $0x170] sm:$0xff] %vm2862_vm11, %v2780_v46  ;;  %v1754_v25 = vpop.permute.xlu1 %1753  ;;  %v3347_v3 = vpop.f32.mrb[20].mxu1  ;;  %v3603_v12 = vld [vmem:[#allocation4 + $0x48] sm:$0x3] }
 0x3e1   :  { %1853 = vst.msk [vmem:[#allocation3 + $0x1e0] sm:$0xff] %vm1822_vm6, %v1754_v25  ;;  %v3348_v32 = vadd.f32 %v6700_v42, %v3347_v3  ;;  %v3349_v31 = vpop.f32.mrb[21].mxu1  ;;  %2803 = vrot.lane.b32.xlu0 %v6961_v7, %s5279_s0  ;;  %v3604_v37 = vmax.f32 %v3602_v43, %v3603_v12 }
 0x3e2   :  { %2287 = vrot.lane.b32.xlu1 %v6901_v26, %s5283_s30  ;;  %v3067_v31 = vld [vmem:[#allocation3 + $0x1b8] sm:$0xff] }
 0x3e3   :  { %v3521_v5 = vmax.f32 %v3348_v32, 0.0  ;;  %v2268_v21 = vpop.permute.xlu0 %2267  ;;  %v3605_v54 = vmax.f32 %v3601_v1, %v3604_v37 }
 0x3e4   :  { %2370 = vst.msk [vmem:[#allocation3 + $0x1b0] sm:$0xff] %vm2342_vm9, %v2268_v21  ;;  %v2014_v40 = vpop.permute.xlu1 %2013 }
 0x3e5   :  { %3565 = vst.msk [vmem:[#allocation4 + $0x50] sm:$0xff] %vm3554_vm12, %v3521_v5  ;;  %1247 = vrot.lane.b32.xlu0 %v6864_v38, %s5277_s19  ;;  %v1647_v5 = vld [vmem:[#allocation2 + $0x166] sm:$0xff] }
 0x3e6   :  { %2113 = vst.msk [vmem:[#allocation3 + $0x1e0] sm:$0xff] %vm2082_vm7, %v2014_v40  ;;  %2807 = vrot.lane.b32.xlu1 %v6974_v60, %s5279_s0 }
 0x3e7   :  { %3607 = vst.msk [vmem:[#allocation5] sm:$0x3] %vm3606_vm13, %v3605_v54  ;;  %v2524_v63 = vpop.permute.xlu0 %2523  ;;  %v3058_v35 = vld [vmem:[#allocation3 + $0x170] sm:$0xff] }
 0x3e8   :  { %2628 = vst.msk [vmem:[#allocation3 + $0x190] sm:$0xff] %vm2602_vm10, %v2524_v63  ;;  %v2786_v36 = vpop.permute.xlu1 %2785  ;;  %3411 = vmatmul.mubr.f32.gmra.mrb[46].mxu1 %v3058_v35  ;;  %v1646_v54 = vld [vmem:[#allocation2 + $0x15e] sm:$0xff]  ;;  %v3069_v63 = vld [vmem:[#allocation3 + $0x1c8] sm:$0xff] }
 0x3e9   :  { %2889 = vst.msk [vmem:[#allocation3 + $0x1a0] sm:$0xff] %vm2862_vm11, %v2786_v36  ;;  %1507 = vrot.lane.b32.xlu0 %v6788_v45, %s5278_s20  ;;  %4665 = vmatprep.mubr.msk.f32.mxu1 %vm946_vm3, %v3061_v49  ;;  %v3071_v49 = vld [vmem:[#allocation3 + $0x1d8] sm:$0xff] }
 0x3ea   :  { %1509 = vrot.lane.b32.xlu1 %v6767_v52, %s5278_s20 }
 0x3eb   :  { %v1752_v38 = vpop.permute.xlu0 %1751 }
 0x3ec   :  { %1852 = vst.msk [vmem:[#allocation3 + $0x1d0] sm:$0xff] %vm1822_vm6, %v1752_v38  ;;  %v2274_v26 = vpop.permute.xlu1 %2273  ;;  %v3352_v58 = vpop.f32.mrb[22].mxu1  ;;  %3416 = vmatmul.mubr.f32.gmra.mrb[48].mxu1 %v3060_v39  ;;  %v3671_v8 = vld [vmem:[#allocation4 + $0x56] sm:$0x3] }
 0x3ed   :  { %2373 = vst.msk [vmem:[#allocation3 + $0x1e0] sm:$0xff] %vm2342_vm9, %v2274_v26  ;;  %v3353_v28 = vadd.f32 %v6700_v42, %v3352_v58  ;;  %v3354_v45 = vpop.f32.mrb[23].mxu1  ;;  %1767 = vrot.lane.b32.xlu0 %v6987_v30, %s5282_s29  ;;  %4666 = vmatprep.mubr.msk.f32.mxu1 %vm946_vm3, %v3063_v2  ;;  %v3073_v58 = vld [vmem:[#allocation3 + $0x1e8] sm:$0xff] }
 0x3ee   :  { %2029 = vrot.lane.b32.xlu1 %v6885_v27, %s5281_s28  ;;  %v7004_v27 = vld [vmem:[#allocation2 + $0x170] sm:$0xff] }
 0x3ef   :  { %v3522_v52 = vmax.f32 %v3353_v28, 0.0  ;;  %v2012_v59 = vpop.permute.xlu0 %2011  ;;  %v2687_v28 = vld [vmem:[#allocation2 + $0x18a] sm:$0xff] }
 0x3f0   :  { %2112 = vst.msk [vmem:[#allocation3 + $0x1d0] sm:$0xff] %vm2082_vm7, %v2012_v59  ;;  %v2530_v47 = vpop.permute.xlu1 %2529  ;;  %v3064_v3 = vld [vmem:[#allocation3 + $0x1a0] sm:$0xff] }
 0x3f1   :  { %3566 = vst.msk [vmem:[#allocation4 + $0x58] sm:$0xff] %vm3554_vm12, %v3522_v52  ;;  %2027 = vrot.lane.b32.xlu0 %v6890_v57, %s5281_s28  ;;  %v3075_v52 = vld [vmem:[#allocation3 + $0x1f8] sm:$0xff] }
 0x3f2   :  { %2631 = vst.msk [vmem:[#allocation3 + $0x1c0] sm:$0xff] %vm2602_vm10, %v2530_v47  ;;  %2289 = vrot.lane.b32.xlu1 %v6896_v23, %s5283_s30  ;;  %v3669_v23 = vld [vmem:[#allocation4 + $0x36] sm:$0x3] }
 0x3f3   :  { %v2784_v41 = vpop.permute.xlu0 %2783  ;;  %v3670_v19 = vmax.f32 %v3668_v11, %v3669_v23  ;;  %v5284_v11 = vmov 1983009808  }
 0x3f4   :  { %2888 = vst.msk [vmem:[#allocation3 + $0x190] sm:$0xff] %vm2862_vm11, %v2784_v41  ;;  %v2790_v44 = vpop.permute.xlu1 %2789  ;;  %v3617_v23 = vunpack.c.l.s4 %v5284_v11  ;;  %v2688_v11 = vld [vmem:[#allocation2 + $0x192] sm:$0xff] }
 0x3f5   :  { %2891 = vst.msk [vmem:[#allocation3 + $0x1c0] sm:$0xff] %vm2862_vm11, %v2790_v44  ;;  %2547 = vrot.lane.b32.xlu0 %v7004_v27, %s5280_s27 }
 0x3f6   :  { %2549 = vrot.lane.b32.xlu1 %v2425_v18, %s5280_s27 }
 0x3f7   :  { %v2272_v16 = vpop.permute.xlu0 %2271 }
 0x3f8   :  { %2372 = vst.msk [vmem:[#allocation3 + $0x1d0] sm:$0xff] %vm2342_vm9, %v2272_v16  ;;  %v2534_v24 = vpop.permute.xlu1 %2533  ;;  %v3672_v9 = vld [vmem:[#allocation4 + $0x58] sm:$0x3]  ;;  %v3632_v16 = vld [vmem:[#allocation4 + $0x50] sm:$0x3] }
 0x3f9   :  { %v3357_v51 = vpop.f32.mrb[24].mxu1  ;;  %2633 = vst.msk [vmem:[#allocation3 + $0x1e0] sm:$0xff] %vm2602_vm10, %v2534_v24  ;;  %1249 = vrot.lane.b32.xlu0 %v6857_v50, %s5277_s19  ;;  %v3673_v55 = vmax.f32 %v3671_v8, %v3672_v9  ;;  %v3619_v24 = vlaneseq  ;;  %v3631_v8 = vld [vmem:[#allocation4 + $0x4e] sm:$0x3] }
 0x3fa   :  { %v3358_v33 = vadd.f32 %v6700_v42, %v3357_v51  ;;  %v3359_v20 = vpop.f32.mrb[25].mxu1  ;;  %2809 = vrot.lane.b32.xlu1 %v2685_v48, %s5279_s0  ;;  %v3628_v51 = vld [vmem:[#allocation4 + $0x2c] sm:$0x3]  ;;  %v3629_v48 = vld [vmem:[#allocation4 + $0x2e] sm:$0x3] }
 0x3fb   :  { %v2528_v34 = vpop.permute.xlu0 %2527  ;;  %v3062_v29 = vld [vmem:[#allocation3 + $0x190] sm:$0xff]  ;;  %v3674_v25 = vmax.f32 %v3670_v19, %v3673_v55  ;;  %v3633_v19 = vmax.f32 %v3631_v8, %v3632_v16  ;;  %v3651_v55 = vld [vmem:[#allocation4 + $0x52] sm:$0x3] }
 0x3fc   :  { %v3523_v17 = vmax.f32 %v3358_v33, 0.0  ;;  %2630 = vst.msk [vmem:[#allocation3 + $0x1b0] sm:$0xff] %vm2602_vm10, %v2528_v34  ;;  %v2794_v46 = vpop.permute.xlu1 %2793  ;;  %3421 = vmatmul.mubr.f32.gmra.mrb[50].mxu1 %v3062_v29  ;;  %v3068_v35 = vld [vmem:[#allocation3 + $0x1c0] sm:$0xff]  ;;  %v3618_v34 = vunpack.c.0.s8 %v3617_v23  ;;  %v3620_v29 = vshrl.u32 %v3619_v24, 7  ;;  %v3695_v24 = vld [vmem:[#allocation4 + $0x3c] sm:$0x3] }
 0x3fd   :  { %2893 = vst.msk [vmem:[#allocation3 + $0x1e0] sm:$0xff] %vm2862_vm11, %v2794_v46  ;;  %1769 = vrot.lane.b32.xlu0 %v1645_v15, %s5282_s29  ;;  %4667 = vmatprep.mubr.msk.f32.mxu1 %vm946_vm3, %v3065_v14  ;;  %v3630_v46 = vmax.f32 %v3628_v51, %v3629_v48  ;;  %v3648_v14 = vld [vmem:[#allocation4 + $0x30] sm:$0x3]  ;;  %v3696_v51 = vld [vmem:[#allocation4 + $0x3e] sm:$0x3] }
 0x3fe   :  { %3567 = vst.msk [vmem:[#allocation4 + $0x60] sm:$0xff] %vm3554_vm12, %v3523_v17  ;;  %1253 = vrot.lane.b32.xlu1 %v6921_v53, %s5277_s19  ;;  %v3652_v17 = vld [vmem:[#allocation4 + $0x54] sm:$0x3] }
 0x3ff   :  { %3675 = vst.msk [vmem:[#allocation5 + $0x2] sm:$0x3] %vm3606_vm13, %v3674_v25  ;;  %v2788_v50 = vpop.permute.xlu0 %2787  ;;  %v3649_v25 = vld [vmem:[#allocation4 + $0x32] sm:$0x3] }
 0x400   :  { %2890 = vst.msk [vmem:[#allocation3 + $0x1b0] sm:$0xff] %vm2862_vm11, %v2788_v50  ;;  %v1238_v32 = vpop.permute.xlu1 %1237  ;;  %3426 = vmatmul.mubr.f32.gmra.mrb[52].mxu1 %v3064_v3  ;;  %v3634_v3 = vmax.f32 %v3630_v46, %v3633_v19 }
 0x401   :  { %1335 = vst.msk [vmem:[#allocation3 + $0x200] sm:$0xff] %vm1302_vm4, %v1238_v32  ;;  %1251 = vrot.lane.b32.xlu0 %v6926_v13, %s5277_s19  ;;  %4668 = vmatprep.mubr.msk.f32.mxu1 %vm946_vm3, %v3067_v31  ;;  %v3653_v32 = vmax.f32 %v3651_v55, %v3652_v17  ;;  %v3679_v31 = vld [vmem:[#allocation4 + $0x5a] sm:$0x3] }
 0x402   :  { %1513 = vrot.lane.b32.xlu1 %v6823_v62, %s5278_s20 }
 0x403   :  { %v2532_v53 = vpop.permute.xlu0 %2531 }
 0x404   :  { %2632 = vst.msk [vmem:[#allocation3 + $0x1d0] sm:$0xff] %vm2602_vm10, %v2532_v53  ;;  %v1498_v43 = vpop.permute.xlu1 %1497  ;;  %v3362_v12 = vpop.f32.mrb[26].mxu1  ;;  %v3680_v53 = vld [vmem:[#allocation4 + $0x5c] sm:$0x3] }
 0x405   :  { %1595 = vst.msk [vmem:[#allocation3 + $0x200] sm:$0xff] %vm1562_vm5, %v1498_v43  ;;  %v3363_v1 = vadd.f32 %v6700_v42, %v3362_v12  ;;  %v3364_v37 = vpop.f32.mrb[27].mxu1  ;;  %1511 = vrot.lane.b32.xlu0 %v6828_v22, %s5278_s20  ;;  %v7079_v43 = vsub.s32 %v3618_v34, %v3620_v29  ;;  %v3650_v12 = vmax.f32 %v3648_v14, %v3649_v25  ;;  %v3699_v16 = vld [vmem:[#allocation4 + $0x60] sm:$0x3] }
 0x406   :  { %1773 = vrot.lane.b32.xlu1 %v1647_v5, %s5282_s29  ;;  %v3676_v5 = vld [vmem:[#allocation4 + $0x38] sm:$0x3] }
 0x407   :  { %v3524_v13 = vmax.f32 %v3363_v1, 0.0  ;;  %v2792_v21 = vpop.permute.xlu0 %2791  ;;  %v3066_v40 = vld [vmem:[#allocation3 + $0x1b0] sm:$0xff] }
 0x408   :  { %2892 = vst.msk [vmem:[#allocation3 + $0x1d0] sm:$0xff] %vm2862_vm11, %v2792_v21  ;;  %v1758_v62 = vpop.permute.xlu1 %1757  ;;  %3431 = vmatmul.mubr.f32.gmra.mrb[54].mxu1 %v3066_v40 }
 0x409   :  { %3568 = vst.msk [vmem:[#allocation4 + $0x68] sm:$0xff] %vm3554_vm12, %v3524_v13  ;;  %1771 = vrot.lane.b32.xlu0 %v1646_v54, %s5282_s29  ;;  %4669 = vmatprep.mubr.msk.f32.mxu1 %vm946_vm3, %v3069_v63  ;;  %v3677_v13 = vld [vmem:[#allocation4 + $0x3a] sm:$0x3]  ;;  %v3654_v63 = vmax.f32 %v3650_v12, %v3653_v32 }
 0x40a   :  { %1855 = vst.msk [vmem:[#allocation3 + $0x200] sm:$0xff] %vm1822_vm6, %v1758_v62  ;;  %2033 = vrot.lane.b32.xlu1 %v6946_v10, %s5281_s28  ;;  %v2427_v10 = vld [vmem:[#allocation2 + $0x188] sm:$0xff]  ;;  %v3077_v54 = vld [vmem:[#allocation3 + $0x208] sm:$0xff] }
 0x40b   :  { %v1756_v22 = vpop.permute.xlu0 %1755  ;;  %v1648_v62 = vld [vmem:[#allocation2 + $0x16e] sm:$0xff] }
 0x40c   :  { %1854 = vst.msk [vmem:[#allocation3 + $0x1f0] sm:$0xff] %vm1822_vm6, %v1756_v22  ;;  %v2018_v36 = vpop.permute.xlu1 %2017  ;;  %3436 = vmatmul.mubr.f32.gmra.mrb[56].mxu1 %v3068_v35  ;;  %v3681_v22 = vmax.f32 %v3679_v31, %v3680_v53  ;;  %v7087_v35 = vld [vmem:[%s7722_s1 + $0xb8] ss:$0 sm:$0xff]  ;;  %v3081_v31 = vld [vmem:[#allocation3 + $0x228] sm:$0xff] }
 0x40d   :  { %2115 = vst.msk [vmem:[#allocation3 + $0x200] sm:$0xff] %vm2082_vm7, %v2018_v36  ;;  %2031 = vrot.lane.b32.xlu0 %v6951_v56, %s5281_s28  ;;  %4670 = vmatprep.mubr.msk.f32.mxu1 %vm946_vm3, %v3071_v49  ;;  %v2426_v56 = vld [vmem:[#allocation2 + $0x180] sm:$0xff] }
 0x40e   :  { %2293 = vrot.lane.b32.xlu1 %v6956_v61, %s5283_s30  ;;  %v3072_v61 = vld [vmem:[#allocation3 + $0x1e0] sm:$0xff] }
 0x40f   :  { %v2016_v38 = vpop.permute.xlu0 %2015  ;;  %v3070_v39 = vld [vmem:[#allocation3 + $0x1d0] sm:$0xff] }
 0x410   :  { %2114 = vst.msk [vmem:[#allocation3 + $0x1f0] sm:$0xff] %vm2082_vm7, %v2016_v38  ;;  %v2278_v26 = vpop.permute.xlu1 %2277  ;;  %3441 = vmatmul.mubr.f32.gmra.mrb[58].mxu1 %v3070_v39  ;;  %v3678_v38 = vmax.f32 %v3676_v5, %v3677_v13  ;;  %v3083_v5 = vld [vmem:[#allocation3 + $0x238] sm:$0xff] }
 0x411   :  { %2375 = vst.msk [vmem:[#allocation3 + $0x200] sm:$0xff] %vm2342_vm9, %v2278_v26  ;;  %2291 = vrot.lane.b32.xlu0 %v6961_v7, %s5283_s30  ;;  %4671 = vmatprep.mubr.msk.f32.mxu1 %vm946_vm3, %v3073_v58  ;;  %v2686_v7 = vld [vmem:[#allocation2 + $0x182] sm:$0xff] }
 0x412   :  { %2553 = vrot.lane.b32.xlu1 %v2427_v10, %s5280_s27 }
 0x413   :  { %v2276_v2 = vpop.permute.xlu0 %2275 }
 0x414   :  { %2374 = vst.msk [vmem:[#allocation3 + $0x1f0] sm:$0xff] %vm2342_vm9, %v2276_v2  ;;  %v2538_v45 = vpop.permute.xlu1 %2537  ;;  %3446 = vmatmul.mubr.f32.gmra.mrb[60].mxu1 %v3072_v61  ;;  %v3662_v2 = vrot.slane %v3654_v63, %v7079_v43  ;;  %v3682_v61 = vmax.f32 %v3678_v38, %v3681_v22  ;;  %v3714_v22 = vld [vmem:[#allocation4 + $0x68] sm:$0x3] }
 0x415   :  { %2635 = vst.msk [vmem:[#allocation3 + $0x200] sm:$0xff] %vm2602_vm10, %v2538_v45  ;;  %2551 = vrot.lane.b32.xlu0 %v2426_v56, %s5280_s27  ;;  %4672 = vmatprep.mubr.msk.f32.mxu1 %vm946_vm3, %v3075_v52  ;;  %v3079_v56 = vld [vmem:[#allocation3 + $0x218] sm:$0xff] }
 0x416   :  { %2813 = vrot.lane.b32.xlu1 %v2687_v28, %s5279_s0  ;;  %v3690_v52 = vrot.slane %v3682_v61, %v7079_v43 }
 0x417   :  { %v2536_v59 = vpop.permute.xlu0 %2535 }
 0x418   :  { %2634 = vst.msk [vmem:[#allocation3 + $0x1f0] sm:$0xff] %vm2602_vm10, %v2536_v59  ;;  %v2798_v47 = vpop.permute.xlu1 %2797  ;;  %v3612_v59 = vld [vmem:[#allocation4 + $0x4c] sm:$0x3] }
 0x419   :  { %v3367_v41 = vpop.f32.mrb[28].mxu1  ;;  %2895 = vst.msk [vmem:[#allocation3 + $0x200] sm:$0xff] %vm2862_vm11, %v2798_v47  ;;  %2811 = vrot.lane.b32.xlu0 %v2686_v7, %s5279_s0  ;;  %v3611_v7 = vld [vmem:[#allocation4 + $0x4a] sm:$0x3]  ;;  %v3608_v47 = vld [vmem:[#allocation4 + $0x28] sm:$0x3] }
 0x41a   :  { %v3368_v44 = vadd.f32 %v6700_v42, %v3367_v41  ;;  %v3369_v18 = vpop.f32.mrb[29].mxu1  ;;  %1257 = vrot.lane.b32.xlu1 %v1129_v6, %s5277_s19  ;;  %v1389_v42 = vld [vmem:[#allocation2 + $0x158] sm:$0xf]  ;;  %v3609_v41 = vld [vmem:[#allocation4 + $0x2a] sm:$0x3] }
 0x41b   :  { %v2796_v20 = vpop.permute.xlu0 %2795  ;;  %v3613_v18 = vmax.f32 %v3611_v7, %v3612_v59  ;;  %v3610_v23 = vmax.f32 %v3608_v47, %v3609_v41  ;;  %v3085_v41 = vld [vmem:[#allocation3 + $0x248] sm:$0xff] }
 0x41c   :  { %v3525_v33 = vmax.f32 %v3368_v44, 0.0  ;;  %2894 = vst.msk [vmem:[#allocation3 + $0x1f0] sm:$0xff] %vm2862_vm11, %v2796_v20  ;;  %v1242_v9 = vpop.permute.xlu1 %1241 }
 0x41d   :  { %1337 = vst.msk [vmem:[#allocation3 + $0x220] sm:$0xff] %vm1302_vm4, %v1242_v9  ;;  %1255 = vrot.lane.b32.xlu0 %v6987_v30, %s5277_s19  ;;  %v1649_v30 = vld [vmem:[#allocation2 + $0x176] sm:$0xf]  ;;  %v3614_v20 = vmax.f32 %v3610_v23, %v3613_v18  ;;  %v3697_v9 = vmax.f32 %v3695_v24, %v3696_v51  ;;  %v3087_v24 = vld [vmem:[#allocation3 + $0x258] sm:$0xff] }
 0x41e   :  { %3569 = vst.msk [vmem:[#allocation4 + $0x70] sm:$0xff] %vm3554_vm12, %v3525_v33  ;;  %1517 = vrot.lane.b32.xlu1 %v1389_v42, %s5278_s20 }
 0x41f   :  { %v1240_v15 = vpop.permute.xlu0 %1239  ;;  %v3622_v42 = vrot.slane %v3614_v20, %v7079_v43 }
 0x420   :  { %1336 = vst.msk [vmem:[#allocation3 + $0x210] sm:$0xff] %vm1302_vm4, %v1240_v15  ;;  %v1502_v50 = vpop.permute.xlu1 %1501  ;;  %v3076_v26 = vld [vmem:[#allocation3 + $0x200] sm:$0xff] }
 0x421   :  { %1597 = vst.msk [vmem:[#allocation3 + $0x220] sm:$0xff] %vm1562_vm5, %v1502_v50  ;;  %1515 = vrot.lane.b32.xlu0 %v6890_v57, %s5278_s20  ;;  %v3642_v57 = vrot.slane %v3634_v3, %v7079_v43 }
 0x422   :  { %1777 = vrot.lane.b32.xlu1 %v1649_v30, %s5282_s29 }
 0x423   :  { %v1500_v1 = vpop.permute.xlu0 %1499  ;;  %v3074_v37 = vld [vmem:[#allocation3 + $0x1f0] sm:$0xff] }
 0x424   :  { %1596 = vst.msk [vmem:[#allocation3 + $0x210] sm:$0xff] %vm1562_vm5, %v1500_v1  ;;  %v1762_v21 = vpop.permute.xlu1 %1761  ;;  %v3372_v40 = vpop.f32.mrb[30].mxu1  ;;  %3451 = vmatmul.mubr.f32.gmra.mrb[62].mxu1 %v3074_v37 }
 0x425   :  { %1857 = vst.msk [vmem:[#allocation3 + $0x220] sm:$0xff] %vm1822_vm6, %v1762_v21  ;;  %v3373_v36 = vadd.f32 %v7087_v35, %v3372_v40  ;;  %v3374_v49 = vpop.f32.mrb[31].mxu1  ;;  %1775 = vrot.lane.b32.xlu0 %v1648_v62, %s5282_s29  ;;  %4673 = vmatprep.mubr.msk.f32.mxu1 %vm946_vm3, %v3077_v54  ;;  %v3742_v20 = vld [vmem:[#allocation4 + $0x72] sm:$0x3] }
 0x426   :  { %3643 = vrot.lane.b32.xlu1 %v3642_v57, %s5281_s28 }
 0x427   :  { %v3526_v39 = vmax.f32 %v3373_v36, 0.0  ;;  %v1760_v10 = vpop.permute.xlu0 %1759  ;;  %v3715_v36 = vld [vmem:[#allocation4 + $0x6a] sm:$0x3] }
 0x428   :  { %1856 = vst.msk [vmem:[#allocation3 + $0x210] sm:$0xff] %vm1822_vm6, %v1760_v10  ;;  %v2022_v58 = vpop.permute.xlu1 %2021  ;;  %3456 = vmatmul.mubr.f32.gmra.mrb[64].mxu1 %v3076_v26  ;;  %v3716_v26 = vmax.f32 %v3714_v22, %v3715_v36 }
 0x429   :  { %3570 = vst.msk [vmem:[#allocation4 + $0x78] sm:$0xff] %vm3554_vm12, %v3526_v39  ;;  %2035 = vrot.lane.b32.xlu0 %v7004_v27, %s5281_s28  ;;  %4674 = vmatprep.mubr.msk.f32.mxu1 %vm946_vm3, %v3079_v56  ;;  %v2428_v27 = vld [vmem:[#allocation2 + $0x190] sm:$0xff] }
 0x42a   :  { %2117 = vst.msk [vmem:[#allocation3 + $0x220] sm:$0xff] %vm2082_vm7, %v2022_v58  ;;  %3663 = vrot.lane.b32.xlu1 %v3662_v2, %s5280_s27 }
 0x42b   :  { %v2020_v28 = vpop.permute.xlu0 %2019 }
 0x42c   :  { %2116 = vst.msk [vmem:[#allocation3 + $0x210] sm:$0xff] %vm2082_vm7, %v2020_v28  ;;  %v2282_v45 = vpop.permute.xlu1 %2281 }
 0x42d   :  { %2377 = vst.msk [vmem:[#allocation3 + $0x220] sm:$0xff] %vm2342_vm9, %v2282_v45  ;;  %2295 = vrot.lane.b32.xlu0 %v6974_v60, %s5283_s30  ;;  %v3698_v60 = vld [vmem:[#allocation4 + $0x5e] sm:$0x3] }
 0x42e   :  { %3691 = vrot.lane.b32.xlu1 %v3690_v52, %s5278_s20  ;;  %v3700_v48 = vmax.f32 %v3698_v60, %v3699_v16 }
 0x42f   :  { %v2280_v44 = vpop.permute.xlu0 %2279 }
 0x430   :  { %2376 = vst.msk [vmem:[#allocation3 + $0x210] sm:$0xff] %vm2342_vm9, %v2280_v44  ;;  %v2542_v6 = vpop.permute.xlu1 %2541  ;;  %v3701_v55 = vmax.f32 %v3697_v9, %v3700_v48  ;;  %v3734_v9 = vld [vmem:[#allocation4 + $0x6e] sm:$0x3]  ;;  %v3780_v22 = vld [vmem:[#allocation4 + $0x7a] sm:$0x3] }
 0x431   :  { %2637 = vst.msk [vmem:[#allocation3 + $0x220] sm:$0xff] %vm2602_vm10, %v2542_v6  ;;  %2555 = vrot.lane.b32.xlu0 %v2428_v27, %s5280_s27 }
 0x432   :  { %v3709_v25 = vrot.slane %v3701_v55, %v7079_v43 }
 0x433   :  { %v2540_v33 = vpop.permute.xlu0 %2539 }
 0x434   :  { %2636 = vst.msk [vmem:[#allocation3 + $0x210] sm:$0xff] %vm2602_vm10, %v2540_v33  ;;  %v2802_v8 = vpop.permute.xlu1 %2801  ;;  %v3741_v33 = vld [vmem:[#allocation4 + $0x70] sm:$0x3] }
 0x435   :  { %2897 = vst.msk [vmem:[#allocation3 + $0x220] sm:$0xff] %vm2862_vm11, %v2802_v8  ;;  %2815 = vrot.lane.b32.xlu0 %v2688_v11, %s5279_s0  ;;  %v3733_v8 = vld [vmem:[#allocation4 + $0x6c] sm:$0x3] }
 0x437   :  { %v2800_v19 = vpop.permute.xlu0 %2799 }
 0x438   :  { %2896 = vst.msk [vmem:[#allocation3 + $0x210] sm:$0xff] %vm2862_vm11, %v2800_v19  ;;  %v1246_v17 = vpop.permute.xlu1 %1245 }
 0x439   :  { %v3377_v34 = vpop.f32.mrb[32].mxu1  ;;  %1339 = vst.msk [vmem:[#allocation3 + $0x240] sm:$0xff] %vm1302_vm4, %v1246_v17  ;;  %3623 = vrot.lane.b32.xlu0 %v3622_v42, %s5278_s20 }
 0x43a   :  { %v3378_v29 = vadd.f32 %v7087_v35, %v3377_v34  ;;  %v3379_v46 = vpop.f32.mrb[33].mxu1 }
 0x43b   :  { %v1244_v14 = vpop.permute.xlu0 %1243  ;;  %v3743_v46 = vmax.f32 %v3741_v33, %v3742_v20  ;;  %v3798_v33 = vld [vmem:[#allocation4 + $0x7c] sm:$0x3] }
 0x43c   :  { %v3527_v15 = vmax.f32 %v3378_v29, 0.0  ;;  %1338 = vst.msk [vmem:[#allocation3 + $0x230] sm:$0xff] %vm1302_vm4, %v1244_v14  ;;  %v1506_v50 = vpop.permute.xlu1 %1505  ;;  %v3080_v12 = vld [vmem:[#allocation3 + $0x220] sm:$0xff] }
 0x43d   :  { %1599 = vst.msk [vmem:[#allocation3 + $0x240] sm:$0xff] %vm1562_vm5, %v1506_v50  ;;  %3710 = vrot.lane.b32.xlu0 %v3709_v25, %s5281_s28  ;;  %v3735_v50 = vmax.f32 %v3733_v8, %v3734_v9  ;;  %v3799_v8 = vld [vmem:[#allocation4 + $0x7e] sm:$0x3]  ;;  %v4074_v9 = vld [vmem:[%s7722_s1 + $0x1c0] sm:$0xff] }
 0x43e   :  { %3571 = vst.msk [vmem:[#allocation4 + $0x80] sm:$0xff] %vm3554_vm12, %v3527_v15 }
 0x43f   :  { %v1504_v3 = vpop.permute.xlu0 %1503  ;;  %v3078_v32 = vld [vmem:[#allocation3 + $0x210] sm:$0xff] }
 0x440   :  { %1598 = vst.msk [vmem:[#allocation3 + $0x230] sm:$0xff] %vm1562_vm5, %v1504_v3  ;;  %v1766_v30 = vpop.permute.xlu1 %1765  ;;  %3461 = vmatmul.mubr.f32.gmra.mrb[66].mxu1 %v3078_v32 }
 0x441   :  { %1859 = vst.msk [vmem:[#allocation3 + $0x240] sm:$0xff] %vm1822_vm6, %v1766_v30  ;;  %4675 = vmatprep.mubr.msk.f32.mxu1 %vm946_vm3, %v3081_v31 }
 0x443   :  { %v1764_v53 = vpop.permute.xlu0 %1763 }
 0x444   :  { %1858 = vst.msk [vmem:[#allocation3 + $0x230] sm:$0xff] %vm1822_vm6, %v1764_v53  ;;  %v2026_v1 = vpop.permute.xlu1 %2025  ;;  %v3382_v37 = vpop.f32.mrb[34].mxu1  ;;  %3466 = vmatmul.mubr.f32.gmra.mrb[68].mxu1 %v3080_v12 }
 0x445   :  { %2119 = vst.msk [vmem:[#allocation3 + $0x240] sm:$0xff] %vm2082_vm7, %v2026_v1  ;;  %v3383_v13 = vadd.f32 %v7087_v35, %v3382_v37  ;;  %v3384_v21 = vpop.f32.mrb[35].mxu1  ;;  %4676 = vmatprep.mubr.msk.f32.mxu1 %vm946_vm3, %v3083_v5  ;;  %v3089_v5 = vld [vmem:[#allocation3 + $0x268] sm:$0xff]  ;;  %v3806_v20 = vld [vmem:[#allocation4 + $0x80] sm:$0x3] }
 0x447   :  { %v3528_v40 = vmax.f32 %v3383_v13, 0.0  ;;  %v2024_v62 = vpop.permute.xlu0 %2023 }
 0x448   :  { %2118 = vst.msk [vmem:[#allocation3 + $0x230] sm:$0xff] %vm2082_vm7, %v2024_v62  ;;  %v2286_v54 = vpop.permute.xlu1 %2285  ;;  %v3761_v62 = vld [vmem:[#allocation4 + $0x76] sm:$0x3] }
 0x449   :  { %3572 = vst.msk [vmem:[#allocation4 + $0x88] sm:$0xff] %vm3554_vm12, %v3528_v40  ;;  %v3760_v40 = vld [vmem:[#allocation4 + $0x74] sm:$0x3] }
 0x44a   :  { %2379 = vst.msk [vmem:[#allocation3 + $0x240] sm:$0xff] %vm2342_vm9, %v2286_v54 }
 0x44b   :  { %v2284_v57 = vpop.permute.xlu0 %2283 }
 0x44c   :  { %2378 = vst.msk [vmem:[#allocation3 + $0x230] sm:$0xff] %vm2342_vm9, %v2284_v57  ;;  %v2546_v63 = vpop.permute.xlu1 %2545 }
 0x44d   :  { %2639 = vst.msk [vmem:[#allocation3 + $0x240] sm:$0xff] %vm2602_vm10, %v2546_v63  ;;  %v3779_v63 = vld [vmem:[#allocation4 + $0x78] sm:$0x3] }
 0x44f   :  { %v2544_v49 = vpop.permute.xlu0 %2543 }
 0x450   :  { %2638 = vst.msk [vmem:[#allocation3 + $0x230] sm:$0xff] %vm2602_vm10, %v2544_v49  ;;  %v2806_v38 = vpop.permute.xlu1 %2805  ;;  %v3717_v39 = vld [vmem:[#allocation4 + $0x8a] sm:$0x3]  ;;  %v3718_v10 = vld [vmem:[#allocation4 + $0x8c] sm:$0x3] }
 0x451   :  { %2899 = vst.msk [vmem:[#allocation3 + $0x240] sm:$0xff] %vm2862_vm11, %v2806_v38  ;;  %v3719_v58 = vmax.f32 %v3717_v39, %v3718_v10  ;;  %v3736_v14 = vld [vmem:[#allocation4 + $0x8e] sm:$0x3]  ;;  %v3762_v10 = vmax.f32 %v3760_v40, %v3761_v62  ;;  %v1909_v40 = vld [vmem:[#allocation2 + $0x178] sm:$0xf] }
 0x453   :  { %v2804_v56 = vpop.permute.xlu0 %2803  ;;  %v3720_v2 = vmax.f32 %v3716_v26, %v3719_v58 }
 0x454   :  { %2898 = vst.msk [vmem:[#allocation3 + $0x230] sm:$0xff] %vm2862_vm11, %v2804_v56  ;;  %v2288_v61 = vpop.permute.xlu1 %2287 }
 0x455   :  { %v3728_v28 = vrot.slane %v3720_v2, %v7079_v43 }
 0x457   :  { %3729 = vrot.lane.b32.xlu0 %v3728_v28, %s5280_s27  ;;  %v1248_v45 = vpop.permute.xlu0 %1247 }
 0x458   :  { %1340 = vst.msk [vmem:[#allocation3 + $0x250] sm:$0xff] %vm1302_vm4, %v1248_v45  ;;  %v2808_v52 = vpop.permute.xlu1 %2807  ;;  %v3084_v11 = vld [vmem:[#allocation3 + $0x240] sm:$0xff] }
 0x45b   :  { %v1508_v7 = vpop.permute.xlu0 %1507  ;;  %v3082_v59 = vld [vmem:[#allocation3 + $0x230] sm:$0xff] }
 0x45c   :  { %1600 = vst.msk [vmem:[#allocation3 + $0x250] sm:$0xff] %vm1562_vm5, %v1508_v7  ;;  %v1510_v27 = vpop.permute.xlu1 %1509  ;;  %v3387_v47 = vpop.f32.mrb[36].mxu1  ;;  %3471 = vmatmul.mubr.f32.gmra.mrb[70].mxu1 %v3082_v59 }
 0x45d   :  { %v3388_v44 = vadd.f32 %v7087_v35, %v3387_v47  ;;  %v3389_v18 = vpop.f32.mrb[37].mxu1  ;;  %4677 = vmatprep.mubr.msk.f32.mxu1 %vm946_vm3, %v3085_v41 }
 0x45f   :  { %v3529_v6 = vmax.f32 %v3388_v44, 0.0  ;;  %v1768_v16 = vpop.permute.xlu0 %1767 }
 0x460   :  { %1860 = vst.msk [vmem:[#allocation3 + $0x250] sm:$0xff] %vm1822_vm6, %v1768_v16  ;;  %v2030_v23 = vpop.permute.xlu1 %2029  ;;  %3476 = vmatmul.mubr.f32.gmra.mrb[72].mxu1 %v3084_v11 }
 0x461   :  { %3573 = vst.msk [vmem:[#allocation4 + $0x90] sm:$0xff] %vm3554_vm12, %v3529_v6  ;;  %4678 = vmatprep.mubr.msk.f32.mxu1 %vm946_vm3, %v3087_v24 }
 0x463   :  { %v2028_v51 = vpop.permute.xlu0 %2027 }
 0x464   :  { %2120 = vst.msk [vmem:[#allocation3 + $0x250] sm:$0xff] %vm2082_vm7, %v2028_v51  ;;  %v2290_v60 = vpop.permute.xlu1 %2289 }
 0x465   :  { %2380 = vst.msk [vmem:[#allocation3 + $0x250] sm:$0xff] %vm2342_vm9, %v2288_v61  ;;  %v3781_v61 = vmax.f32 %v3779_v63, %v3780_v22  ;;  %v4106_v63 = vld [vmem:[%s7722_s1 + $0x2c0] sm:$0xff]  ;;  %v4107_v22 = vld [vmem:[%s7722_s1 + $0x2c8] sm:$0xff] }
 0x467   :  { %v2548_v48 = vpop.permute.xlu0 %2547 }
 0x468   :  { %2640 = vst.msk [vmem:[#allocation3 + $0x250] sm:$0xff] %vm2602_vm10, %v2548_v48  ;;  %v2550_v19 = vpop.permute.xlu1 %2549  ;;  %v3392_v42 = vpop.f32.mrb[38].mxu1  ;;  %v3744_v55 = vld [vmem:[#allocation4 + $0x92] sm:$0x3]  ;;  %v3745_v17 = vld [vmem:[#allocation4 + $0x94] sm:$0x3] }
 0x469   :  { %2900 = vst.msk [vmem:[#allocation3 + $0x250] sm:$0xff] %vm2862_vm11, %v2808_v52  ;;  %v3393_v34 = vadd.f32 %v7087_v35, %v3392_v42  ;;  %v3394_v29 = vpop.f32.mrb[39].mxu1  ;;  %v3746_v15 = vmax.f32 %v3744_v55, %v3745_v17  ;;  %v3737_v25 = vld [vmem:[#allocation4 + $0x90] sm:$0x3]  ;;  %v3763_v57 = vld [vmem:[#allocation4 + $0x96] sm:$0x3] }
 0x46a   :  { %v3738_v3 = vmax.f32 %v3736_v14, %v3737_v25  ;;  %v3807_v48 = vld [vmem:[#allocation4 + $0x82] sm:$0x3]  ;;  %v4058_v42 = vld [vmem:[%s7722_s1 + $0x140] sm:$0xff]  ;;  %v4059_v29 = vld [vmem:[%s7722_s1 + $0x148] sm:$0xff] }
 0x46b   :  { %v3530_v32 = vmax.f32 %v3393_v34, 0.0  ;;  %v1250_v30 = vpop.permute.xlu0 %1249  ;;  %v3747_v31 = vmax.f32 %v3743_v46, %v3746_v15 }
 0x46c   :  { %1341 = vst.msk [vmem:[#allocation3 + $0x260] sm:$0xff] %vm1302_vm4, %v1250_v30  ;;  %v2810_v53 = vpop.permute.xlu1 %2809  ;;  %v3739_v12 = vmax.f32 %v3735_v50, %v3738_v3  ;;  %v5117_v50 = vpack.c.bf16 %v4059_v29, %v4058_v42  ;;  %v3808_v3 = vmax.f32 %v3806_v20, %v3807_v48  ;;  %v3800_v30 = vmax.f32 %v3798_v33, %v3799_v8  ;;  %v4092_v33 = vld [vmem:[%s7722_s1 + $0x250] sm:$0xff]  ;;  %v4093_v20 = vld [vmem:[%s7722_s1 + $0x258] sm:$0xff]  ;;  %v4079_v42 = vld [vmem:[%s7722_s1 + $0x1e8] sm:$0xff] }
 0x46d   :  { %3574 = vst.msk [vmem:[#allocation4 + $0x98] sm:$0xff] %vm3554_vm12, %v3530_v32  ;;  %v3755_v1 = vrot.slane %v3747_v31, %v7079_v43  ;;  %v5153_v8 = vpack.c.bf16 %v4093_v20, %v4092_v33  ;;  %v4110_v29 = vld [vmem:[%s7722_s1 + $0x2e0] sm:$0xff]  ;;  %v4084_v33 = vld [vmem:[%s7722_s1 + $0x210] sm:$0xff]  ;;  %v4085_v20 = vld [vmem:[%s7722_s1 + $0x218] sm:$0xff] }
 0x46e   :  { %1601 = vst.msk [vmem:[#allocation3 + $0x260] sm:$0xff] %vm1562_vm5, %v1510_v27 }
 0x46f   :  { %3740 = vst.msk [vmem:[#allocation5 + $0x4] sm:$0x3] %vm3606_vm13, %v3739_v12  ;;  %3756 = vrot.lane.b32.xlu0 %v3755_v1, %s5278_s20  ;;  %v1770_v37 = vpop.permute.xlu0 %1769 }
 0x470   :  { %1861 = vst.msk [vmem:[#allocation3 + $0x260] sm:$0xff] %vm1822_vm6, %v1770_v37  ;;  %v1254_v13 = vpop.permute.xlu1 %1253  ;;  %v3086_v21 = vld [vmem:[#allocation3 + $0x250] sm:$0xff] }
 0x471   :  { %2121 = vst.msk [vmem:[#allocation3 + $0x260] sm:$0xff] %vm2082_vm7, %v2030_v23  ;;  %3481 = vmatmul.mubr.f32.gmra.mrb[74].mxu1 %v3086_v21 }
 0x472   :  { %1343 = vst.msk [vmem:[#allocation3 + $0x280] sm:$0xff] %vm1302_vm4, %v1254_v13  ;;  %4679 = vmatprep.mubr.msk.f32.mxu1 %vm946_vm3, %v3089_v5 }
 0x473   :  { %2381 = vst.msk [vmem:[#allocation3 + $0x260] sm:$0xff] %vm2342_vm9, %v2290_v60  ;;  %v1252_v54 = vpop.permute.xlu0 %1251 }
 0x474   :  { %2641 = vst.msk [vmem:[#allocation3 + $0x260] sm:$0xff] %vm2602_vm10, %v2550_v19  ;;  %v1514_v36 = vpop.permute.xlu1 %1513  ;;  %v3764_v49 = vld [vmem:[#allocation4 + $0x98] sm:$0x3]  ;;  %v3782_v38 = vld [vmem:[#allocation4 + $0x9a] sm:$0x3]  ;;  %v4075_v19 = vld [vmem:[%s7722_s1 + $0x1c8] sm:$0xff] }
 0x475   :  { %2901 = vst.msk [vmem:[#allocation3 + $0x260] sm:$0xff] %vm2862_vm11, %v2810_v53  ;;  %v3783_v39 = vld [vmem:[#allocation4 + $0x9c] sm:$0x3]  ;;  %v3765_v26 = vmax.f32 %v3763_v57, %v3764_v49  ;;  %v3801_v17 = vld [vmem:[#allocation4 + $0x9e] sm:$0x3]  ;;  %v5115_v34 = vpack.c.bf16 %v4075_v19, %v4074_v9  ;;  %v5147_v49 = vpack.c.bf16 %v4107_v22, %v4106_v63  ;;  %v4078_v19 = vld [vmem:[%s7722_s1 + $0x1e0] sm:$0xff] }
 0x476   :  { %1342 = vst.msk [vmem:[#allocation3 + $0x270] sm:$0xff] %vm1302_vm4, %v1252_v54  ;;  %v3784_v58 = vmax.f32 %v3782_v38, %v3783_v39  ;;  %v2429_v54 = vld [vmem:[#allocation2 + $0x198] sm:$0xf]  ;;  %v4091_v38 = vld [vmem:[%s7722_s1 + $0x248] sm:$0xff] }
 0x477   :  { %1603 = vst.msk [vmem:[#allocation3 + $0x280] sm:$0xff] %vm1562_vm5, %v1514_v36  ;;  %v1512_v56 = vpop.permute.xlu0 %1511  ;;  %v3766_v2 = vmax.f32 %v3762_v10, %v3765_v26  ;;  %5116 = vmatprep.subr.bf16.mxu0 %v5115_v34  ;;  %v4090_v36 = vld [vmem:[%s7722_s1 + $0x240] sm:$0xff]  ;;  %5148 = vmatprep.subr.bf16.mxu1 %v5147_v49  ;;  %v4063_v34 = vld [vmem:[%s7722_s1 + $0x168] sm:$0xff]  ;;  %v4081_v49 = vld [vmem:[%s7722_s1 + $0x1f8] sm:$0xff] }
 0x478   :  { %1602 = vst.msk [vmem:[#allocation3 + $0x270] sm:$0xff] %vm1562_vm5, %v1512_v56  ;;  %v1774_v28 = vpop.permute.xlu1 %1773  ;;  %v3785_v52 = vmax.f32 %v3781_v61, %v3784_v58  ;;  %5118 = vmatpush3.bf16.msra.mxu0 %v5117_v50  ;;  %v5149_v39 = vpack.c.bf16 %v4091_v38, %v4090_v36  ;;  %v4076_v58 = vld [vmem:[%s7722_s1 + $0x1d0] sm:$0xff]  ;;  %v4077_v56 = vld [vmem:[%s7722_s1 + $0x1d8] sm:$0xff]  ;;  %v4095_v50 = vld [vmem:[%s7722_s1 + $0x268] sm:$0xff] }
 0x479   :  { %1863 = vst.msk [vmem:[#allocation3 + $0x280] sm:$0xff] %vm1822_vm6, %v1774_v28  ;;  %v3774_v45 = vrot.slane %v3766_v2, %v7079_v43  ;;  %v4060_v2 = vld [vmem:[%s7722_s1 + $0x150] sm:$0xff]  ;;  %v5119_v61 = vpack.c.bf16 %v4077_v56, %v4076_v58  ;;  %v4061_v28 = vld [vmem:[%s7722_s1 + $0x158] sm:$0xff] }
 0x47a   :  { %v3793_v47 = vrot.slane %v3785_v52, %v7079_v43  ;;  %5150 = vmatpush3.bf16.msra.mxu1 %v5149_v39  ;;  %v4109_v52 = vld [vmem:[%s7722_s1 + $0x2d8] sm:$0xff]  ;;  %v4080_v36 = vld [vmem:[%s7722_s1 + $0x1f0] sm:$0xff] }
 0x47b   :  { %3775 = vrot.lane.b32.xlu1 %v3774_v45, %s5281_s28  ;;  %v1772_v7 = vpop.permute.xlu0 %1771  ;;  %v4108_v45 = vld [vmem:[%s7722_s1 + $0x2d0] sm:$0xff]  ;;  %5120 = vmatprep.subr.bf16.mxu0 %v5119_v61  ;;  %v5127_v39 = vpack.c.bf16 %v4081_v49, %v4080_v36  ;;  %v4113_v58 = vld [vmem:[%s7722_s1 + $0x2f8] sm:$0xff]  ;;  %v4098_v36 = vld [vmem:[%s7722_s1 + $0x280] sm:$0xff] }
 0x47c   :  { %v3088_v59 = vld [vmem:[#allocation3 + $0x260] sm:$0xff]  ;;  %1862 = vst.msk [vmem:[#allocation3 + $0x270] sm:$0xff] %vm1822_vm6, %v1772_v7  ;;  %v2034_v27 = vpop.permute.xlu1 %2033  ;;  %v5121_v7 = vpack.c.bf16 %v4061_v28, %v4060_v2  ;;  %v4064_v38 = vld [vmem:[%s7722_s1 + $0x170] sm:$0xff] }
 0x47d   :  { %3486 = vmatmul.mubr.f32.gmra.mrb[76].mxu1 %v3088_v59  ;;  %2123 = vst.msk [vmem:[#allocation3 + $0x280] sm:$0xff] %vm2082_vm7, %v2034_v27  ;;  %v5151_v59 = vpack.c.bf16 %v4109_v52, %v4108_v45  ;;  %v4096_v28 = vld [vmem:[%s7722_s1 + $0x270] sm:$0xff]  ;;  %v4097_v45 = vld [vmem:[%s7722_s1 + $0x278] sm:$0xff]  ;;  %v4099_v49 = vld [vmem:[%s7722_s1 + $0x288] sm:$0xff] }
 0x47e   :  { %5122 = vmatpush3.bf16.msra.mxu0 %v5121_v7  ;;  %v5161_v52 = vpack.c.bf16 %v4097_v45, %v4096_v28  ;;  %v4082_v7 = vld [vmem:[%s7722_s1 + $0x200] sm:$0xff]  ;;  %v4071_v28 = vld [vmem:[%s7722_s1 + $0x1a8] sm:$0xff]  ;;  %v2948_v45 = vld [vmem:[#allocation2 + $0x194] sm:$0xff] }
 0x47f   :  { %3794 = vrot.lane.b32.xlu1 %v3793_v47, %s5280_s27  ;;  %v2032_v41 = vpop.permute.xlu0 %2031  ;;  %5152 = vmatprep.subr.bf16.mxu1 %v5151_v59  ;;  %v4083_v59 = vld [vmem:[%s7722_s1 + $0x208] sm:$0xff]  ;;  %2991 = vst.msk [vmem:[#allocation3 + $0x298] sm:$0xff] %vm946_vm3, %v2948_v45 }
 0x480   :  { %2122 = vst.msk [vmem:[#allocation3 + $0x270] sm:$0xff] %vm2082_vm7, %v2032_v41  ;;  %v2294_v44 = vpop.permute.xlu1 %2293  ;;  %v3397_v18 = vpop.f32.mrb[40].mxu1  ;;  %5154 = vmatpush3.bf16.msra.mxu1 %v5153_v8 }
 0x481   :  { %2383 = vst.msk [vmem:[#allocation3 + $0x280] sm:$0xff] %vm2342_vm9, %v2294_v44  ;;  %v3398_v6 = vadd.f32 %v7087_v35, %v3397_v18  ;;  %v3399_v16 = vpop.f32.mrb[41].mxu1 }
 0x483   :  { %v3531_v11 = vmax.f32 %v3398_v6, 0.0  ;;  %v2292_v23 = vpop.permute.xlu0 %2291 }
 0x484   :  { %2382 = vst.msk [vmem:[#allocation3 + $0x270] sm:$0xff] %vm2342_vm9, %v2292_v23  ;;  %v2554_v24 = vpop.permute.xlu1 %2553 }
 0x485   :  { %3575 = vst.msk [vmem:[#allocation4 + $0xa0] sm:$0xff] %vm3554_vm12, %v3531_v11 }
 0x486   :  { %2643 = vst.msk [vmem:[#allocation3 + $0x280] sm:$0xff] %vm2602_vm10, %v2554_v24 }
 0x487   :  { %v2552_v51 = vpop.permute.xlu0 %2551 }
 0x488   :  { %2642 = vst.msk [vmem:[#allocation3 + $0x270] sm:$0xff] %vm2602_vm10, %v2552_v51  ;;  %v2814_v60 = vpop.permute.xlu1 %2813 }
 0x489   :  { %2903 = vst.msk [vmem:[#allocation3 + $0x280] sm:$0xff] %vm2862_vm11, %v2814_v60 }
 0x48b   :  { %v2812_v55 = vpop.permute.xlu0 %2811 }
 0x48c   :  { %2902 = vst.msk [vmem:[#allocation3 + $0x270] sm:$0xff] %vm2862_vm11, %v2812_v55  ;;  %v1258_v46 = vpop.permute.xlu1 %1257  ;;  %v3809_v15 = vld [vmem:[#allocation4 + $0xa2] sm:$0x3]  ;;  %v3810_v14 = vld [vmem:[#allocation4 + $0xa4] sm:$0x3]  ;;  %v4062_v55 = vld [vmem:[%s7722_s1 + $0x160] sm:$0xff] }
 0x48d   :  { %v3802_v25 = vld [vmem:[#allocation4 + $0xa0] sm:$0x3]  ;;  %1346 = vst.msk [vmem:[#allocation3 + $0x2a0] sm:$0xf] %vm1345_vm14, %v1258_v46  ;;  %v3811_v32 = vmax.f32 %v3809_v15, %v3810_v14  ;;  %v4111_v46 = vld [vmem:[%s7722_s1 + $0x2e8] sm:$0xff]  ;;  %v5125_v15 = vpack.c.bf16 %v4063_v34, %v4062_v55 }
 0x48e   :  { %v3803_v31 = vmax.f32 %v3801_v17, %v3802_v25  ;;  %v5123_v17 = vpack.c.bf16 %v4079_v42, %v4078_v19  ;;  %v5155_v14 = vpack.c.bf16 %v4111_v46, %v4110_v29  ;;  %v4094_v25 = vld [vmem:[%s7722_s1 + $0x260] sm:$0xff]  ;;  %v5135_v19 = vpack.c.bf16 %v4085_v20, %v4084_v33  ;;  %v4069_v42 = vld [vmem:[%s7722_s1 + $0x198] sm:$0xff]  ;;  %v2947_v55 = vld [vmem:[#allocation2 + $0x18c] sm:$0xff] }
 0x48f   :  { %v1256_v53 = vpop.permute.xlu0 %1255  ;;  %v3812_v12 = vmax.f32 %v3808_v3, %v3811_v32  ;;  %v5157_v32 = vpack.c.bf16 %v4095_v50, %v4094_v25  ;;  %2990 = vst.msk [vmem:[#allocation3 + $0x288] sm:$0xff] %vm946_vm3, %v2947_v55  ;;  %v4100_v20 = vld [vmem:[%s7722_s1 + $0x290] sm:$0xff] }
 0x490   :  { %v3804_v1 = vmax.f32 %v3800_v30, %v3803_v31  ;;  %1344 = vst.msk [vmem:[#allocation3 + $0x290] sm:$0xff] %vm1302_vm4, %v1256_v53  ;;  %v1518_v37 = vpop.permute.xlu1 %1517  ;;  %vm3646_vm4 = vcmask 779776   ;;  %5124 = vmatprep.subr.bf16.mxu0 %v5123_v17  ;;  %5156 = vmatprep.subr.bf16.mxu1 %v5155_v14 }
 0x491   :  { %1606 = vst.msk [vmem:[#allocation3 + $0x2a0] sm:$0xf] %vm1605_vm15, %v1518_v37  ;;  %v3820_v5 = vrot.slane %v3812_v12, %v7079_v43  ;;  %5126 = vmatpush3.bf16.msra.mxu0 %v5125_v15  ;;  %5158 = vmatpush3.bf16.msra.mxu1 %v5157_v32 }
 0x492   :  { %3805 = vst.msk [vmem:[#allocation5 + $0x6] sm:$0x3] %vm3606_vm13, %v3804_v1  ;;  %5128 = vmatprep.subr.bf16.mxu0 %v5127_v39 }
 0x493   :  { %3821 = vrot.lane.b32.xlu1 %v3820_v5, %s5278_s20  ;;  %v1516_v13 = vpop.permute.xlu0 %1515 }
 0x494   :  { %1604 = vst.msk [vmem:[#allocation3 + $0x290] sm:$0xff] %vm1562_vm5, %v1516_v13  ;;  %v1778_v21 = vpop.permute.xlu1 %1777  ;;  %vm3666_vm5 = vcmask 1042176  }
 0x495   :  { %1866 = vst.msk [vmem:[#allocation3 + $0x2a0] sm:$0xf] %vm1865_vm1, %v1778_v21 }
 0x497   :  { %2037 = vrot.lane.b32.xlu1 %v1909_v40, %s5281_s28  ;;  %v1776_v62 = vpop.permute.xlu0 %1775 }
 0x498   :  { %1864 = vst.msk [vmem:[#allocation3 + $0x290] sm:$0xff] %vm1822_vm6, %v1776_v62  ;;  %v3644_v57 = vpop.permute.xlu1 %3643  ;;  %vm2385_vm6 = vcmask 781952  }
 0x49b   :  { %v2036_v10 = vpop.permute.xlu0 %2035  ;;  %2557 = vrot.lane.b32.xlu1 %v2429_v54, %s5280_s27 }
 0x49c   :  { %2124 = vst.msk [vmem:[#allocation3 + $0x290] sm:$0xff] %vm2082_vm7, %v2036_v10  ;;  %v3664_v26 = vpop.permute.xlu1 %3663  ;;  %v4065_v10 = vld [vmem:[%s7722_s1 + $0x178] sm:$0xff]  ;;  %vm2645_vm7 = vcmask 913152  }
 0x49d   :  { %v5129_v2 = vpack.c.bf16 %v4065_v10, %v4064_v38  ;;  %v4070_v38 = vld [vmem:[%s7722_s1 + $0x1a0] sm:$0xff] }
 0x49f   :  { %v3402_v27 = vpop.f32.mrb[42].mxu1  ;;  %v2296_v47 = vpop.permute.xlu0 %2295  ;;  %5130 = vmatpush3.bf16.msra.mxu0 %v5129_v2 }
 0x4a0   :  { %v3403_v41 = vadd.f32 %v7087_v35, %v3402_v27  ;;  %2384 = vst.msk [vmem:[#allocation3 + $0x290] sm:$0xff] %vm2342_vm9, %v2296_v47  ;;  %v3692_v44 = vpop.permute.xlu1 %3691  ;;  %v3404_v18 = vpop.f32.mrb[43].mxu1  ;;  %v4066_v27 = vld [vmem:[%s7722_s1 + $0x180] sm:$0xff]  ;;  %v5131_v47 = vpack.c.bf16 %v4083_v59, %v4082_v7  ;;  %v3092_v7 = vld [vmem:[#allocation3 + $0x280] sm:$0xff]  ;;  %v4116_v59 = vld [vmem:[%s7722_s1 + $0x310] sm:$0xff] }
 0x4a1   :  { %3694 = vst.msk [vmem:[#allocation5 + $0x2] sm:$0x3] %vm3626_vm2, %v3692_v44  ;;  %v2946_v44 = vld [vmem:[#allocation2 + $0x184] sm:$0xff] }
 0x4a2   :  { %v3532_v6 = vmax.f32 %v3403_v41, 0.0  ;;  %v4067_v41 = vld [vmem:[%s7722_s1 + $0x188] sm:$0xff]  ;;  %2989 = vst.msk [vmem:[#allocation3 + $0x278] sm:$0xff] %vm946_vm3, %v2946_v44  ;;  %5132 = vmatprep.subr.bf16.mxu0 %v5131_v47 }
 0x4a3   :  { %v3407_v16 = vpop.f32.mrb[44].mxu1  ;;  %v2556_v11 = vpop.permute.xlu0 %2555 }
 0x4a4   :  { %3576 = vst.msk [vmem:[#allocation4 + $0xa8] sm:$0xff] %vm3554_vm12, %v3532_v6  ;;  %v3408_v23 = vadd.f32 %v7087_v35, %v3407_v16  ;;  %v3409_v24 = vpop.f32.mrb[45].mxu1 }
 0x4a5   :  { %2644 = vst.msk [vmem:[#allocation3 + $0x290] sm:$0xff] %vm2602_vm10, %v2556_v11  ;;  %v5133_v11 = vpack.c.bf16 %v4067_v41, %v4066_v27  ;;  %v4117_v27 = vld [vmem:[%s7722_s1 + $0x318] sm:$0xff]  ;;  %v3093_v41 = vld [vmem:[#allocation3 + $0x288] sm:$0xff] }
 0x4a6   :  { %v3533_v51 = vmax.f32 %v3408_v23, 0.0  ;;  %v5167_v44 = vpack.c.bf16 %v4117_v27, %v4116_v59  ;;  %v2689_v59 = vld [vmem:[#allocation2 + $0x19a] sm:$0xf] }
 0x4a7   :  { %v2816_v60 = vpop.permute.xlu0 %2815  ;;  %5134 = vmatpush3.bf16.msra.mxu0 %v5133_v11 }
 0x4a8   :  { %3577 = vst.msk [vmem:[#allocation4 + $0xb0] sm:$0xff] %vm3554_vm12, %v3533_v51  ;;  %5136 = vmatprep.subr.bf16.mxu0 %v5135_v19 }
 0x4a9   :  { %2904 = vst.msk [vmem:[#allocation3 + $0x290] sm:$0xff] %vm2862_vm11, %v2816_v60 }
 0x4ab   :  { %v3624_v48 = vpop.permute.xlu0 %3623  ;;  %v3825_v6 = vld [vmem:[#allocation4 + $0xac] sm:$0x3]  ;;  %v3826_v16 = vld [vmem:[#allocation4 + $0xae] sm:$0x3] }
 0x4ac   :  { %3627 = vst.msk [vmem:[#allocation5] sm:$0x3] %vm3626_vm2, %v3624_v48  ;;  %v4068_v48 = vld [vmem:[%s7722_s1 + $0x190] sm:$0xff]  ;;  %v3827_v25 = vmax.f32 %v3825_v6, %v3826_v16  ;;  %v4089_v6 = vld [vmem:[%s7722_s1 + $0x238] sm:$0xff] }
 0x4ad   :  { %3647 = vst.msk [vmem:[#allocation5] sm:$0x3] %vm3646_vm4, %v3644_v57  ;;  %v5137_v46 = vpack.c.bf16 %v4069_v42, %v4068_v48 }
 0x4ae   :  { %3667 = vst.msk [vmem:[#allocation5] sm:$0x3] %vm3666_vm5, %v3664_v26  ;;  %v4112_v26 = vld [vmem:[%s7722_s1 + $0x2f0] sm:$0xff] }
 0x4af   :  { %v3711_v9 = vpop.permute.xlu0 %3710  ;;  %v5159_v61 = vpack.c.bf16 %v4113_v58, %v4112_v26  ;;  %v3844_v51 = vld [vmem:[#allocation4 + $0xb0] sm:$0x3]  ;;  %v3845_v60 = vld [vmem:[#allocation4 + $0xb2] sm:$0x3]  ;;  %5138 = vmatpush3.bf16.msra.mxu0 %v5137_v46  ;;  %v7369_v2 = vld [vmem:[#allocation4 + $0xb6] sm:$0x3] }
 0x4b0   :  { %3713 = vst.msk [vmem:[#allocation5 + $0x2] sm:$0x3] %vm3646_vm4, %v3711_v9 }
 0x4b1   :  { %5160 = vmatprep.subr.bf16.mxu1 %v5159_v61  ;;  %v5165_v61 = vpack.c.bf16 %v4099_v49, %v4098_v36 }
 0x4b2   :  { %5162 = vmatpush3.bf16.msra.mxu1 %v5161_v52  ;;  %v5141_v52 = vpack.c.bf16 %v4071_v28, %v4070_v38  ;;  %v3095_v38 = vld [vmem:[#allocation3 + $0x298] sm:$0xff]  ;;  %v4104_v28 = vld [vmem:[%s7722_s1 + $0x2b0] sm:$0xff] }
 0x4bb   :  { %v3412_v3 = vpop.f32.mrb[46].mxu1 }
 0x4bc   :  { %v3413_v30 = vadd.f32 %v7087_v35, %v3412_v3  ;;  %v3414_v31 = vpop.f32.mrb[47].mxu1 }
 0x4be   :  { %v3534_v53 = vmax.f32 %v3413_v30, 0.0  ;;  %v3846_v30 = vmax.f32 %v3844_v51, %v3845_v60 }
 0x4bf   :  { %v3417_v12 = vpop.f32.mrb[48].mxu1 }
 0x4c0   :  { %3578 = vst.msk [vmem:[#allocation4 + $0xb8] sm:$0xff] %vm3554_vm12, %v3534_v53  ;;  %v3418_v1 = vadd.f32 %v7087_v35, %v3417_v12  ;;  %v3419_v37 = vpop.f32.mrb[49].mxu1  ;;  %v3090_v53 = vld [vmem:[#allocation3 + $0x270] sm:$0xff]  ;;  %v4114_v12 = vld [vmem:[%s7722_s1 + $0x300] sm:$0xff] }
 0x4c2   :  { %v3535_v5 = vmax.f32 %v3418_v1, 0.0  ;;  %v4115_v1 = vld [vmem:[%s7722_s1 + $0x308] sm:$0xff] }
 0x4c4   :  { %3579 = vst.msk [vmem:[#allocation4 + $0xc0] sm:$0xff] %vm3554_vm12, %v3535_v5 }
 0x4c7   :  { %v3872_v58 = vld [vmem:[#allocation4 + $0xba] sm:$0x3]  ;;  %v3890_v42 = vld [vmem:[#allocation4 + $0xbc] sm:$0x3]  ;;  %v3891_v55 = vld [vmem:[#allocation4 + $0xbe] sm:$0x3] }
 0x4c9   :  { %v3730_v13 = vpop.permute.xlu0 %3729 }
 0x4ca   :  { %3732 = vst.msk [vmem:[#allocation5 + $0x2] sm:$0x3] %vm3666_vm5, %v3730_v13  ;;  %v7346_v13 = vld [vmem:[#allocation4 + $0xb8] sm:$0x3] }
 0x4cb   :  { %v3873_v11 = vmax.f32 %v7346_v13, %v3872_v58  ;;  %v7389_v51 = vld [vmem:[#allocation4 + $0xc0] sm:$0x3]  ;;  %v7391_v60 = vld [vmem:[#allocation4 + $0xc2] sm:$0x3]  ;;  %v3892_v58 = vmax.f32 %v3890_v42, %v3891_v55 }
 0x4cc   :  { %v2169_v13 = vld [vmem:[#allocation2 + $0x17a] sm:$0xf] }
 0x4cf   :  { %v3422_v21 = vpop.f32.mrb[50].mxu1 }
 0x4d0   :  { %v3423_v40 = vadd.f32 %v7087_v35, %v3422_v21  ;;  %v3424_v62 = vpop.f32.mrb[51].mxu1  ;;  %v3091_v21 = vld [vmem:[#allocation3 + $0x278] sm:$0xff] }
 0x4d1   :  { %v4086_v62 = vld [vmem:[%s7722_s1 + $0x220] sm:$0xff]  ;;  %4680 = vmatprep.mubr.msk.f32.mxu1 %vm946_vm3, %v3091_v21 }
 0x4d2   :  { %v3536_v54 = vmax.f32 %v3423_v40, 0.0  ;;  %v5163_v40 = vpack.c.bf16 %v4115_v1, %v4114_v12  ;;  %3491 = vmatmul.mubr.f32.gmra.mrb[78].mxu1 %v3090_v53  ;;  %v3094_v53 = vld [vmem:[#allocation3 + $0x290] sm:$0xff]  ;;  %v4119_v12 = vld [vmem:[%s7722_s1 + $0x328] sm:$0xff]  ;;  %v4102_v1 = vld [vmem:[%s7722_s1 + $0x2a0] sm:$0xff] }
 0x4d3   :  { %v3427_v57 = vpop.f32.mrb[52].mxu1  ;;  %4681 = vmatprep.mubr.msk.f32.mxu1 %vm946_vm3, %v3093_v41 }
 0x4d4   :  { %3580 = vst.msk [vmem:[#allocation4 + $0xc8] sm:$0xff] %vm3554_vm12, %v3536_v54  ;;  %v3428_v63 = vadd.f32 %v7087_v35, %v3427_v57  ;;  %v3429_v22 = vpop.f32.mrb[53].mxu1  ;;  %v4087_v54 = vld [vmem:[%s7722_s1 + $0x228] sm:$0xff]  ;;  %5164 = vmatprep.subr.bf16.mxu1 %v5163_v40 }
 0x4d5   :  { %v5139_v22 = vpack.c.bf16 %v4087_v54, %v4086_v62  ;;  %5166 = vmatpush3.bf16.msra.mxu1 %v5165_v61  ;;  %v4121_v61 = vld [vmem:[%s7722_s1 + $0x338] sm:$0xff] }
 0x4d6   :  { %v3537_v56 = vmax.f32 %v3428_v63, 0.0  ;;  %3496 = vmatmul.mubr.f32.gmra.mrb[80].mxu1 %v3092_v7  ;;  %5168 = vmatprep.subr.bf16.mxu1 %v5167_v44  ;;  %v4105_v7 = vld [vmem:[%s7722_s1 + $0x2b8] sm:$0xff] }
 0x4d7   :  { %5140 = vmatprep.subr.bf16.mxu0 %v5139_v22  ;;  %v3911_v22 = vmax.f32 %v7389_v51, %v7391_v60  ;;  %4682 = vmatprep.mubr.msk.f32.mxu1 %vm946_vm3, %v3095_v38  ;;  %v7457_v60 = vld [vmem:[%s7722_s1 + $0xb8] ss:$0 sm:$0xff]  ;;  %v4139_v38 = vld [vmem:[%s7722_s1 + $0x3c8] sm:$0xff] }
 0x4d8   :  { %3581 = vst.msk [vmem:[#allocation4 + $0xd0] sm:$0xff] %vm3554_vm12, %v3537_v56  ;;  %v7367_v56 = vld [vmem:[#allocation4 + $0xb4] sm:$0x3]  ;;  %5142 = vmatpush3.bf16.msra.mxu0 %v5141_v52 }
 0x4da   :  { %3501 = vmatmul.mubr.f32.gmra.mrb[82].mxu1 %v3094_v53 }
 0x4db   :  { %v3432_v18 = vpop.f32.mrb[54].mxu1  ;;  %v3828_v9 = vld [vmem:[#allocation4 + $0xce] sm:$0x3] }
 0x4dc   :  { %v3433_v23 = vadd.f32 %v7087_v35, %v3432_v18  ;;  %v3434_v24 = vpop.f32.mrb[55].mxu1  ;;  %v4088_v18 = vld [vmem:[%s7722_s1 + $0x230] sm:$0xff] }
 0x4dd   :  { %v5143_v33 = vpack.c.bf16 %v4089_v6, %v4088_v18  ;;  %v5177_v6 = vpack.c.bf16 %v4105_v7, %v4104_v28 }
 0x4de   :  { %v3538_v8 = vmax.f32 %v3433_v23, 0.0 }
 0x4df   :  { %v3437_v17 = vpop.f32.mrb[56].mxu1  ;;  %v3829_v34 = vld [vmem:[#allocation4 + $0xd0] sm:$0x3]  ;;  %v3847_v29 = vld [vmem:[#allocation4 + $0xd2] sm:$0x3]  ;;  %5144 = vmatprep.subr.bf16.mxu0 %v5143_v33 }
 0x4e0   :  { %3582 = vst.msk [vmem:[#allocation4 + $0xd8] sm:$0xff] %vm3554_vm12, %v3538_v8  ;;  %v3438_v15 = vadd.f32 %v7087_v35, %v3437_v17  ;;  %v3439_v14 = vpop.f32.mrb[57].mxu1  ;;  %v3830_v50 = vmax.f32 %v3828_v9, %v3829_v34  ;;  %v3848_v3 = vld [vmem:[#allocation4 + $0xd4] sm:$0x3]  ;;  %v3866_v17 = vld [vmem:[#allocation4 + $0xd6] sm:$0x3] }
 0x4e1   :  { %v3757_v32 = vpop.permute.xlu0 %3756  ;;  %v3849_v31 = vmax.f32 %v3847_v29, %v3848_v3  ;;  %v4101_v29 = vld [vmem:[%s7722_s1 + $0x298] sm:$0xff]  ;;  %v4118_v3 = vld [vmem:[%s7722_s1 + $0x320] sm:$0xff] }
 0x4e2   :  { %v3539_v37 = vmax.f32 %v3438_v15, 0.0  ;;  %3759 = vst.msk [vmem:[#allocation5 + $0x4] sm:$0x3] %vm3626_vm2, %v3757_v32  ;;  %v3831_v5 = vmax.f32 %v3827_v25, %v3830_v50  ;;  %v3865_v15 = vmax.f32 %v7367_v56, %v7369_v2  ;;  %v4072_v25 = vld [vmem:[%s7722_s1 + $0x1b0] sm:$0xff]  ;;  %v4073_v50 = vld [vmem:[%s7722_s1 + $0x1b8] sm:$0xff] }
 0x4e3   :  { %v3442_v57 = vpop.f32.mrb[58].mxu1  ;;  %v3850_v63 = vmax.f32 %v3846_v30, %v3849_v31  ;;  %v5145_v31 = vpack.c.bf16 %v4073_v50, %v4072_v25  ;;  %v4120_v2 = vld [vmem:[%s7722_s1 + $0x330] sm:$0xff] }
 0x4e4   :  { %3583 = vst.msk [vmem:[#allocation4 + $0xe0] sm:$0xff] %vm3554_vm12, %v3539_v37  ;;  %v3443_v39 = vadd.f32 %v7087_v35, %v3442_v57  ;;  %v3444_v10 = vpop.f32.mrb[59].mxu1  ;;  %v3839_v26 = vrot.slane %v3831_v5, %v7079_v43  ;;  %v3928_v37 = vld [vmem:[#allocation4 + $0xc4] sm:$0x3]  ;;  %v3929_v5 = vld [vmem:[#allocation4 + $0xc6] sm:$0x3]  ;;  %v5171_v57 = vpack.c.bf16 %v4119_v12, %v4118_v3  ;;  %v5175_v52 = vpack.c.bf16 %v4121_v61, %v4120_v2 }
 0x4e5   :  { %v3858_v9 = vrot.slane %v3850_v63, %v7079_v43  ;;  %5146 = vmatpush3.bf16.msra.mxu0 %v5145_v31  ;;  %v3097_v10 = vld [vmem:[#allocation3 + $0x2a8] sm:$0xf] }
 0x4e6   :  { %v3540_v47 = vmax.f32 %v3443_v39, 0.0  ;;  %3840 = vrot.lane.b32.xlu0 %v3839_v26, %s5281_s28  ;;  %v4103_v39 = vld [vmem:[%s7722_s1 + $0x2a8] sm:$0xff]  ;;  %4683 = vmatprep.mubr.msk.f32.mxu1 %vm946_vm3, %v3097_v10  ;;  %vm2125_vm3 = vcmask 650752  }
 0x4e7   :  { %v3447_v16 = vpop.f32.mrb[60].mxu1  ;;  %v3874_v23 = vld [vmem:[#allocation4 + $0xda] sm:$0x3]  ;;  %v3875_v24 = vld [vmem:[#allocation4 + $0xdc] sm:$0x3]  ;;  %v5173_v56 = vpack.c.bf16 %v4103_v39, %v4102_v1 }
 0x4e8   :  { %3584 = vst.msk [vmem:[#allocation4 + $0xe8] sm:$0xff] %vm3554_vm12, %v3540_v47  ;;  %v3448_v48 = vadd.f32 %v7087_v35, %v3447_v16  ;;  %v3449_v8 = vpop.f32.mrb[61].mxu1  ;;  %v3876_v19 = vmax.f32 %v3874_v23, %v3875_v24  ;;  %v3867_v34 = vld [vmem:[#allocation4 + $0xd8] sm:$0x3]  ;;  %v3893_v46 = vld [vmem:[#allocation4 + $0xde] sm:$0x3]  ;;  %v5169_v35 = vpack.c.bf16 %v4101_v29, %v4100_v20  ;;  %v3930_v47 = vmax.f32 %v3928_v37, %v3929_v5 }
 0x4e9   :  { %v3868_v14 = vmax.f32 %v3866_v17, %v3867_v34 }
 0x4ea   :  { %v3541_v32 = vmax.f32 %v3448_v48, 0.0  ;;  %3859 = vrot.lane.b32.xlu0 %v3858_v9, %s5280_s27  ;;  %v3877_v30 = vmax.f32 %v3873_v11, %v3876_v19  ;;  %5170 = vmatpush3.bf16.msra.mxu1 %v5169_v35 }
 0x4eb   :  { %v3912_v21 = vld [vmem:[#allocation4 + $0xe2] sm:$0x3]  ;;  %v3913_v40 = vld [vmem:[#allocation4 + $0xe4] sm:$0x3]  ;;  %v3894_v62 = vld [vmem:[#allocation4 + $0xe0] sm:$0x3]  ;;  %v3869_v54 = vmax.f32 %v3865_v15, %v3868_v14  ;;  %5172 = vmatprep.subr.bf16.mxu1 %v5171_v57 }
 0x4ec   :  { %3585 = vst.msk [vmem:[#allocation4 + $0xf0] sm:$0xff] %vm3554_vm12, %v3541_v32  ;;  %v3885_v63 = vrot.slane %v3877_v30, %v7079_v43  ;;  %v3914_v36 = vmax.f32 %v3912_v21, %v3913_v40  ;;  %v3895_v49 = vmax.f32 %v3893_v46, %v3894_v62  ;;  %v3931_v41 = vld [vmem:[#allocation4 + $0xe6] sm:$0x3] }
 0x4ed   :  { %v3776_v26 = vpop.permute.xlu1 %3775  ;;  %3870 = vst.msk [vmem:[#allocation5 + $0x8] sm:$0x3] %vm3606_vm13, %v3869_v54 }
 0x4ee   :  { %3778 = vst.msk [vmem:[#allocation5 + $0x4] sm:$0x3] %vm3646_vm4, %v3776_v26  ;;  %3886 = vrot.lane.b32.xlu1 %v3885_v63, %s5278_s20  ;;  %2297 = vrot.lane.b32.xlu0 %v2169_v13, %s5283_s30  ;;  %v3915_v45 = vmax.f32 %v3911_v22, %v3914_v36  ;;  %v3896_v27 = vmax.f32 %v3892_v58, %v3895_v49  ;;  %v4138_v49 = vld [vmem:[%s7722_s1 + $0x3c0] sm:$0xff] }
 0x4ef   :  { %v3932_v44 = vld [vmem:[#allocation4 + $0xe8] sm:$0x3]  ;;  %5174 = vmatpush3.bf16.msra.mxu1 %v5173_v56  ;;  %v5179_v39 = vpack.c.bf16 %v4139_v38, %v4138_v49  ;;  %v4123_v38 = vld [vmem:[%s7722_s1 + $0x348] sm:$0xff] }
 0x4f0   :  { %v3923_v18 = vrot.slane %v3915_v45, %v7079_v43  ;;  %v3933_v16 = vmax.f32 %v3931_v41, %v3932_v44  ;;  %5176 = vmatprep.subr.bf16.mxu1 %v5175_v52  ;;  %v3904_v24 = vrot.slane %v3896_v27, %v7079_v43  ;;  %v4122_v49 = vld [vmem:[%s7722_s1 + $0x340] sm:$0xff] }
 0x4f1   :  { %v3795_v11 = vpop.permute.xlu1 %3794  ;;  %5180 = vmatprep.subr.bf16.mxu0 %v5179_v39 }
 0x4f2   :  { %3797 = vst.msk [vmem:[#allocation5 + $0x4] sm:$0x3] %vm3666_vm5, %v3795_v11  ;;  %3924 = vrot.lane.b32.xlu1 %v3923_v18, %s5280_s27  ;;  %2817 = vrot.lane.b32.xlu0 %v2689_v59, %s5279_s0  ;;  %v3934_v23 = vmax.f32 %v3930_v47, %v3933_v16 }
 0x4f3   :  { %5178 = vmatpush3.bf16.msra.mxu1 %v5177_v6  ;;  %v3936_v3 = vld [vmem:[#allocation4 + $0xf0] sm:$0x3]  ;;  %v3937_v32 = vld [vmem:[#allocation4 + $0xf2] sm:$0x3]  ;;  %v3955_v22 = vld [vmem:[#allocation4 + $0xf4] sm:$0x3] }
 0x4f4   :  { %3935 = vst.msk [vmem:[#allocation5 + $0xa] sm:$0x3] %vm3606_vm13, %v3934_v23  ;;  %5211 = vmatprep.subr.bf16.mxu1 %v5274_v0  ;;  %v3938_v53 = vmax.f32 %v3936_v3, %v3937_v32  ;;  %v3956_v36 = vld [vmem:[#allocation4 + $0xf6] sm:$0x3] }
 0x4f5   :  { %v3957_v58 = vmax.f32 %v3955_v22, %v3956_v36 }
 0x4f6   :  { %3905 = vrot.lane.b32.xlu0 %v3904_v24, %s5281_s28 }
 0x4f7   :  { %v3452_v51 = vpop.f32.mrb[62].mxu1 }
 0x4f8   :  { %v3453_v33 = vadd.f32 %v7457_v60, %v3452_v51  ;;  %v3454_v20 = vpop.f32.mrb[63].mxu1 }
 0x4fa   :  { %v3542_v48 = vmax.f32 %v3453_v33, 0.0 }
 0x4fb   :  { %v3457_v8 = vpop.f32.mrb[64].mxu1 }
 0x4fc   :  { %3586 = vst.msk [vmem:[#allocation4 + $0xf8] sm:$0xff] %vm3554_vm12, %v3542_v48  ;;  %v3458_v9 = vadd.f32 %v7457_v60, %v3457_v8  ;;  %v3459_v19 = vpop.f32.mrb[65].mxu1 }
 0x4fe   :  { %v3543_v42 = vmax.f32 %v3458_v9, 0.0 }
 0x500   :  { %3587 = vst.msk [vmem:[#allocation4 + $0x100] sm:$0xff] %vm3554_vm12, %v3543_v42 }
 0x503   :  { %v3993_v45 = vld [vmem:[#allocation4 + $0xfc] sm:$0x3]  ;;  %v3994_v52 = vld [vmem:[#allocation4 + $0xfe] sm:$0x3]  ;;  %v3975_v3 = vld [vmem:[#allocation4 + $0xfa] sm:$0x3] }
 0x504   :  { %v3995_v6 = vmax.f32 %v3993_v45, %v3994_v52  ;;  %v4124_v52 = vld [vmem:[%s7722_s1 + $0x350] sm:$0xff] }
 0x505   :  { %v3822_v55 = vpop.permute.xlu1 %3821 }
 0x506   :  { %3824 = vst.msk [vmem:[#allocation5 + $0x6] sm:$0x3] %vm3626_vm2, %v3822_v55 }
 0x507   :  { %v4001_v2 = vld [vmem:[#allocation4 + $0x100] sm:$0x3]  ;;  %v4002_v61 = vld [vmem:[#allocation4 + $0x102] sm:$0x3]  ;;  %v4020_v8 = vld [vmem:[#allocation4 + $0x104] sm:$0x3] }
 0x508   :  { %v4003_v47 = vmax.f32 %v4001_v2, %v4002_v61  ;;  %v4021_v42 = vld [vmem:[#allocation4 + $0x106] sm:$0x3]  ;;  %v5181_v2 = vpack.c.bf16 %v4123_v38, %v4122_v49 }
 0x509   :  { %v2038_v17 = vpop.permute.xlu1 %2037  ;;  %v4022_v32 = vmax.f32 %v4020_v8, %v4021_v42  ;;  %v4157_v8 = vld [vmem:[%s7722_s1 + $0x458] sm:$0xff]  ;;  %v4128_v42 = vld [vmem:[%s7722_s1 + $0x370] sm:$0xff] }
 0x50a   :  { %2126 = vst.msk [vmem:[#allocation3 + $0x2a0] sm:$0xf] %vm2125_vm3, %v2038_v17  ;;  %v3974_v17 = vld [vmem:[#allocation4 + $0xf8] sm:$0x3]  ;;  %v4153_v49 = vld [vmem:[%s7722_s1 + $0x438] sm:$0xff] }
 0x513   :  { %v3462_v34 = vpop.f32.mrb[66].mxu1 }
 0x514   :  { %v3463_v29 = vadd.f32 %v7457_v60, %v3462_v34  ;;  %v3464_v46 = vpop.f32.mrb[67].mxu1 }
 0x516   :  { %v3544_v15 = vmax.f32 %v3463_v29, 0.0 }
 0x517   :  { %v3467_v14 = vpop.f32.mrb[68].mxu1 }
 0x518   :  { %3588 = vst.msk [vmem:[#allocation4 + $0x108] sm:$0xff] %vm3554_vm12, %v3544_v15  ;;  %v3468_v35 = vadd.f32 %v7457_v60, %v3467_v14  ;;  %v3469_v25 = vpop.f32.mrb[69].mxu1 }
 0x51a   :  { %v3545_v50 = vmax.f32 %v3468_v35, 0.0 }
 0x51c   :  { %3589 = vst.msk [vmem:[#allocation4 + $0x110] sm:$0xff] %vm3554_vm12, %v3545_v50 }
 0x51f   :  { %v4039_v9 = vld [vmem:[#allocation4 + $0x108] sm:$0x3]  ;;  %v4040_v19 = vld [vmem:[#allocation4 + $0x10a] sm:$0x3] }
 0x523   :  { %v3939_v30 = vld [vmem:[#allocation4 + $0x112] sm:$0x3]  ;;  %v3940_v31 = vld [vmem:[#allocation4 + $0x114] sm:$0x3]  ;;  %v3958_v10 = vld [vmem:[#allocation4 + $0x116] sm:$0x3] }
 0x524   :  { %v3941_v12 = vmax.f32 %v3939_v30, %v3940_v31 }
 0x526   :  { %v3942_v1 = vmax.f32 %v3938_v53, %v3941_v12 }
 0x528   :  { %v3950_v37 = vrot.slane %v3942_v1, %v7079_v43  ;;  %v3976_v1 = vmax.f32 %v3974_v17, %v3975_v3  ;;  %v4146_v17 = vld [vmem:[%s7722_s1 + $0x400] sm:$0xff]  ;;  %v4149_v3 = vld [vmem:[%s7722_s1 + $0x418] sm:$0xff] }
 0x52a   :  { %3951 = vrot.lane.b32.xlu0 %v3950_v37, %s5278_s20 }
 0x52f   :  { %v3472_v5 = vpop.f32.mrb[70].mxu1 }
 0x530   :  { %v3473_v13 = vadd.f32 %v7457_v60, %v3472_v5  ;;  %v3474_v21 = vpop.f32.mrb[71].mxu1 }
 0x532   :  { %v3546_v40 = vmax.f32 %v3473_v13, 0.0 }
 0x533   :  { %v3477_v62 = vpop.f32.mrb[72].mxu1 }
 0x534   :  { %3590 = vst.msk [vmem:[#allocation4 + $0x118] sm:$0xff] %vm3554_vm12, %v3546_v40  ;;  %v3478_v54 = vadd.f32 %v7457_v60, %v3477_v62  ;;  %v3479_v57 = vpop.f32.mrb[73].mxu1  ;;  %v2558_v62 = vpop.permute.xlu1 %2557 }
 0x536   :  { %v3547_v63 = vmax.f32 %v3478_v54, 0.0 }
 0x538   :  { %3591 = vst.msk [vmem:[#allocation4 + $0x120] sm:$0xff] %vm3554_vm12, %v3547_v63 }
 0x53b   :  { %v3959_v26 = vld [vmem:[#allocation4 + $0x118] sm:$0x3]  ;;  %v3996_v44 = vld [vmem:[#allocation4 + $0x11e] sm:$0x3]  ;;  %v3977_v34 = vld [vmem:[#allocation4 + $0x11a] sm:$0x3] }
 0x53c   :  { %v3960_v56 = vmax.f32 %v3958_v10, %v3959_v26  ;;  %v3978_v29 = vld [vmem:[#allocation4 + $0x11c] sm:$0x3] }
 0x53d   :  { %v3979_v31 = vmax.f32 %v3977_v34, %v3978_v29  ;;  %v4140_v26 = vld [vmem:[%s7722_s1 + $0x3d0] sm:$0xff]  ;;  %v4147_v34 = vld [vmem:[%s7722_s1 + $0x408] sm:$0xff] }
 0x53e   :  { %v3961_v28 = vmax.f32 %v3957_v58, %v3960_v56  ;;  %v4141_v58 = vld [vmem:[%s7722_s1 + $0x3d8] sm:$0xff] }
 0x53f   :  { %v4004_v7 = vld [vmem:[#allocation4 + $0x122] sm:$0x3]  ;;  %v4005_v59 = vld [vmem:[#allocation4 + $0x124] sm:$0x3]  ;;  %v3997_v18 = vld [vmem:[#allocation4 + $0x120] sm:$0x3]  ;;  %v3980_v13 = vmax.f32 %v3976_v1, %v3979_v31  ;;  %v5183_v45 = vpack.c.bf16 %v4141_v58, %v4140_v26 }
 0x540   :  { %v3969_v27 = vrot.slane %v3961_v28, %v7079_v43  ;;  %v4006_v41 = vmax.f32 %v4004_v7, %v4005_v59  ;;  %v3998_v16 = vmax.f32 %v3996_v44, %v3997_v18  ;;  %v4023_v25 = vld [vmem:[#allocation4 + $0x126] sm:$0x3]  ;;  %v4155_v44 = vld [vmem:[%s7722_s1 + $0x448] sm:$0xff]  ;;  %v4132_v1 = vld [vmem:[%s7722_s1 + $0x390] sm:$0xff] }
 0x541   :  { %v3988_v40 = vrot.slane %v3980_v13, %v7079_v43  ;;  %v4125_v7 = vld [vmem:[%s7722_s1 + $0x358] sm:$0xff]  ;;  %v4151_v13 = vld [vmem:[%s7722_s1 + $0x428] sm:$0xff] }
 0x542   :  { %3970 = vrot.lane.b32.xlu1 %v3969_v27, %s5281_s28  ;;  %v4007_v11 = vmax.f32 %v4003_v47, %v4006_v41  ;;  %v3999_v23 = vmax.f32 %v3995_v6, %v3998_v16  ;;  %v4142_v27 = vld [vmem:[%s7722_s1 + $0x3e0] sm:$0xff]  ;;  %v4143_v47 = vld [vmem:[%s7722_s1 + $0x3e8] sm:$0xff]  ;;  %v5185_v18 = vpack.c.bf16 %v4125_v7, %v4124_v52  ;;  %v4161_v31 = vld [vmem:[%s7722_s1 + $0x478] sm:$0xff] }
 0x543   :  { %v4154_v41 = vld [vmem:[%s7722_s1 + $0x440] sm:$0xff] }
 0x544   :  { %v3482_v24 = vpop.f32.mrb[74].mxu1  ;;  %v4015_v51 = vrot.slane %v4007_v11, %v7079_v43  ;;  %4000 = vst.msk [vmem:[#allocation5 + $0xc] sm:$0x3] %vm3606_vm13, %v3999_v23  ;;  %v5187_v11 = vpack.c.bf16 %v4143_v47, %v4142_v27  ;;  %v4126_v23 = vld [vmem:[%s7722_s1 + $0x360] sm:$0xff]  ;;  %v4169_v27 = vld [vmem:[%s7722_s1 + $0x4b8] sm:$0xff] }
 0x545   :  { %v3483_v33 = vadd.f32 %v7457_v60, %v3482_v24  ;;  %v3484_v20 = vpop.f32.mrb[75].mxu1  ;;  %v4041_v60 = vmax.f32 %v4039_v9, %v4040_v19  ;;  %v4127_v24 = vld [vmem:[%s7722_s1 + $0x368] sm:$0xff] }
 0x546   :  { %4016 = vrot.lane.b32.xlu1 %v4015_v51, %s5278_s20  ;;  %v4144_v51 = vld [vmem:[%s7722_s1 + $0x3f0] sm:$0xff]  ;;  %v5212_v20 = vpack.c.bf16 %v4155_v44, %v4154_v41  ;;  %v5189_v9 = vpack.c.bf16 %v4127_v24, %v4126_v23 }
 0x547   :  { %v3548_v48 = vmax.f32 %v3483_v33, 0.0  ;;  %v4145_v33 = vld [vmem:[%s7722_s1 + $0x3f8] sm:$0xff] }
 0x548   :  { %v5191_v19 = vpack.c.bf16 %v4145_v33, %v4144_v51 }
 0x549   :  { %3592 = vst.msk [vmem:[#allocation4 + $0x128] sm:$0xff] %vm3554_vm12, %v3548_v48  ;;  %v4156_v48 = vld [vmem:[%s7722_s1 + $0x450] sm:$0xff] }
 0x54a   :  { %v5215_v29 = vpack.c.bf16 %v4157_v8, %v4156_v48 }
 0x550   :  { %v3487_v55 = vpop.f32.mrb[76].mxu1  ;;  %v4042_v15 = vld [vmem:[#allocation4 + $0x12a] sm:$0x3]  ;;  %v4043_v14 = vld [vmem:[#allocation4 + $0x12c] sm:$0x3] }
 0x551   :  { %v3489_v46 = vpop.f32.mrb[77].mxu1  ;;  %v4044_v35 = vmax.f32 %v4042_v15, %v4043_v14  ;;  %v4024_v50 = vld [vmem:[#allocation4 + $0x128] sm:$0x3]  ;;  %v4129_v55 = vld [vmem:[%s7722_s1 + $0x378] sm:$0xff]  ;;  %v4159_v15 = vld [vmem:[%s7722_s1 + $0x468] sm:$0xff] }
 0x552   :  { %v4025_v30 = vmax.f32 %v4023_v25, %v4024_v50  ;;  %v4158_v46 = vld [vmem:[%s7722_s1 + $0x460] sm:$0xff]  ;;  %v5193_v14 = vpack.c.bf16 %v4129_v55, %v4128_v42  ;;  %v4131_v25 = vld [vmem:[%s7722_s1 + $0x388] sm:$0xff]  ;;  %v4148_v50 = vld [vmem:[%s7722_s1 + $0x410] sm:$0xff] }
 0x553   :  { %v4045_v53 = vmax.f32 %v4041_v60, %v4044_v35  ;;  %v5195_v60 = vpack.c.bf16 %v4147_v34, %v4146_v17  ;;  %v4130_v35 = vld [vmem:[%s7722_s1 + $0x380] sm:$0xff] }
 0x554   :  { %v4026_v12 = vmax.f32 %v4022_v32, %v4025_v30  ;;  %v5218_v32 = vpack.c.bf16 %v4159_v15, %v4158_v46  ;;  %v4160_v30 = vld [vmem:[%s7722_s1 + $0x470] sm:$0xff]  ;;  %v4503_v15 = vld [vmem:[%s7722_s1 + $0xd8] sm:$0xff] }
 0x555   :  { %v4053_v37 = vrot.slane %v4045_v53, %v7079_v43  ;;  %v5197_v53 = vpack.c.bf16 %v4131_v25, %v4130_v35  ;;  %v4502_v46 = vld [vmem:[%s7722_s1 + $0xd0] sm:$0xff] }
 0x556   :  { %v4034_v5 = vrot.slane %v4026_v12, %v7079_v43  ;;  %v5199_v12 = vpack.c.bf16 %v4149_v3, %v4148_v50  ;;  %v4506_v25 = vld [vmem:[%s7722_s1 + $0xf0] sm:$0xff]  ;;  %v4508_v3 = vld [vmem:[%s7722_s1 + $0x100] sm:$0xff] }
 0x557   :  { %4054 = vrot.lane.b32.xlu1 %v4053_v37, %s5280_s27  ;;  %v4133_v37 = vld [vmem:[%s7722_s1 + $0x398] sm:$0xff] }
 0x558   :  { %4035 = vrot.lane.b32.xlu0 %v4034_v5, %s5281_s28  ;;  %v3841_v21 = vpop.permute.xlu0 %3840  ;;  %v4150_v5 = vld [vmem:[%s7722_s1 + $0x420] sm:$0xff] }
 0x559   :  { %3843 = vst.msk [vmem:[#allocation5 + $0x6] sm:$0x3] %vm3646_vm4, %v3841_v21  ;;  %v5221_v21 = vpack.c.bf16 %v4161_v31, %v4160_v30  ;;  %v4510_v31 = vld [vmem:[%s7722_s1 + $0x110] sm:$0xff] }
 0x55c   :  { %3989 = vrot.lane.b32.xlu0 %v3988_v40, %s5280_s27  ;;  %v3860_v54 = vpop.permute.xlu0 %3859  ;;  %v4162_v40 = vld [vmem:[%s7722_s1 + $0x480] sm:$0xff] }
 0x55d   :  { %3862 = vst.msk [vmem:[#allocation5 + $0x6] sm:$0x3] %vm3666_vm5, %v3860_v54  ;;  %v5201_v54 = vpack.c.bf16 %v4133_v37, %v4132_v1  ;;  %v4512_v1 = vld [vmem:[%s7722_s1 + $0x120] sm:$0xff]  ;;  %v4513_v37 = vld [vmem:[%s7722_s1 + $0x128] sm:$0xff] }
 0x560   :  { %v3887_v57 = vpop.permute.xlu1 %3886  ;;  %v2298_v63 = vpop.permute.xlu0 %2297 }
 0x561   :  { %3889 = vst.msk [vmem:[#allocation5 + $0x8] sm:$0x3] %vm3626_vm2, %v3887_v57  ;;  %v5203_v57 = vpack.c.bf16 %v4151_v13, %v4150_v5  ;;  %v5254_v5 = vpack.c.bf16 %v4513_v37, %v4512_v1  ;;  %v4514_v13 = vld [vmem:[%s7722_s1 + $0x130] sm:$0xff] }
 0x562   :  { %2386 = vst.msk [vmem:[#allocation3 + $0x2a0] sm:$0xf] %vm2385_vm6, %v2298_v63  ;;  %v4134_v63 = vld [vmem:[%s7722_s1 + $0x3a0] sm:$0xff] }
 0x563   :  { %2646 = vst.msk [vmem:[#allocation3 + $0x2a0] sm:$0xf] %vm2645_vm7, %v2558_v62  ;;  %v4163_v62 = vld [vmem:[%s7722_s1 + $0x488] sm:$0xff] }
 0x564   :  { %v2818_v22 = vpop.permute.xlu0 %2817  ;;  %v4171_v36 = vld [vmem:[#allocation5] sm:$0xff]  ;;  %v3925_v59 = vpop.permute.xlu1 %3924  ;;  %v5224_v38 = vpack.c.bf16 %v4163_v62, %v4162_v40 }
 0x565   :  { %2906 = vst.msk [vmem:[#allocation3 + $0x2a0] sm:$0xf] %vm2905_vm8, %v2818_v22  ;;  %v4186_v39 = vrot.slane %v4171_v36, %v7079_v43  ;;  %v4179_v10 = vcombine.high %v4171_v36, %v4171_v36  ;;  %v4135_v22 = vld [vmem:[%s7722_s1 + $0x3a8] sm:$0xff]  ;;  %v4152_v36 = vld [vmem:[%s7722_s1 + $0x430] sm:$0xff] }
 0x566   :  { %v5205_v26 = vpack.c.bf16 %v4135_v22, %v4134_v63  ;;  %v5207_v58 = vpack.c.bf16 %v4153_v49, %v4152_v36  ;;  %v4684_v36 = vld [vmem:[%s7722_s1 + $0xb9] ss:$0 sm:$0xff] }
 0x567   :  { %v4194_v56 = vcombine.high %v4186_v39, %v4186_v39  ;;  %v4193_v28 = vrot.slane %v4179_v10, %v7079_v43  ;;  %v4165_v10 = vld [vmem:[%s7722_s1 + $0x498] sm:$0xff] }
 0x568   :  { %v3906_v61 = vpop.permute.xlu0 %3905 }
 0x569   :  { %3908 = vst.msk [vmem:[#allocation5 + $0x8] sm:$0x3] %vm3646_vm4, %v3906_v61  ;;  %4283 = vmatprep.mubr.f32.mxu0 %v4194_v56  ;;  %v4195_v16 = vcombine.high %v4193_v28, %v4193_v28  ;;  %v4136_v56 = vld [vmem:[%s7722_s1 + $0x3b0] sm:$0xff] }
 0x56a   :  { %3927 = vst.msk [vmem:[#allocation5 + $0x8] sm:$0x3] %vm3666_vm5, %v3925_v59  ;;  %4284 = vmatmul.mubr.f32.vlgmr.msra.gmra.mrb[86].mxu0 %v4186_v39  ;;  %v4164_v39 = vld [vmem:[%s7722_s1 + $0x490] sm:$0xff] }
 0x56b   :  { %5182 = vmatpush3.bf16.msra.mxu0 %v5181_v2  ;;  %v4137_v2 = vld [vmem:[%s7722_s1 + $0x3b8] sm:$0xff]  ;;  %v5227_v61 = vpack.c.bf16 %v4165_v10, %v4164_v39  ;;  %v4168_v59 = vld [vmem:[%s7722_s1 + $0x4b0] sm:$0xff] }
 0x56c   :  { %v3096_v6 = vld [vmem:[#allocation3 + $0x2a0] sm:$0xf]  ;;  %5184 = vmatprep.subr.bf16.mxu0 %v5183_v45  ;;  %v5209_v52 = vpack.c.bf16 %v4137_v2, %v4136_v56  ;;  %v5233_v47 = vpack.c.bf16 %v4169_v27, %v4168_v59 }
 0x56d   :  { %3506 = vmatmul.mubr.f32.gmra.mrb[84].mxu1 %v3096_v6  ;;  %v4167_v45 = vld [vmem:[%s7722_s1 + $0x4a8] sm:$0xff] }
 0x56e   :  { %4353 = vmatprep.mubr.f32.mxu1 %v4195_v16 }
 0x56f   :  { %5186 = vmatpush3.bf16.msra.mxu0 %v5185_v18 }
 0x570   :  { %5188 = vmatprep.subr.bf16.mxu0 %v5187_v11 }
 0x571   :  { %4354 = vmatmul.mubr.f32.vlgmr.msra.gmra.mrb[86].mxu1 %v4193_v28  ;;  %v4166_v28 = vld [vmem:[%s7722_s1 + $0x4a0] sm:$0xff] }
 0x572   :  { %5213 = vmatpush3.bf16.msra.mxu1 %v5212_v20  ;;  %5044 = vmatprep.mubr.msk.f32.mxu1 %vm5275_vm0, %v5276_v4  ;;  %v5230_v7 = vpack.c.bf16 %v4167_v45, %v4166_v28 }
 0x573   :  { %5214 = vmatprep.subr.bf16.mxu1 %v5274_v0  ;;  %5190 = vmatpush3.bf16.msra.mxu0 %v5189_v9  ;;  %v4500_v9 = vld [vmem:[%s7722_s1 + $0xc0] sm:$0xff] }
 0x574   :  { %5192 = vmatprep.subr.bf16.mxu0 %v5191_v19  ;;  %v4501_v19 = vld [vmem:[%s7722_s1 + $0xc8] sm:$0xff] }
 0x576   :  { %5216 = vmatpush3.bf16.msra.mxu1 %v5215_v29  ;;  %v5236_v29 = vpack.c.bf16 %v4501_v19, %v4500_v9 }
 0x577   :  { %5217 = vmatprep.subr.bf16.mxu1 %v5274_v0  ;;  %5194 = vmatpush3.bf16.msra.mxu0 %v5193_v14  ;;  %v5239_v14 = vpack.c.bf16 %v4503_v15, %v4502_v46 }
 0x578   :  { %5196 = vmatprep.subr.bf16.mxu0 %v5195_v60  ;;  %v4505_v60 = vld [vmem:[%s7722_s1 + $0xe8] sm:$0xff] }
 0x57a   :  { %5219 = vmatpush3.bf16.msra.mxu1 %v5218_v32  ;;  %v4509_v32 = vld [vmem:[%s7722_s1 + $0x108] sm:$0xff] }
 0x57b   :  { %5220 = vmatprep.subr.bf16.mxu1 %v5274_v0  ;;  %5198 = vmatpush3.bf16.msra.mxu0 %v5197_v53  ;;  %v5248_v30 = vpack.c.bf16 %v4509_v32, %v4508_v3  ;;  %v4511_v53 = vld [vmem:[%s7722_s1 + $0x118] sm:$0xff] }
 0x57c   :  { %5200 = vmatprep.subr.bf16.mxu0 %v5199_v12  ;;  %v5251_v12 = vpack.c.bf16 %v4511_v53, %v4510_v31 }
 0x57e   :  { %5222 = vmatpush3.bf16.msra.mxu1 %v5221_v21  ;;  %v4515_v21 = vld [vmem:[%s7722_s1 + $0x138] sm:$0xff] }
 0x57f   :  { %5223 = vmatprep.subr.bf16.mxu1 %v5274_v0  ;;  %5202 = vmatpush3.bf16.msra.mxu0 %v5201_v54  ;;  %v5257_v40 = vpack.c.bf16 %v4515_v21, %v4514_v13 }
 0x580   :  { %5204 = vmatprep.subr.bf16.mxu0 %v5203_v57 }
 0x582   :  { %5225 = vmatpush3.bf16.msra.mxu1 %v5224_v38 }
 0x583   :  { %5226 = vmatprep.subr.bf16.mxu1 %v5274_v0  ;;  %5206 = vmatpush3.bf16.msra.mxu0 %v5205_v26 }
 0x584   :  { %5208 = vmatprep.subr.bf16.mxu0 %v5207_v58 }
 0x586   :  { %5228 = vmatpush3.bf16.msra.mxu1 %v5227_v61 }
 0x587   :  { %5229 = vmatprep.subr.bf16.mxu1 %v5274_v0  ;;  %5210 = vmatpush3.bf16.msra.mxu0 %v5209_v52 }
 0x588   :  { %5235 = vmatprep.subr.bf16.mxu0 %v5274_v0 }
 0x58a   :  { %5231 = vmatpush3.bf16.msra.mxu1 %v5230_v7  ;;  %v4685_v7 = vld [vmem:[%s7722_s1 + $0xba] ss:$0 sm:$0xff] }
 0x58b   :  { %5232 = vmatprep.subr.bf16.mxu1 %v5274_v0 }
 0x58e   :  { %5234 = vmatpush3.bf16.msra.mxu1 %v5233_v47 }
 0x59c   :  { %v3952_v41 = vpop.permute.xlu0 %3951 }
 0x59d   :  { %3954 = vst.msk [vmem:[#allocation5 + $0xa] sm:$0x3] %vm3626_vm2, %v3952_v41 }
 0x5a5   :  { %v3492_v18 = vpop.f32.mrb[78].mxu1 }
 0x5a6   :  { %v3494_v16 = vpop.f32.mrb[79].mxu1 }
 0x5a9   :  { %v3497_v11 = vpop.f32.mrb[80].mxu1 }
 0x5aa   :  { %v3499_v23 = vpop.f32.mrb[81].mxu1 }
 0x5ad   :  { %v3502_v24 = vpop.f32.mrb[82].mxu1 }
 0x5ae   :  { %v3504_v51 = vpop.f32.mrb[83].mxu1 }
 0x5b4   :  { %v3971_v44 = vpop.permute.xlu1 %3970 }
 0x5b5   :  { %3973 = vst.msk [vmem:[#allocation5 + $0xa] sm:$0x3] %vm3646_vm4, %v3971_v44 }
 0x5b8   :  { %v4017_v6 = vpop.permute.xlu1 %4016 }
 0x5b9   :  { %4019 = vst.msk [vmem:[#allocation5 + $0xc] sm:$0x3] %vm3626_vm2, %v4017_v6 }
 0x5c9   :  { %v4055_v33 = vpop.permute.xlu1 %4054 }
 0x5ca   :  { %v4036_v20 = vpop.permute.xlu0 %4035 }
 0x5cb   :  { %4038 = vst.msk [vmem:[#allocation5 + $0xc] sm:$0x3] %vm3646_vm4, %v4036_v20 }
 0x5cc   :  { %4057 = vst.msk [vmem:[#allocation5 + $0xc] sm:$0x3] %vm3666_vm5, %v4055_v33 }
 0x5ce   :  { %v3990_v48 = vpop.permute.xlu0 %3989 }
 0x5cf   :  { %3992 = vst.msk [vmem:[#allocation5 + $0xa] sm:$0x3] %vm3666_vm5, %v3990_v48 }
 0x5d6   :  { %v4172_v8 = vld [vmem:[#allocation5 + $0x8] sm:$0x3f] }
 0x5d7   :  { %v4196_v42 = vcombine.high %v4172_v8, %v4172_v8  ;;  %v4203_v55 = vrot.slane %v4172_v8, %v7079_v43 }
 0x5d9   :  { %v4211_v17 = vcombine.high %v4203_v55, %v4203_v55  ;;  %v4210_v34 = vrot.slane %v4196_v42, %v7079_v43  ;;  %v4504_v43 = vld [vmem:[%s7722_s1 + $0xe0] sm:$0xff] }
 0x5da   :  { %v5242_v35 = vpack.c.bf16 %v4505_v60, %v4504_v43 }
 0x5db   :  { %4423 = vmatprep.mubr.f32.mxu0 %v4211_v17  ;;  %5045 = vmatmul.mubr.f32.vlgmr.msra.gmra.mrb[88].mxu1 %v4210_v34 }
 0x5dc   :  { %4424 = vmatmul.mubr.f32.vlgmr.msra.gmra.mrb[88].mxu0 %v4203_v55 }
 0x5dd   :  { %5237 = vmatpush3.bf16.msra.mxu0 %v5236_v29  ;;  %5079 = vmatprep.mubr.msk.f32.mxu0 %vm5275_vm0, %v5276_v4  ;;  %v4507_v4 = vld [vmem:[%s7722_s1 + $0xf8] sm:$0xff] }
 0x5de   :  { %5238 = vmatprep.subr.bf16.mxu0 %v5274_v0  ;;  %v5245_v50 = vpack.c.bf16 %v4507_v4, %v4506_v25 }
 0x5e1   :  { %5240 = vmatpush3.bf16.msra.mxu0 %v5239_v14 }
 0x5e2   :  { %5241 = vmatprep.subr.bf16.mxu0 %v5274_v0 }
 0x5e5   :  { %5243 = vmatpush3.bf16.msra.mxu0 %v5242_v35 }
 0x5e6   :  { %5244 = vmatprep.subr.bf16.mxu0 %v5274_v0 }
 0x5e9   :  { %5246 = vmatpush3.bf16.msra.mxu0 %v5245_v50 }
 0x5ea   :  { %5247 = vmatprep.subr.bf16.mxu0 %v5274_v0 }
 0x5ed   :  { %5249 = vmatpush3.bf16.msra.mxu0 %v5248_v30 }
 0x5ee   :  { %5250 = vmatprep.subr.bf16.mxu0 %v5274_v0 }
 0x5f1   :  { %5252 = vmatpush3.bf16.msra.mxu0 %v5251_v12 }
 0x5f2   :  { %5253 = vmatprep.subr.bf16.mxu0 %v5274_v0 }
 0x5f5   :  { %5255 = vmatpush3.bf16.msra.mxu0 %v5254_v5 }
 0x5f6   :  { %5256 = vmatprep.subr.bf16.mxu0 %v5274_v0 }
 0x5f9   :  { %5258 = vmatpush3.bf16.msra.mxu0 %v5257_v40 }
 0x63d   :  { %v4766_v62 = vpop.f32.mrb[86].mxu0 }
 0x63e   :  { %v4767_v54 = vpop.f32.mrb[87].mxu0 }
 0x63f   :  { %v4768_v57 = vadd.f32 %v4767_v54, %v4766_v62 }
 0x640   :  { %v3507_v63 = vpop.f32.mrb[84].mxu1 }
 0x641   :  { %v3509_v22 = vpop.f32.mrb[85].mxu1  ;;  %v4286_v38 = vadd.f32 %v4768_v57, %v4684_v36 }
 0x644   :  { %v4801_v0 = vpop.f32.mrb[86].mxu1 }
 0x645   :  { %v4802_v49 = vpop.f32.mrb[87].mxu1 }
 0x646   :  { %v4803_v39 = vadd.f32 %v4802_v49, %v4801_v0 }
 0x648   :  { %v4356_v10 = vadd.f32 %v4803_v39, %v4286_v38 }
 0x6ae   :  { %v4495_v26 = vpop.f32.mrb[88].mxu1 }
 0x6af   :  { %v4836_v58 = vpop.f32.mrb[88].mxu0  ;;  %v5046_v56 = vpop.f32.mrb[89].mxu1 }
 0x6b0   :  { %v4837_v2 = vpop.f32.mrb[89].mxu0 }
 0x6b1   :  { %v4838_v61 = vadd.f32 %v4837_v2, %v4836_v58 }
 0x6b3   :  { %v4426_v28 = vadd.f32 %v4838_v61, %v4356_v10 }
 0x6b5   :  { %v4496_v45 = vadd.f32 %v4495_v26, %v4426_v28 }
 0x6b7   :  { %v4499_v52 = vmax.f32 %v4496_v45, 0.0 }
 0x6b9   :  { %5080 = vmatmul.mubr.f32.vlgmr.msra.gmra.mrb[90].mxu0 %v4499_v52 }
 0x78c   :  { %v4587_v59 = vpop.f32.mrb[90].mxu0 }
 0x78d   :  { %v4588_v27 = vadd.f32 %v4685_v7, %v4587_v59  ;;  %v5081_v47 = vpop.f32.mrb[91].mxu0 }
 0x78f   :  { %4591 = vst [vmem:[%s7724_s2] sm:$0x3] %v4588_v27 }

</bundles_post_ra>
